<compile_context>
chip_gen: v6e
topology: v6e:2x2x1
jax: 0.10.0
libtpu: 0.0.40
codegen_flags: <defaults>
</compile_context>

<pallas_src>
import functools

import numpy as np
import jax
import jax.numpy as jnp
from jax.experimental import pallas as pl
from jax.experimental.pallas import tpu as pltpu

_LANE = 128  # lane width for the padded output / Z-sign matrix


# ----------------------------------------------------------------------------
# Pallas kernel: RX product state -> effective unitary -> PauliZ expvals
# ----------------------------------------------------------------------------
def _make_quantum_kernel(n_qubits, dim):
    def kernel(x_ref, u_ref, z_ref, o_ref):
        x = x_ref[...]                                   # (Bb, nq)
        half = 0.5 * x
        ch = jnp.cos(half)                               # (Bb, nq)  (EUP)
        sh = jnp.sin(half)
        bb = x.shape[0]
        lane = jax.lax.broadcasted_iota(jnp.int32, (bb, dim), 1)

        # |psi_init[s]| = prod_i (bit_i(s) ? sin(x_i/2) : cos(x_i/2));  wire 0 = MSB.
        mag = None
        for i in range(n_qubits):                        # static unroll, nq is small
            bit = (lane & (1 << (n_qubits - 1 - i))) != 0
            factor = jnp.where(bit, sh[:, i:i + 1], ch[:, i:i + 1])   # VPU select
            mag = factor if mag is None else mag * factor

        # [re | im] = mag @ [Ur^T | Ui^T]   -- single MXU matmul (Bb,D) @ (D,2D);
        # the phase of psi_init is already folded into U.
        ri = jnp.dot(mag, u_ref[...], preferred_element_type=jnp.float32)

        # <Z_j> = sum_s (re_s^2 + im_s^2) * z[s, j] ; z is vertically stacked and
        # lane-padded to 128 so the output store is lane-dense (unmasked vst).
        o_ref[...] = jnp.dot(ri * ri, z_ref[...], preferred_element_type=jnp.float32)

    return kernel


# ----------------------------------------------------------------------------
# Host-side weight folding (depends only on parameters, computed once)
# ----------------------------------------------------------------------------
_CNOT4 = np.array([[1, 0, 0, 0],
                   [0, 1, 0, 0],
                   [0, 0, 0, 1],
                   [0, 0, 1, 0]], dtype=np.complex64)


def _rot_matrix(phi, theta, omega):
    """PennyLane Rot(phi, theta, omega) = RZ(omega) RY(theta) RZ(phi)."""
    c = jnp.cos(theta / 2)
    s = jnp.sin(theta / 2)
    epo = jnp.exp(-0.5j * (phi + omega))
    emo = jnp.exp(0.5j * (phi - omega))
    return jnp.array([[epo * c, -emo * s],
                      [jnp.conj(emo) * s, jnp.conj(epo) * c]]).astype(jnp.complex64)


def _embed(u, wire, n_qubits, k):
    left = jnp.eye(2 ** wire, dtype=jnp.complex64)
    right = jnp.eye(2 ** (n_qubits - wire - k), dtype=jnp.complex64)
    return jnp.kron(jnp.kron(left, u), right)


def fold_circuit(weights, n_qubits):
    """Fold Rot layers + CNOT chains (+ RX phase diagonal) into kernel operands."""
    n_layers = weights.shape[0]
    dim = 2 ** n_qubits
    with jax.default_matmul_precision("highest"):
        cnot_chain = jnp.eye(dim, dtype=jnp.complex64)
        for i in range(n_qubits - 1):
            cnot_chain = _embed(jnp.asarray(_CNOT4), i, n_qubits, 2) @ cnot_chain
        u = jnp.eye(dim, dtype=jnp.complex64)
        for layer in range(n_layers):
            rot_layer = functools.reduce(
                jnp.kron,
                [_rot_matrix(*weights[layer, i]) for i in range(n_qubits)])
            u = cnot_chain @ rot_layer @ u

    # RX product state amplitude = magnitude * (-i)^popcount(s); fold phase into U.
    idx = np.arange(dim)
    pop = np.array([bin(s).count("1") for s in idx]) & 3
    phase = np.array([1, -1j, -1, 1j], dtype=np.complex64)[pop]
    u_eff = u * jnp.asarray(phase)[None, :]

    # Row-vector matmul form: psi_row @ U_eff^T ; stack real|imag -> one (D, 2D) operand.
    urt = jnp.real(u_eff).T.astype(jnp.float32)
    uit = jnp.imag(u_eff).T.astype(jnp.float32)
    u_stacked = jnp.concatenate([urt, uit], axis=1)              # (D, 2D)

    # PauliZ signs, lane-padded to 128 and vertically stacked for the [re|im] layout.
    bits = (idx[:, None] >> (n_qubits - 1 - np.arange(n_qubits))[None, :]) & 1
    zsigns = np.zeros((dim, _LANE), np.float32)
    zsigns[:, :n_qubits] = (1.0 - 2.0 * bits).astype(np.float32)
    z_stacked = jnp.asarray(np.concatenate([zsigns, zsigns], axis=0))  # (2D, 128)
    return u_stacked, z_stacked


# ----------------------------------------------------------------------------
# Wrapper
# ----------------------------------------------------------------------------
def quantum_layer_forward(x, weights, block_b=64):
    B, n_qubits = x.shape
    dim = 2 ** n_qubits
    assert B % block_b == 0 and block_b % 8 == 0, "pick block_b | B, multiple of 8"
    assert n_qubits <= _LANE
    u_stacked, z_stacked = fold_circuit(weights, n_qubits)
    kernel = _make_quantum_kernel(n_qubits, dim)
    out_padded = pl.pallas_call(
        kernel,
        out_shape=jax.ShapeDtypeStruct((B, _LANE), jnp.float32),
        grid=(B // block_b,),
        in_specs=[
            pl.BlockSpec((block_b, n_qubits), lambda i: (i, 0)),
            pl.BlockSpec((dim, 2 * dim), lambda i: (0, 0)),
            pl.BlockSpec((2 * dim, _LANE), lambda i: (0, 0)),
        ],
        out_specs=pl.BlockSpec((block_b, _LANE), lambda i: (i, 0)),
        compiler_params=pltpu.CompilerParams(
            dimension_semantics=("parallel",)),
    )(x, u_stacked, z_stacked)
    return out_padded[:, :n_qubits]


# ----------------------------------------------------------------------------
# Pure-JAX reference: gate-by-gate statevector simulation of the same circuit
# ----------------------------------------------------------------------------
def ref_forward(x, weights):
    B, nq = x.shape
    dim = 2 ** nq
    n_layers = weights.shape[0]
    state = jnp.zeros((B, dim), jnp.complex64).at[:, 0].set(1.0)

    def apply_1q(state, u, w, batched):
        st = state.reshape((B,) + (2,) * nq)
        st = jnp.moveaxis(st, 1 + w, -1)
        eq = 'b...j,bij->b...i' if batched else 'b...j,ij->b...i'
        st = jnp.einsum(eq, st, u, precision='highest')
        st = jnp.moveaxis(st, -1, 1 + w)
        return st.reshape(B, dim)

    def apply_cnot(state, c, t):
        st = state.reshape((B,) + (2,) * nq)
        st = jnp.moveaxis(st, (1 + c, 1 + t), (-2, -1))
        shp = st.shape
        st = jnp.einsum('bj,ij->bi', st.reshape(-1, 4), jnp.asarray(_CNOT4),
                        precision='highest').reshape(shp)
        st = jnp.moveaxis(st, (-2, -1), (1 + c, 1 + t))
        return st.reshape(B, dim)

    half = 0.5 * x
    c, s = jnp.cos(half), jnp.sin(half)
    for i in range(nq):                                   # RX encoding (batched angles)
        rx = jnp.stack(
            [jnp.stack([c[:, i] + 0j, -1j * s[:, i]], axis=-1),
             jnp.stack([-1j * s[:, i], c[:, i] + 0j], axis=-1)], axis=-2)
        state = apply_1q(state, rx.astype(jnp.complex64), i, batched=True)

    for layer in range(n_layers):
        for i in range(nq):
            state = apply_1q(state, _rot_matrix(*weights[layer, i]), i, batched=False)
        for i in range(nq - 1):
            state = apply_cnot(state, i, i + 1)

    probs = jnp.abs(state) ** 2
    idx = jnp.arange(dim)
    bits = (idx[:, None] >> (nq - 1 - jnp.arange(nq))[None, :]) & 1
    zsigns = 1.0 - 2.0 * bits.astype(jnp.float32)
    return jnp.dot(probs, zsigns, precision='highest')


# ----------------------------------------------------------------------------
if __name__ == "__main__":
    n_qubits = 8          # statevector dim D = 256 (lane-dense)
    n_layers = 3
    batch = 128
    block_b = 64

    key = jax.random.PRNGKey(0)
    kx, kw = jax.random.split(key)
    x = jax.random.normal(kx, (batch, n_qubits), jnp.float32)
    weights = jax.random.normal(kw, (n_layers, n_qubits, 3), jnp.float32)

    y = quantum_layer_forward(x, weights, block_b=block_b)
    y = jax.block_until_ready(y)

    y_ref = ref_forward(x, weights)

    assert y.shape == (batch, n_qubits)
    assert bool(jnp.all(jnp.isfinite(y)))
    max_err = float(jnp.max(jnp.abs(y - y_ref)))
    assert max_err < 5e-3, f"max_err={max_err}"
    print("KERNEL_OK")
</pallas_src>

<mosaic_0001>
module attributes {stable_mosaic.version = 11 : i64} {
  func.func @kernel(%arg0: i32, %arg1: memref<64x8xf32, #tpu.memory_space<vmem>>, %arg2: memref<256x512xf32, #tpu.memory_space<vmem>>, %arg3: memref<512x128xf32, #tpu.memory_space<vmem>>, %arg4: memref<64x128xf32, #tpu.memory_space<vmem>>) attributes {dimension_semantics = [#tpu.dimension_semantics<parallel>], iteration_bounds = array<i64: 2>, scalar_prefetch = 0 : i64, scratch_operands = 0 : i64, tpu.core_type = #tpu.core_type<tc>, window_params = [{transform_indices = @transform_0, window_bounds = array<i64: 64, 8>}, {pipeline_mode = #tpu.pipeline_mode<synchronous>, transform_indices = @transform_1, window_bounds = array<i64: 256, 512>}, {pipeline_mode = #tpu.pipeline_mode<synchronous>, transform_indices = @transform_2, window_bounds = array<i64: 512, 128>}, {transform_indices = @transform_3, window_bounds = array<i64: 64, 128>}]} {
    %c0 = arith.constant 0 : index
    %c0_0 = arith.constant 0 : index
    %0 = vector.load %arg1[%c0, %c0_0] : memref<64x8xf32, #tpu.memory_space<vmem>>, vector<64x8xf32>
    %cst = arith.constant 5.000000e-01 : f32
    %1 = vector.broadcast %cst : f32 to vector<64x8xf32>
    %2 = arith.mulf %1, %0 : vector<64x8xf32>
    %3 = math.cos %2 : vector<64x8xf32>
    %4 = math.sin %2 : vector<64x8xf32>
    %5 = tpu.iota {dimensions = array<i32: 1>} : vector<64x256xi32>
    %c128_i32 = arith.constant 128 : i32
    %6 = vector.broadcast %c128_i32 : i32 to vector<64x256xi32>
    %7 = arith.andi %5, %6 : vector<64x256xi32>
    %c0_i32 = arith.constant 0 : i32
    %8 = vector.broadcast %c0_i32 : i32 to vector<64x256xi32>
    %9 = arith.cmpi ne, %7, %8 : vector<64x256xi32>
    %10 = vector.extract_strided_slice %4 {offsets = [0, 0], sizes = [64, 1], strides = [1, 1]} : vector<64x8xf32> to vector<64x1xf32>
    %11 = vector.extract_strided_slice %3 {offsets = [0, 0], sizes = [64, 1], strides = [1, 1]} : vector<64x8xf32> to vector<64x1xf32>
    %12 = vector.shape_cast %10 : vector<64x1xf32> to vector<64x1xf32>
    %13 = vector.broadcast %12 : vector<64x1xf32> to vector<64x256xf32>
    %14 = vector.shape_cast %11 : vector<64x1xf32> to vector<64x1xf32>
    %15 = vector.broadcast %14 : vector<64x1xf32> to vector<64x256xf32>
    %16 = arith.select %9, %13, %15 : vector<64x256xi1>, vector<64x256xf32>
    %c64_i32 = arith.constant 64 : i32
    %17 = vector.broadcast %c64_i32 : i32 to vector<64x256xi32>
    %18 = arith.andi %5, %17 : vector<64x256xi32>
    %c0_i32_1 = arith.constant 0 : i32
    %19 = vector.broadcast %c0_i32_1 : i32 to vector<64x256xi32>
    %20 = arith.cmpi ne, %18, %19 : vector<64x256xi32>
    %21 = vector.extract_strided_slice %4 {offsets = [0, 1], sizes = [64, 1], strides = [1, 1]} : vector<64x8xf32> to vector<64x1xf32>
    %22 = vector.extract_strided_slice %3 {offsets = [0, 1], sizes = [64, 1], strides = [1, 1]} : vector<64x8xf32> to vector<64x1xf32>
    %23 = vector.shape_cast %21 : vector<64x1xf32> to vector<64x1xf32>
    %24 = vector.broadcast %23 : vector<64x1xf32> to vector<64x256xf32>
    %25 = vector.shape_cast %22 : vector<64x1xf32> to vector<64x1xf32>
    %26 = vector.broadcast %25 : vector<64x1xf32> to vector<64x256xf32>
    %27 = arith.select %20, %24, %26 : vector<64x256xi1>, vector<64x256xf32>
    %28 = arith.mulf %16, %27 : vector<64x256xf32>
    %c32_i32 = arith.constant 32 : i32
    %29 = vector.broadcast %c32_i32 : i32 to vector<64x256xi32>
    %30 = arith.andi %5, %29 : vector<64x256xi32>
    %c0_i32_2 = arith.constant 0 : i32
    %31 = vector.broadcast %c0_i32_2 : i32 to vector<64x256xi32>
    %32 = arith.cmpi ne, %30, %31 : vector<64x256xi32>
    %33 = vector.extract_strided_slice %4 {offsets = [0, 2], sizes = [64, 1], strides = [1, 1]} : vector<64x8xf32> to vector<64x1xf32>
    %34 = vector.extract_strided_slice %3 {offsets = [0, 2], sizes = [64, 1], strides = [1, 1]} : vector<64x8xf32> to vector<64x1xf32>
    %35 = vector.shape_cast %33 : vector<64x1xf32> to vector<64x1xf32>
    %36 = vector.broadcast %35 : vector<64x1xf32> to vector<64x256xf32>
    %37 = vector.shape_cast %34 : vector<64x1xf32> to vector<64x1xf32>
    %38 = vector.broadcast %37 : vector<64x1xf32> to vector<64x256xf32>
    %39 = arith.select %32, %36, %38 : vector<64x256xi1>, vector<64x256xf32>
    %40 = arith.mulf %28, %39 : vector<64x256xf32>
    %c16_i32 = arith.constant 16 : i32
    %41 = vector.broadcast %c16_i32 : i32 to vector<64x256xi32>
    %42 = arith.andi %5, %41 : vector<64x256xi32>
    %c0_i32_3 = arith.constant 0 : i32
    %43 = vector.broadcast %c0_i32_3 : i32 to vector<64x256xi32>
    %44 = arith.cmpi ne, %42, %43 : vector<64x256xi32>
    %45 = vector.extract_strided_slice %4 {offsets = [0, 3], sizes = [64, 1], strides = [1, 1]} : vector<64x8xf32> to vector<64x1xf32>
    %46 = vector.extract_strided_slice %3 {offsets = [0, 3], sizes = [64, 1], strides = [1, 1]} : vector<64x8xf32> to vector<64x1xf32>
    %47 = vector.shape_cast %45 : vector<64x1xf32> to vector<64x1xf32>
    %48 = vector.broadcast %47 : vector<64x1xf32> to vector<64x256xf32>
    %49 = vector.shape_cast %46 : vector<64x1xf32> to vector<64x1xf32>
    %50 = vector.broadcast %49 : vector<64x1xf32> to vector<64x256xf32>
    %51 = arith.select %44, %48, %50 : vector<64x256xi1>, vector<64x256xf32>
    %52 = arith.mulf %40, %51 : vector<64x256xf32>
    %c8_i32 = arith.constant 8 : i32
    %53 = vector.broadcast %c8_i32 : i32 to vector<64x256xi32>
    %54 = arith.andi %5, %53 : vector<64x256xi32>
    %c0_i32_4 = arith.constant 0 : i32
    %55 = vector.broadcast %c0_i32_4 : i32 to vector<64x256xi32>
    %56 = arith.cmpi ne, %54, %55 : vector<64x256xi32>
    %57 = vector.extract_strided_slice %4 {offsets = [0, 4], sizes = [64, 1], strides = [1, 1]} : vector<64x8xf32> to vector<64x1xf32>
    %58 = vector.extract_strided_slice %3 {offsets = [0, 4], sizes = [64, 1], strides = [1, 1]} : vector<64x8xf32> to vector<64x1xf32>
    %59 = vector.shape_cast %57 : vector<64x1xf32> to vector<64x1xf32>
    %60 = vector.broadcast %59 : vector<64x1xf32> to vector<64x256xf32>
    %61 = vector.shape_cast %58 : vector<64x1xf32> to vector<64x1xf32>
    %62 = vector.broadcast %61 : vector<64x1xf32> to vector<64x256xf32>
    %63 = arith.select %56, %60, %62 : vector<64x256xi1>, vector<64x256xf32>
    %64 = arith.mulf %52, %63 : vector<64x256xf32>
    %c4_i32 = arith.constant 4 : i32
    %65 = vector.broadcast %c4_i32 : i32 to vector<64x256xi32>
    %66 = arith.andi %5, %65 : vector<64x256xi32>
    %c0_i32_5 = arith.constant 0 : i32
    %67 = vector.broadcast %c0_i32_5 : i32 to vector<64x256xi32>
    %68 = arith.cmpi ne, %66, %67 : vector<64x256xi32>
    %69 = vector.extract_strided_slice %4 {offsets = [0, 5], sizes = [64, 1], strides = [1, 1]} : vector<64x8xf32> to vector<64x1xf32>
    %70 = vector.extract_strided_slice %3 {offsets = [0, 5], sizes = [64, 1], strides = [1, 1]} : vector<64x8xf32> to vector<64x1xf32>
    %71 = vector.shape_cast %69 : vector<64x1xf32> to vector<64x1xf32>
    %72 = vector.broadcast %71 : vector<64x1xf32> to vector<64x256xf32>
    %73 = vector.shape_cast %70 : vector<64x1xf32> to vector<64x1xf32>
    %74 = vector.broadcast %73 : vector<64x1xf32> to vector<64x256xf32>
    %75 = arith.select %68, %72, %74 : vector<64x256xi1>, vector<64x256xf32>
    %76 = arith.mulf %64, %75 : vector<64x256xf32>
    %c2_i32 = arith.constant 2 : i32
    %77 = vector.broadcast %c2_i32 : i32 to vector<64x256xi32>
    %78 = arith.andi %5, %77 : vector<64x256xi32>
    %c0_i32_6 = arith.constant 0 : i32
    %79 = vector.broadcast %c0_i32_6 : i32 to vector<64x256xi32>
    %80 = arith.cmpi ne, %78, %79 : vector<64x256xi32>
    %81 = vector.extract_strided_slice %4 {offsets = [0, 6], sizes = [64, 1], strides = [1, 1]} : vector<64x8xf32> to vector<64x1xf32>
    %82 = vector.extract_strided_slice %3 {offsets = [0, 6], sizes = [64, 1], strides = [1, 1]} : vector<64x8xf32> to vector<64x1xf32>
    %83 = vector.shape_cast %81 : vector<64x1xf32> to vector<64x1xf32>
    %84 = vector.broadcast %83 : vector<64x1xf32> to vector<64x256xf32>
    %85 = vector.shape_cast %82 : vector<64x1xf32> to vector<64x1xf32>
    %86 = vector.broadcast %85 : vector<64x1xf32> to vector<64x256xf32>
    %87 = arith.select %80, %84, %86 : vector<64x256xi1>, vector<64x256xf32>
    %88 = arith.mulf %76, %87 : vector<64x256xf32>
    %c1_i32 = arith.constant 1 : i32
    %89 = vector.broadcast %c1_i32 : i32 to vector<64x256xi32>
    %90 = arith.andi %5, %89 : vector<64x256xi32>
    %c0_i32_7 = arith.constant 0 : i32
    %91 = vector.broadcast %c0_i32_7 : i32 to vector<64x256xi32>
    %92 = arith.cmpi ne, %90, %91 : vector<64x256xi32>
    %93 = vector.extract_strided_slice %4 {offsets = [0, 7], sizes = [64, 1], strides = [1, 1]} : vector<64x8xf32> to vector<64x1xf32>
    %94 = vector.extract_strided_slice %3 {offsets = [0, 7], sizes = [64, 1], strides = [1, 1]} : vector<64x8xf32> to vector<64x1xf32>
    %95 = vector.shape_cast %93 : vector<64x1xf32> to vector<64x1xf32>
    %96 = vector.broadcast %95 : vector<64x1xf32> to vector<64x256xf32>
    %97 = vector.shape_cast %94 : vector<64x1xf32> to vector<64x1xf32>
    %98 = vector.broadcast %97 : vector<64x1xf32> to vector<64x256xf32>
    %99 = arith.select %92, %96, %98 : vector<64x256xi1>, vector<64x256xf32>
    %100 = arith.mulf %88, %99 : vector<64x256xf32>
    %c0_8 = arith.constant 0 : index
    %c0_9 = arith.constant 0 : index
    %101 = vector.load %arg2[%c0_8, %c0_9] : memref<256x512xf32, #tpu.memory_space<vmem>>, vector<256x512xf32>
    %cst_10 = arith.constant dense<0.000000e+00> : vector<64x512xf32>
    %102 = tpu.matmul %100, %101, %cst_10 {dimension_numbers = #tpu.dot_dimension_numbers<[1], [0], [0], [1], [0, 0, 1, 1], [], []>} : vector<64x256xf32>, vector<256x512xf32>, vector<64x512xf32> -> vector<64x512xf32>
    %103 = arith.mulf %102, %102 : vector<64x512xf32>
    %c0_11 = arith.constant 0 : index
    %c0_12 = arith.constant 0 : index
    %104 = vector.load %arg3[%c0_11, %c0_12] : memref<512x128xf32, #tpu.memory_space<vmem>>, vector<512x128xf32>
    %cst_13 = arith.constant dense<0.000000e+00> : vector<64x128xf32>
    %105 = tpu.matmul %103, %104, %cst_13 {dimension_numbers = #tpu.dot_dimension_numbers<[1], [0], [0], [1], [0, 0, 1, 1], [], []>} : vector<64x512xf32>, vector<512x128xf32>, vector<64x128xf32> -> vector<64x128xf32>
    %c0_14 = arith.constant 0 : index
    %c0_15 = arith.constant 0 : index
    %106 = vector.load %arg4[%c0_14, %c0_15] : memref<64x128xf32, #tpu.memory_space<vmem>>, vector<64x128xf32>
    tpu.vector_store %arg4[%c0_14, %c0_15], %105 {strides = array<i32>} : memref<64x128xf32, #tpu.memory_space<vmem>>, vector<64x128xf32>,
    return
  }
  func.func @transform_0(%arg0: i32) -> (i32, i32) {
    %c0_i32 = arith.constant 0 : i32
    %c0_i32_0 = arith.constant 0 : i32
    return %arg0, %c0_i32 : i32, i32
  }
  func.func @transform_1(%arg0: i32) -> (i32, i32) {
    %c0_i32 = arith.constant 0 : i32
    %c0_i32_0 = arith.constant 0 : i32
    %c0_i32_1 = arith.constant 0 : i32
    return %c0_i32, %c0_i32_0 : i32, i32
  }
  func.func @transform_2(%arg0: i32) -> (i32, i32) {
    %c0_i32 = arith.constant 0 : i32
    %c0_i32_0 = arith.constant 0 : i32
    %c0_i32_1 = arith.constant 0 : i32
    return %c0_i32, %c0_i32_0 : i32, i32
  }
  func.func @transform_3(%arg0: i32) -> (i32, i32) {
    %c0_i32 = arith.constant 0 : i32
    %c0_i32_0 = arith.constant 0 : i32
    return %arg0, %c0_i32 : i32, i32
  }
}

</mosaic_0001>

<bundles_post_ra>
// kernel: tpu_custom_call.1
= control target key start
LH: loop header
LB: loop body
LE: loop exit
PB: predicated region body
PF: predicated region fallthrough
CT: control target
= control target key end

     0   :  { %8 = vsyncpa [#allocation3], 0  ;;  %s5831_s0 = inlined_call_operand.vmem [shape: f32[128,8], index: 0, kind: input, shape index: {}]   ;;  %s5832_s1 = inlined_call_operand.hbm [shape: f32[256,512], index: 1, kind: input, shape index: {}]   ;;  %s5833_s2 = inlined_call_operand.hbm [shape: f32[512,128], index: 2, kind: input, shape index: {}]   ;;  %s5834_s3 = inlined_call_operand.hbm [shape: f32[128,128], index: 3, kind: output, shape index: {}]  }
   0x1   :  { %9 = vsyncpa [#allocation6], 0 }
   0x2   :  { %10 = vsyncpa [#allocation4], 0 }
   0x3   :  { %12 = vsyncpa [#allocation4 + $0x1], 0  ;;  %s4023_s12 = smov 0   ;;  %s4025_s13 = smov 0  }
   0x4   :  { %s4027_s14 = smov 0   ;;  %s4029_s15 = smov 0  }
   0x5 LB: > { %s4044_s16 = sadd.s32 4294967295, %s3978_s15   ;;  %s3443_s17 = sadd.s32 4294967294, %s3978_s15   ;;  %s3978_s15 = sphi %s4029_s15, %s6010_s15   ;;  %s3974_s14 = sphi %s4027_s14, %s6009_s14   ;;  %s3970_s13 = sphi %s4025_s13, %s6008_s13   ;;  %s3966_s12 = sphi %s4023_s12, %s6007_s12  }
   0x6   : > { %s4048_s18 = sadd.s32 1, %s3978_s15   ;;  %s93_s19 = sadd.s32 1, %s3974_s14 }
   0x7   : > { %s90_s20 = ssub.s32 %s3978_s15, %s4048_s18  ;;  %p103_p0 = scmp.ne.s32.totalorder %s3974_s14, %s3970_s13 }
   0x8   : > { %p91_p1 = scmp.eq.s32.totalorder %s90_s20, 0  ;;  %p104_p2 = scmp.eq.s32.totalorder %s4044_s16, 1 }
   0x9   : > { %p109_p3 = scmp.ne.s32.totalorder %s3970_s13, %s3966_s12  ;;  %p110_p4 = scmp.eq.s32.totalorder %s3443_s17, 1 }
   0xa   : > { %s4059_s21 = scalar_select %p91_p1, %s3974_s14, %s93_s19  }
   0xb   : > { %p4061_p5 = por %p104_p2, %p103_p0  ;;  %p4065_p6 = por %p110_p4, %p109_p3 }
   0xc   : > { %p3444_p7 = scmp.ge.s32.totalorder %s3978_s15, 1  ;;  %p117_p8 = scmp.lt.s32.totalorder %s3978_s15, 3 }
   0xd   : > { %s5885_s23 = scalar_select %p4065_p6, 1, 0 }
   0xe   : > { %p5835_p9 = scmp.eq.s32.totalorder %s4044_s16, 0  ;;  %p4072_p10 = pnand %p3444_p7, %p117_p8 }
   0xf   : > { %s3980_s25 = smov [#allocation2]   ;;  %s3981_s28 = smov [#allocation5]  }
  0x10   : > { %s129_s26 = sshll.u32 %s3980_s25, 4  ;;  %p3678_p11 = pneg %p4072_p10  ;;  %s130_s26 = int_to_ptr.vmem [resolvable:$true] %s129_s26 }
  0x11   : > { %s142_s29 = sshll.u32 %s3981_s28, 4  ;;  %s3869_s30 = scalar_lea.vmem %s130_s26, 16384  ;;  %s143_s29 = int_to_ptr.vmem [resolvable:$true] %s142_s29 }
  0x12   : > { %p4080_p12 = pnand %p5835_p9, %p3678_p11  ;;  %p3870_p0 = scmp.ne.s32.totalorder %s130_s26, %s3869_s30 }
  0x13   : > { %p3877_p3 = scmp.lt.s32.totalorder %s130_s26, %s130_s26  ;;  %p3878_p4 = scmp.lt.s32.totalorder %s3869_s30, %s3869_s30 }
  0x14   : > { %p3860_p13 = pneg %p4080_p12 }
  0x15   : > { %p3879_p7 = por %p3878_p4, %p3877_p3 }
  0x16   : > { %p3872_p1 = pnand %p3870_p0, %p3860_p13 }
  0x18   : > { %p3873_p2 = pneg %p3872_p1 }
  0x1a   : > { %p3880_p8 = pnand %p3879_p7, %p3873_p2 }
  0x1c   : > { %3883 = shalt.err (!%p3880_p8)
}
  0x1d   : > { %s3982_s4 = smov 512   ;;  %s3983_s5 = smov 32  }
  0x1e   : > { %3681 = dma.hbm_to_vmem [thread:$0]  (!%p4080_p12), %s5832_s1, 16384, %s130_s26, [#allocation3], %s3982_s4, %s3982_s4, %s3983_s5  }
  0x1f   : > { %s3895_s8 = scalar_lea.vmem %s143_s29, 8192  ;;  %p3903_p9 = scmp.lt.s32.totalorder %s143_s29, %s143_s29 }
  0x20   : > { %p3896_p11 = scmp.ne.s32.totalorder %s143_s29, %s3895_s8  ;;  %p3904_p6 = scmp.lt.s32.totalorder %s3895_s8, %s3895_s8 }
  0x22   : > { %p3898_p0 = pnand %p3896_p11, %p3860_p13  ;;  %p3905_p3 = por %p3904_p6, %p3903_p9 }
  0x24   : > { %p3899_p1 = pneg %p3898_p0 }
  0x26   : > { %p3906_p2 = pnand %p3905_p3, %p3899_p1 }
  0x28   : > { %3909 = shalt.err (!%p3906_p2)
}
  0x29   : > { %s3984_s9 = smov 128   ;;  %s3985_s10 = smov 8  }
  0x2a   : > { %3684 = dma.hbm_to_vmem [thread:$0]  (!%p4080_p12), %s5833_s2, 8192, %s143_s29, [#allocation6], %s3984_s9, %s3984_s9, %s3985_s10  }
  0x2b   : > { %167 = sbr.rel (%p4072_p10) target bundleno = 1152 (0x480), region = 32 }
  0x30   : > { %p5888_p4 = scmp.eq.s32.totalorder %s4044_s16, 0 }
  0x32   : > { %3953 = dma.done.wait (%p5888_p4), [#allocation3], 16384   ;;  %p5889_p13 = pmov %p5888_p4 }
  0x33   : > { %p5890_p6 = pmov %p5888_p4 }
  0x34   : > { %3955 = vsyncadd (%p5889_p13), [#allocation3], 4294950912 }
  0x35   : > { %3957 = dma.done.wait (%p5890_p6), [#allocation6], 8192   ;;  %p5891_p9 = pmov %p5888_p4 }
  0x36   : > { %s3452_s19 = sshll.u32 %s4044_s16, 3  ;;  %v5842_v0 = vmov 1   ;;  %v5836_v1 = vmov 0   ;;  %v3988_v35 = vmov 683565275   ;;  %s192_s27 = sand.u32 1, %s3970_s13  }
  0x37   : > { %3959 = vsyncadd (%p5891_p9), [#allocation6], 4294959104  ;;  %3749 = vset.pattern.permute.xlu1 %v5842_v0  ;;  %3748 = vset.pattern.permute.xlu0 %v5836_v1  ;;  %p196_p10 = scmp.lt.s32.totalorder %s3452_s19, 15  ;;  %v3989_v37 = vmov 2475754826   ;;  %s3451_s28 = sshll.u32 %s192_s27, 6 }
  0x38   : > { %v3990_v39 = vmov 2131351028   ;;  %v3991_v41 = vmov 2102212464   ;;  %v3992_v43 = vmov 920167782  }
  0x39   : > { %s6012_s19 = smov (!%p196_p10, %s3452_s19), 15  ;;  %v3993_v51 = vmov 1326507024   ;;  %s5770_s29 = scalar_lea.vmem [#allocation7], %s3451_s28 }
  0x3a   : > { %s3453_s20 = sshll.u32 %s6012_s19, 3  ;;  %s3359_s30 = sshll.u32 %s5770_s29, 4  ;;  %s5781_s30 = int_to_ptr.vmem [resolvable:$true] %s3359_s30 }
  0x3b   : > { %s4118_s26 = scalar_lea.vmem %s5831_s0, %s3453_s20  ;;  %s3523_s4 = sshll.u32 %s4044_s16, 10 }
  0x3c   : > { %v202_v2 = vld [vmem:[%s4118_s26] sm:$0xff]  ;;  %v203_v3 = vld [vmem:[%s4118_s26 + $0x8] sm:$0xff]  ;;  %v205_v4 = vld [vmem:[%s4118_s26 + $0x18] sm:$0xff]  ;;  %s5786_s7 = scalar_lea.hbm %s5834_s3, %s3523_s4  ;;  %s5791_s8 = scalar_lea.sflag [#allocation4], %s192_s27 }
  0x3d   : > { %v4123_v5 = vmul.f32 0.5, %v202_v2  ;;  %v4125_v6 = vmul.f32 0.5, %v203_v3  ;;  %v4127_v7 = vmul.f32 0.5, %v205_v4  ;;  %s3910_s9 = scalar_lea.vmem %s5781_s30, 1024  ;;  %s4000_s16 = smov [#allocation7]  }
  0x3e   : > { %p3911_p12 = scmp.ne.s32.totalorder %s5781_s30, %s3910_s9  ;;  %s3914_s10 = sshll.u32 %s4000_s16, 4  ;;  %s3915_s10 = int_to_ptr.vmem [resolvable:$false] %s3914_s10 }
  0x3f   : > { %v218_v8 = vand.u32 2147483647, %v4123_v5  ;;  %v221_v9 = vand.u32 2139095040, %v4123_v5  ;;  %v321_v10 = vand.u32 2147483647, %v4125_v6  ;;  %v324_v11 = vand.u32 2139095040, %v4125_v6  ;;  %p3917_p11 = scmp.lt.s32.totalorder %s5781_s30, %s3915_s10 }
  0x40   : > { %v530_v16 = vand.u32 2139095040, %v4127_v7  ;;  %v527_v29 = vand.u32 2147483647, %v4127_v7  ;;  %p3912_p7 = pnand %p3911_p12, %p4061_p5  ;;  %s3916_s11 = scalar_lea.vmem %s3915_s10, 2048 }
  0x41   : > { %v222_v12 = vshrl.u32 %v221_v9, 23  ;;  %v225_v13 = vand.u32 8388607, %v218_v8  ;;  %v325_v14 = vshrl.u32 %v324_v11, 23  ;;  %v328_v15 = vand.u32 8388607, %v321_v10  ;;  %p3918_p0 = scmp.lt.s32.totalorder %s3916_s11, %s3910_s9 }
  0x42   : > { %v531_v19 = vshrl.u32 %v530_v16, 23  ;;  %p3913_p8 = pneg %p3912_p7 }
  0x43   : > { %v3454_v17 = vadd.s32 4294967169, %v222_v12  ;;  %v3458_v18 = vadd.s32 4294967169, %v325_v14  ;;  %v226_v21 = vor.u32 8388608, %v225_v13  ;;  %v329_v22 = vor.u32 8388608, %v328_v15  ;;  %p3919_p1 = por %p3918_p0, %p3917_p11 }
  0x44   : > { %v3466_v24 = vadd.s32 4294967169, %v531_v19 }
  0x45   : > { %v228_v20 = vadd.s32 1, %v3454_v17  ;;  %v331_v23 = vadd.s32 1, %v3458_v18  ;;  %v4139_v30 = vshll.u32 %v226_v21, 8  ;;  %v4141_v32 = vshll.u32 %v329_v22, 8  ;;  %p3920_p3 = pnand %p3919_p1, %p3913_p8 }
  0x46   : > { %v4143_v33 = vadd.s32 1, %v3466_v24 }
  0x47   : > { %vm229_vm0 = vcmp.gt.s32.totalorder %v228_v20, 0  ;;  %vm332_vm1 = vcmp.gt.s32.totalorder %v331_v23, 0 }
  0x48   : > { %v230_v25 = vsel %vm229_vm0, %v228_v20, 0  ;;  %v333_v28 = vsel %vm332_vm1, %v331_v23, 0  ;;  %vm538_vm6 = vcmp.gt.s32.totalorder %v4143_v33, 0  ;;  %vm220_vm0 = vcmp.lt.s32.totalorder %v4123_v5, 0 }
  0x49   : > { %v231_v26 = vshrl.u32 %v230_v25, 5  ;;  %v232_v27 = vand.u32 31, %v230_v25  ;;  %v335_v31 = vand.u32 31, %v333_v28  ;;  %v4150_v45 = vshrl.u32 %v333_v28, 5 }
  0x4b   : > { %v233_v34 = vsub.s32 32, %v232_v27  ;;  %v235_v36 = vshll.u32 %v3988_v35, %v232_v27  ;;  %v238_v38 = vshll.u32 %v3989_v37, %v232_v27  ;;  %v241_v40 = vshll.u32 %v3990_v39, %v232_v27 }
  0x4c   : > { %v244_v42 = vshll.u32 %v3991_v41, %v232_v27  ;;  %v247_v44 = vshll.u32 %v3992_v43, %v232_v27  ;;  %vm250_vm2 = vcmp.lt.s32.totalorder %v231_v26, 1  ;;  %vm251_vm3 = vcmp.lt.s32.totalorder %v231_v26, 2 }
  0x4d   : > { %v234_v46 = vshrl.u32 %v3988_v35, %v233_v34  ;;  %v236_v47 = vshrl.u32 %v3989_v37, %v233_v34  ;;  %v239_v48 = vshrl.u32 %v3990_v39, %v233_v34  ;;  %v242_v49 = vshrl.u32 %v3991_v41, %v233_v34 }
  0x4e   : > { %v245_v50 = vshrl.u32 %v3992_v43, %v233_v34  ;;  %v248_v52 = vshrl.u32 %v3993_v51, %v233_v34  ;;  %vm253_vm4 = vcmp.lt.s32.totalorder %v231_v26, 4  ;;  %v336_v56 = vsub.s32 32, %v335_v31 }
  0x4f   : > { %v237_v53 = vor.u32 %v236_v47, %v235_v36  ;;  %v240_v54 = vor.u32 %v239_v48, %v238_v38  ;;  %v243_v55 = vor.u32 %v242_v49, %v241_v40  ;;  %vm252_vm5 = vcmp.lt.s32.totalorder %v231_v26, 3 }
  0x50   : > { %v246_v57 = vor.u32 %v245_v50, %v244_v42  ;;  %v249_v58 = vor.u32 %v248_v52, %v247_v44  ;;  %v338_v59 = vshll.u32 %v3988_v35, %v335_v31  ;;  %v341_v9 = vshll.u32 %v3989_v37, %v335_v31 }
  0x51   : > { %v254_v60 = vsel %vm250_vm2, %v234_v46, %v237_v53  ;;  %v255_v61 = vsel %vm253_vm4, %v243_v55, 2102212464  ;;  %v258_v62 = vsel %vm250_vm2, %v237_v53, %v240_v54  ;;  %v262_v63 = vsel %vm250_vm2, %v240_v54, %v243_v55 }
  0x52   : > { %v256_v2 = vsel %vm252_vm5, %v240_v54, %v255_v61  ;;  %v259_v3 = vsel %vm253_vm4, %v246_v57, 920167782  ;;  %v263_v4 = vsel %vm253_vm4, %v249_v58, 1326507024  ;;  %v337_v13 = vshrl.u32 %v3988_v35, %v336_v56 }
  0x53   : > { %v260_v11 = vsel %vm252_vm5, %v243_v55, %v259_v3  ;;  %v264_v12 = vsel %vm252_vm5, %v246_v57, %v263_v4  ;;  %v339_v14 = vshrl.u32 %v3989_v37, %v336_v56  ;;  %v257_v15 = vsel %vm251_vm3, %v254_v60, %v256_v2  ;;  %v206_v2 = vld [vmem:[%s4118_s26 + $0x20] sm:$0xff] }
  0x54   : > { %v261_v16 = vsel %vm251_vm3, %v258_v62, %v260_v11  ;;  %v265_v17 = vsel %vm251_vm3, %v262_v63, %v264_v12  ;;  %v342_v18 = vshrl.u32 %v3990_v39, %v336_v56  ;;  %v344_v25 = vshll.u32 %v3990_v39, %v335_v31 }
  0x55   : > { %v4171_v19 = vmul.u32.u64.low %v4139_v30, %v265_v17  ;;  %v4172_v20 = vmul.u32.u64.high %v4139_v30, %v265_v17, %v4171_v19  ;;  %v4175_v21 = vmul.u32.u64.low %v4139_v30, %v261_v16  ;;  %v4176_v22 = vmul.u32.u64.high %v4139_v30, %v261_v16, %v4175_v21 }
  0x56   : > { %v340_v23 = vor.u32 %v339_v14, %v338_v59  ;;  %v343_v24 = vor.u32 %v342_v18, %v341_v9  ;;  %v345_v27 = vshrl.u32 %v3991_v41, %v336_v56  ;;  %v347_v26 = vshll.u32 %v3991_v41, %v335_v31 }
  0x57   : > { %v348_v28 = vshrl.u32 %v3992_v43, %v336_v56  ;;  %v350_v34 = vshll.u32 %v3992_v43, %v335_v31  ;;  %v351_v36 = vshrl.u32 %v3993_v51, %v336_v56  ;;  %v273_v38 = vmul.u32 %v4139_v30, %v257_v15 }
  0x58   : > { %v346_v40 = vor.u32 %v345_v27, %v344_v25  ;;  %vm353_vm7 = vcmp.lt.s32.totalorder %v4150_v45, 1  ;;  %vm354_vm8 = vcmp.lt.s32.totalorder %v4150_v45, 2  ;;  %vm275_vm9 = vc.u32 %v4172_v20, %v4175_v21 }
  0x59   : > { %v276_v42 = vadd.s32 1, %v4176_v22  ;;  %v349_v44 = vor.u32 %v348_v28, %v347_v26  ;;  %vm355_vm10 = vcmp.lt.s32.totalorder %v4150_v45, 3  ;;  %v352_v46 = vor.u32 %v351_v36, %v350_v34 }
  0x5a   : > { %vm356_vm11 = vcmp.lt.s32.totalorder %v4150_v45, 4  ;;  %v357_v31 = vsel %vm353_vm7, %v337_v13, %v340_v23  ;;  %v361_v47 = vsel %vm353_vm7, %v340_v23, %v343_v24  ;;  %v365_v50 = vsel %vm353_vm7, %v343_v24, %v346_v40 }
  0x5b   : > { %v277_v30 = vsel %vm275_vm9, %v276_v42, %v4176_v22  ;;  %v358_v48 = vsel %vm356_vm11, %v346_v40, 2102212464  ;;  %v362_v49 = vsel %vm356_vm11, %v349_v44, 920167782  ;;  %v366_v55 = vsel %vm356_vm11, %v352_v46, 1326507024 }
  0x5c   : > { %v278_v52 = vadd.s32 %v277_v30, %v273_v38  ;;  %v359_v53 = vsel %vm355_vm10, %v343_v24, %v358_v48  ;;  %v363_v54 = vsel %vm355_vm10, %v346_v40, %v362_v49  ;;  %v367_v58 = vsel %vm355_vm10, %v349_v44, %v366_v55 }
  0x5d   : > { %v360_v56 = vsel %vm354_vm8, %v357_v31, %v359_v53  ;;  %v364_v57 = vsel %vm354_vm8, %v361_v47, %v363_v54  ;;  %v539_v59 = vsel %vm538_vm6, %v4143_v33, 0  ;;  %v368_v61 = vsel %vm354_vm8, %v365_v50, %v367_v58 }
  0x5e   : > { %v279_v60 = vadd.s32 536870912, %v278_v52  ;;  %v4204_v62 = vmul.u32.u64.low %v4141_v32, %v364_v57  ;;  %v4205_v63 = vmul.u32.u64.high %v4141_v32, %v364_v57, %v4204_v62  ;;  %v541_v11 = vand.u32 31, %v539_v59 }
  0x5f   : > { %v4210_v3 = vmul.u32.u64.low %v4141_v32, %v368_v61  ;;  %v4211_v4 = vmul.u32.u64.high %v4141_v32, %v368_v61, %v4210_v3  ;;  %v376_v12 = vmul.u32 %v4141_v32, %v360_v56  ;;  %v534_v33 = vand.u32 8388607, %v527_v29 }
  0x60   : > { %v4213_v9 = vshrl.u32 %v279_v60, 30  ;;  %v4218_v45 = vmul.f32 0.5, %v206_v2  ;;  %v379_v14 = vadd.s32 1, %v4205_v63  ;;  %v542_v15 = vsub.s32 32, %v541_v11 }
  0x61   : > { %vm378_vm12 = vc.u32 %v4211_v4, %v4204_v62  ;;  %v535_v19 = vor.u32 8388608, %v534_v33  ;;  %v544_v23 = vshll.u32 %v3988_v35, %v541_v11  ;;  %v547_v27 = vshll.u32 %v3989_v37, %v541_v11 }
  0x62   : > { %v281_v13 = vshll.u32 %v4213_v9, 30  ;;  %v380_v17 = vsel %vm378_vm12, %v379_v14, %v4205_v63  ;;  %v633_v32 = vand.u32 2139095040, %v4218_v45  ;;  %v545_v24 = vshrl.u32 %v3989_v37, %v542_v15 }
  0x63   : > { %v381_v18 = vadd.s32 %v380_v17, %v376_v12  ;;  %v548_v26 = vshrl.u32 %v3990_v39, %v542_v15  ;;  %v540_v34 = vshrl.u32 %v539_v59, 5  ;;  %v550_v36 = vshll.u32 %v3990_v39, %v541_v11 }
  0x64   : > { %v4224_v16 = vsub.s32 %v278_v52, %v281_v13  ;;  %v551_v38 = vshrl.u32 %v3991_v41, %v542_v15  ;;  %v553_v42 = vshll.u32 %v3991_v41, %v541_v11  ;;  %v4237_v44 = vshll.u32 %v535_v19, 8 }
  0x65   : > { %v382_v25 = vadd.s32 536870912, %v381_v18  ;;  %v634_v46 = vshrl.u32 %v633_v32, 23  ;;  %v274_v31 = vadd.s32 %v4175_v21, %v4172_v20  ;;  %v543_v30 = vshrl.u32 %v3988_v35, %v542_v15 }
  0x66   : > { %v284_v22 = vsub.s32 0, %v4224_v16  ;;  %v546_v48 = vor.u32 %v545_v24, %v544_v23  ;;  %v549_v50 = vor.u32 %v548_v26, %v547_v27  ;;  %v554_v52 = vshrl.u32 %v3992_v43, %v542_v15 }
  0x67   : > { %v383_v40 = vshrl.u32 %v382_v25, 30  ;;  %v556_v53 = vshll.u32 %v3992_v43, %v541_v11  ;;  %v552_v55 = vor.u32 %v551_v38, %v550_v36  ;;  %v557_v56 = vshrl.u32 %v3993_v51, %v542_v15 }
  0x68   : > { %v3455_v28 = vmin.u32 %v284_v22, %v4224_v16  ;;  %vm559_vm13 = vcmp.lt.s32.totalorder %v540_v34, 1  ;;  %v555_v58 = vor.u32 %v554_v52, %v553_v42  ;;  %vm560_vm14 = vcmp.lt.s32.totalorder %v540_v34, 2 }
  0x69   : > { %v384_v49 = vshll.u32 %v383_v40, 30  ;;  %vm562_vm15 = vcmp.lt.s32.totalorder %v540_v34, 4  ;;  %vm323_vm2 = vcmp.lt.s32.totalorder %v4125_v6, 0  ;;  %v558_v20 = vor.u32 %v557_v56, %v556_v53 }
  0x6a   : > { %v286_v47 = vclz %v3455_v28  ;;  %vm561_vm3 = vcmp.lt.s32.totalorder %v540_v34, 3  ;;  %v564_v21 = vsel %vm562_vm15, %v552_v55, 2102212464  ;;  %v563_v61 = vsel %vm559_vm13, %v543_v30, %v546_v48 }
  0x6b   : > { %v4245_v57 = vsub.s32 %v381_v18, %v384_v49  ;;  %v567_v63 = vsel %vm559_vm13, %v546_v48, %v549_v50  ;;  %v568_v12 = vsel %vm562_vm15, %v555_v58, 920167782  ;;  %vm4257_vm4 = vcmp.le.f32.partialorder %v218_v8, 0.7853982 }
  0x6c   : > { %v3456_v54 = vadd.s32 4294967294, %v286_v47  ;;  %v565_v14 = vsel %vm561_vm3, %v549_v50, %v564_v21  ;;  %v569_v15 = vsel %vm561_vm3, %v552_v55, %v568_v12  ;;  %v571_v17 = vsel %vm559_vm13, %v549_v50, %v552_v55 }
  0x6d   : > { %v387_v60 = vsub.s32 0, %v4245_v57  ;;  %v572_v32 = vsel %vm562_vm15, %v558_v20, 1326507024  ;;  %v304_v22 = vsub.s32 4, %v4213_v9  ;;  %v407_v23 = vsub.s32 4, %v383_v40 }
  0x6e   : > { %vm3457_vm1 = vcmp.lt.s32.totalorder %v3456_v54, 0  ;;  %v3470_v24 = vadd.s32 4294967169, %v634_v46  ;;  %v566_v26 = vsel %vm560_vm14, %v563_v61, %v565_v14  ;;  %v573_v28 = vsel %vm561_vm3, %v555_v58, %v572_v32 }
  0x6f   : > { %v289_v59 = vsel %vm3457_vm1, 0, %v3456_v54  ;;  %v3459_v13 = vmin.u32 %v387_v60, %v4245_v57  ;;  %v574_v38 = vsel %vm560_vm14, %v571_v17, %v573_v28  ;;  %v305_v46 = vsel %vm220_vm0, %v304_v22, %v4213_v9 }
  0x70   : > { %v290_v2 = vsub.s32 32, %v289_v59  ;;  %v291_v3 = vshll.u32 %v4224_v16, %v289_v59  ;;  %v294_v11 = vsub.s32 4294967266, %v289_v59  ;;  %v570_v16 = vsel %vm560_vm14, %v567_v63, %v569_v15 }
  0x71   : > { %v389_v8 = vclz %v3459_v13  ;;  %v4277_v48 = vmul.u32.u64.low %v4237_v44, %v574_v38  ;;  %v4278_v49 = vmul.u32.u64.high %v4237_v44, %v574_v38, %v4277_v48  ;;  %v377_v50 = vadd.s32 %v4204_v62, %v4211_v4 }
  0x72   : > { %v292_v18 = vshrl.u32 %v274_v31, %v290_v2  ;;  %v295_v19 = vadd.s32 127, %v294_v11  ;;  %v4272_v42 = vmul.u32.u64.low %v4237_v44, %v570_v16  ;;  %v4273_v31 = vmul.u32.u64.high %v4237_v44, %v570_v16, %v4272_v42 }
  0x73   : > { %v3460_v36 = vadd.s32 4294967294, %v389_v8  ;;  %v408_v34 = vsel %vm323_vm2, %v407_v23, %v383_v40  ;;  %v582_v54 = vmul.u32 %v4237_v44, %v566_v26  ;;  %v640_v55 = vadd.s32 1, %v3470_v24  ;;  %v207_v8 = vld [vmem:[%s4118_s26 + $0x28] sm:$0xff] }
  0x74   : > { %v293_v25 = vor.u32 %v292_v18, %v291_v3  ;;  %v296_v27 = vshll.u32 %v295_v19, 23  ;;  %v585_v21 = vadd.s32 1, %v4273_v31  ;;  %v307_v9 = vsel %vm4257_vm4, 0, %v305_v46 }
  0x75   : > { %vm3461_vm5 = vcmp.lt.s32.totalorder %v3460_v36, 0  ;;  %vm584_vm6 = vc.u32 %v4278_v49, %v4272_v42  ;;  %v630_v62 = vand.u32 2147483647, %v4218_v45  ;;  %vm4297_vm7 = vcmp.le.f32.partialorder %v321_v10, 0.7853982 }
  0x76   : > { %v297_v47 = vor.u32 4788187, %v296_v27  ;;  %v300_v30 = vcvt.s32.f32 %v293_v25  ;;  %v392_v53 = vsel %vm3461_vm5, 0, %v3460_v36  ;;  %v410_v61 = vsel %vm4297_vm7, 0, %v408_v34 }
  0x77   : > { %v393_v56 = vsub.s32 32, %v392_v53  ;;  %v394_v58 = vshll.u32 %v4245_v57, %v392_v53  ;;  %v397_v20 = vsub.s32 4294967266, %v392_v53  ;;  %v586_v57 = vsel %vm584_vm6, %v585_v21, %v4273_v31 }
  0x78   : > { %v298_v52 = vand.u32 2147483647, %v297_v47  ;;  %v587_v63 = vadd.s32 %v586_v57, %v582_v54  ;;  %vm641_vm8 = vcmp.gt.s32.totalorder %v640_v55, 0  ;;  %v1135_v2 = vadd.s32 3, %v307_v9 }
  0x79   : > { %v395_v40 = vshrl.u32 %v377_v50, %v393_v56  ;;  %v398_v44 = vadd.s32 127, %v397_v20  ;;  %v642_v12 = vsel %vm641_vm8, %v640_v55, 0  ;;  %v637_v14 = vand.u32 8388607, %v630_v62 }
  0x7a   : > { %v301_v59 = vmul.f32 %v300_v30, %v298_v52  ;;  %v588_v13 = vadd.s32 536870912, %v587_v63  ;;  %v644_v15 = vand.u32 31, %v642_v12  ;;  %v1239_v16 = vadd.s32 3, %v410_v61 }
  0x7b   : > { %v396_v3 = vor.u32 %v395_v40, %v394_v58  ;;  %v399_v11 = vshll.u32 %v398_v44, 23  ;;  %v4314_v23 = vand.u32 3, %v1135_v2  ;;  %v4316_v25 = vand.u32 3, %v307_v9 }
  0x7c   : > { %v302_v60 = vxor.u32 2147483648, %v301_v59  ;;  %v4311_v32 = vshrl.u32 %v588_v13, 30  ;;  %v645_v22 = vsub.s32 32, %v644_v15  ;;  %v4319_v28 = vand.u32 3, %v1239_v16 }
  0x7d   : > { %v400_v18 = vor.u32 4788187, %v399_v11  ;;  %v403_v19 = vcvt.s32.f32 %v396_v3  ;;  %v638_v33 = vor.u32 8388608, %v637_v14  ;;  %v4321_v36 = vmul.f32 0.5, %v207_v8 }
  0x7e   : > { %v303_v10 = vsel %vm220_vm0, %v302_v60, %v301_v59  ;;  %v590_v27 = vshll.u32 %v4311_v32, 30  ;;  %v647_v31 = vshll.u32 %v3988_v35, %v644_v15  ;;  %v648_v47 = vshrl.u32 %v3989_v37, %v645_v22 }
  0x7f   : > { %v306_v17 = vsel %vm4257_vm4, %v4123_v5, %v303_v10  ;;  %v401_v24 = vand.u32 2147483647, %v400_v18  ;;  %v650_v30 = vshll.u32 %v3989_v37, %v644_v15  ;;  %vm1141_vm9 = vcmp.eq.s32.totalorder %v4314_v23, 2 }
  0x80   : > { %3826 = vcosq.f32 %v306_v17  ;;  %v4323_v38 = vsub.s32 %v587_v63, %v590_v27  ;;  %vm316_vm10 = vcmp.eq.s32.totalorder %v4316_v25, 2  ;;  %v651_v46 = vshrl.u32 %v3990_v39, %v645_v22 }
  0x81   : > { %3828 = vsinq.f32 %v306_v17  ;;  %v404_v26 = vmul.f32 %v403_v19, %v401_v24  ;;  %v656_v50 = vshll.u32 %v3991_v41, %v644_v15  ;;  %v657_v34 = vshrl.u32 %v3992_v43, %v645_v22 }
  0x82   : > { %vm1138_vm11 = vcmp.eq.s32.totalorder %v4314_v23, 0  ;;  %vm313_vm12 = vcmp.eq.s32.totalorder %v4316_v25, 0  ;;  %v593_v52 = vsub.s32 0, %v4323_v38  ;;  %v4336_v53 = vshrl.u32 %v642_v12, 5 }
  0x83   : > { %v405_v48 = vxor.u32 2147483648, %v404_v26  ;;  %v653_v54 = vshll.u32 %v3990_v39, %v644_v15  ;;  %v654_v55 = vshrl.u32 %v3991_v41, %v645_v22  ;;  %vm1137_vm13 = vcmp.lt.s32.totalorder %v4314_v23, 2 }
  0x84   : > { %vm312_vm14 = vcmp.lt.s32.totalorder %v4316_v25, 2  ;;  %v4344_v58 = vand.u32 3, %v410_v61  ;;  %v659_v20 = vshll.u32 %v3992_v43, %v644_v15  ;;  %v660_v21 = vshrl.u32 %v3993_v51, %v645_v22 }
  0x85   : > { %v406_v56 = vsel %vm323_vm2, %v405_v48, %v404_v26  ;;  %vm310_vm15 = vweird.f32 %v4123_v5  ;;  %v3467_v9 = vmin.u32 %v593_v52, %v4323_v38  ;;  %v646_v40 = vshrl.u32 %v3988_v35, %v645_v22 }
  0x86   : > { %v409_v59 = vsel %vm4297_vm7, %v4125_v6, %v406_v56  ;;  %v649_v44 = vor.u32 %v648_v47, %v647_v31  ;;  %v652_v57 = vor.u32 %v651_v46, %v650_v30  ;;  %v658_v60 = vor.u32 %v657_v34, %v656_v50 }
  0x87   : > { %3830 = vcosq.f32 %v409_v59  ;;  %v661_v61 = vor.u32 %v660_v21, %v659_v20  ;;  %v595_v63 = vclz %v3467_v9  ;;  %v655_v2 = vor.u32 %v654_v55, %v653_v54 }
  0x88   : > { %3832 = vsinq.f32 %v409_v59  ;;  %vm662_vm0 = vcmp.lt.s32.totalorder %v4336_v53, 1  ;;  %v583_v3 = vadd.s32 %v4272_v42, %v4278_v49  ;;  %v613_v4 = vsub.s32 4, %v4311_v32 }
  0x89   : > { %vm665_vm1 = vcmp.lt.s32.totalorder %v4336_v53, 4  ;;  %v4359_v11 = vshll.u32 %v638_v33, 8  ;;  %v3468_v12 = vadd.s32 4294967294, %v595_v63  ;;  %vm663_vm2 = vcmp.lt.s32.totalorder %v4336_v53, 2 }
  0x8a   : > { %vm664_vm3 = vcmp.lt.s32.totalorder %v4336_v53, 3  ;;  %v667_v10 = vsel %vm665_vm1, %v655_v2, 2102212464  ;;  %v666_v14 = vsel %vm662_vm0, %v646_v40, %v649_v44  ;;  %v670_v15 = vsel %vm662_vm0, %v649_v44, %v652_v57 }
  0x8b   : > { %v671_v42 = vsel %vm665_vm1, %v658_v60, 920167782  ;;  %v675_v49 = vsel %vm665_vm1, %v661_v61, 1326507024  ;;  %vm3469_vm4 = vcmp.lt.s32.totalorder %v3468_v12, 0  ;;  %v668_v19 = vsel %vm664_vm3, %v652_v57, %v667_v10 }
  0x8c   : > { %v674_v16 = vsel %vm662_vm0, %v652_v57, %v655_v2  ;;  %v598_v8 = vsel %vm3469_vm4, 0, %v3468_v12  ;;  %v672_v24 = vsel %vm664_vm3, %v655_v2, %v671_v42  ;;  %v676_v27 = vsel %vm664_vm3, %v658_v60, %v675_v49 }
  0x8d   : > { %v3827_v13 = vpop.eup %3826  ;;  %vm1241_vm5 = vcmp.lt.s32.totalorder %v4319_v28, 2  ;;  %vm529_vm6 = vcmp.lt.s32.totalorder %v4127_v7, 0  ;;  %v599_v31 = vsub.s32 32, %v598_v8  ;;  %v600_v47 = vshll.u32 %v4323_v38, %v598_v8 }
  0x8e   : > { %v3829_v17 = vpop.eup %3828  ;;  %v317_v18 = vxor.u32 2147483648, %v3827_v13  ;;  %vm413_vm7 = vweird.f32 %v4125_v6  ;;  %v603_v46 = vsub.s32 4294967266, %v598_v8  ;;  %v677_v50 = vsel %vm663_vm2, %v674_v16, %v676_v27 }
  0x8f   : > { %v314_v22 = vxor.u32 2147483648, %v3829_v17  ;;  %v601_v54 = vshrl.u32 %v583_v3, %v599_v31  ;;  %v673_v38 = vsel %vm663_vm2, %v670_v15, %v672_v24  ;;  %vm4395_vm8 = vcmp.le.f32.partialorder %v527_v29, 0.7853982 }
  0x90   : > { %v1143_v26 = vsel %vm1141_vm9, %v317_v18, %v3829_v17  ;;  %v318_v33 = vsel %vm316_vm10, %v317_v18, %v3829_v17  ;;  %v604_v20 = vadd.s32 127, %v603_v46  ;;  %v669_v23 = vsel %vm663_vm2, %v666_v14, %v668_v19 }
  0x91   : > { %v1140_v30 = vsel %vm1138_vm11, %v3827_v13, %v314_v22  ;;  %v315_v48 = vsel %vm313_vm12, %v3827_v13, %v314_v22  ;;  %v736_v25 = vand.u32 2139095040, %v4321_v36  ;;  %v602_v59 = vor.u32 %v601_v54, %v600_v47 }
  0x92   : > { %v1144_v34 = vsel %vm1137_vm13, %v1140_v30, %v1143_v26  ;;  %v319_v52 = vsel %vm312_vm14, %v315_v48, %v318_v33  ;;  %v4409_v29 = vmul.u32.u64.low %v4359_v11, %v677_v50  ;;  %v4410_v9 = vmul.u32.u64.high %v4359_v11, %v677_v50, %v4409_v29  ;;  %v204_v26 = vld [vmem:[%s4118_s26 + $0x10] sm:$0xff] }
  0x93   : > { %v4391_v55 = vsel %vm310_vm15, nan, %v1144_v34  ;;  %v4406_v21 = vsel %vm310_vm15, nan, %v319_v52  ;;  %v605_v40 = vshll.u32 %v604_v20, 23  ;;  %v737_v57 = vshrl.u32 %v736_v25, 23 }
  0x94   : > { %1982 = vperm.xlu1 %3749, %v4391_v55   ;;  %1883 = vperm.xlu0 %3748, %v4391_v55   ;;  %v4413_v44 = vmul.u32.u64.low %v4359_v11, %v673_v38  ;;  %v4414_v53 = vmul.u32.u64.high %v4359_v11, %v673_v38, %v4413_v44  ;;  %v3831_v60 = vpop.eup %3830  ;;  %vm1242_vm9 = vcmp.eq.s32.totalorder %v4319_v28, 0  ;;  %vm1245_vm10 = vcmp.eq.s32.totalorder %v4319_v28, 2 }
  0x95   : > { %vm416_vm11 = vcmp.eq.s32.totalorder %v4344_v58, 0  ;;  %vm419_vm12 = vcmp.eq.s32.totalorder %v4344_v58, 2  ;;  %v3833_v5 = vpop.eup %3832  ;;  %v420_v61 = vxor.u32 2147483648, %v3831_v60  ;;  %v606_v63 = vor.u32 4788187, %v605_v40 }
  0x96   : > { %v609_v2 = vcvt.s32.f32 %v602_v59  ;;  %v3474_v3 = vadd.s32 4294967169, %v737_v57  ;;  %v417_v12 = vxor.u32 2147483648, %v3833_v5  ;;  %vm415_vm13 = vcmp.lt.s32.totalorder %v4344_v58, 2 }
  0x97   : > { %v685_v10 = vmul.u32 %v4359_v11, %v669_v23  ;;  %vm687_vm14 = vc.u32 %v4410_v9, %v4413_v44  ;;  %v1247_v13 = vsel %vm1245_vm10, %v420_v61, %v3833_v5  ;;  %v607_v14 = vand.u32 2147483647, %v606_v63 }
  0x98   : > { %2014 = vperm.xlu1 %3749, %v4406_v21   ;;  %v614_v15 = vsel %vm529_vm6, %v613_v4, %v4311_v32  ;;  %v688_v42 = vadd.s32 1, %v4414_v53  ;;  %v1244_v49 = vsel %vm1242_vm9, %v3831_v60, %v417_v12  ;;  %v418_v11 = vsel %vm416_vm11, %v3831_v60, %v417_v12 }
  0x99   : > { %v421_v17 = vsel %vm419_vm12, %v420_v61, %v3833_v5  ;;  %v743_v18 = vadd.s32 1, %v3474_v3  ;;  %v1248_v19 = vsel %vm1241_vm5, %v1244_v49, %v1247_v13  ;;  %v610_v16 = vmul.f32 %v609_v2, %v607_v14 }
  0x9a   : > { %v689_v22 = vsel %vm687_vm14, %v688_v42, %v4414_v53  ;;  %v733_v32 = vand.u32 2147483647, %v4321_v36  ;;  %v4444_v4 = vsel %vm413_vm7, nan, %v1248_v19  ;;  %v5848_v8 = vmov 2  }
  0x9b   : > { %v616_v24 = vsel %vm4395_vm8, 0, %v614_v15  ;;  %v690_v27 = vadd.s32 %v689_v22, %v685_v10  ;;  %vm744_vm15 = vcmp.gt.s32.totalorder %v743_v18, 0  ;;  %1888 = vperm.xlu0 %3748, %v4444_v4   ;;  %v611_v28 = vxor.u32 2147483648, %v610_v16 }
  0x9c   : > { %3750 = vset.pattern.permute.xlu1 %v5848_v8  ;;  %v422_v33 = vsel %vm415_vm13, %v418_v11, %v421_v17  ;;  %v745_v31 = vsel %vm744_vm15, %v743_v18, 0  ;;  %v1447_v46 = vadd.s32 3, %v616_v24  ;;  %v740_v50 = vand.u32 8388607, %v733_v32 }
  0x9d   : > { %2082 = vperm.xlu1 %3750, %v4391_v55   ;;  %v691_v47 = vadd.s32 536870912, %v690_v27  ;;  %v747_v30 = vand.u32 31, %v745_v31  ;;  %v612_v48 = vsel %vm529_vm6, %v611_v28, %v610_v16  ;;  %v4458_v34 = vmul.f32 0.5, %v204_v26 }
  0x9e   : > { %v615_v52 = vsel %vm4395_vm8, %v4127_v7, %v612_v48  ;;  %v4465_v58 = vsel %vm413_vm7, nan, %v422_v33  ;;  %v4471_v20 = vshrl.u32 %v745_v31, 5  ;;  %v4483_v60 = vand.u32 3, %v1447_v46 }
  0x9f   : > { %v4467_v54 = vshrl.u32 %v691_v47, 30  ;;  %v748_v38 = vsub.s32 32, %v747_v30  ;;  %1923 = vperm.xlu0 %3748, %v4406_v21   ;;  %3834 = vcosq.f32 %v615_v52  ;;  %v750_v23 = vshll.u32 %v3988_v35, %v747_v30 }
  0xa0   : > { %v753_v25 = vshll.u32 %v3989_v37, %v747_v30  ;;  %3836 = vsinq.f32 %v615_v52  ;;  %v756_v56 = vshll.u32 %v3990_v39, %v747_v30  ;;  %v759_v59 = vshll.u32 %v3991_v41, %v747_v30 }
  0xa1   : > { %3751 = vset.pattern.permute.xlu1 %v5842_v0  ;;  %v693_v6 = vshll.u32 %v4467_v54, 30  ;;  %v751_v29 = vshrl.u32 %v3989_v37, %v748_v38  ;;  %v754_v40 = vshrl.u32 %v3990_v39, %v748_v38  ;;  %v757_v53 = vshrl.u32 %v3991_v41, %v748_v38 }
  0xa2   : > { %1986 = vperm.xlu1 %3751, %v4444_v4   ;;  %v760_v57 = vshrl.u32 %v3992_v43, %v748_v38  ;;  %v762_v61 = vshll.u32 %v3992_v43, %v747_v30  ;;  %v763_v63 = vshrl.u32 %v3993_v51, %v748_v38  ;;  %v4490_v2 = vand.u32 3, %v616_v24 }
  0xa3   : > { %v4485_v5 = vsub.s32 %v690_v27, %v693_v6  ;;  %3763 = vset.pattern.permute.xlu0 %v5842_v0  ;;  %v741_v3 = vor.u32 8388608, %v740_v50  ;;  %v752_v12 = vor.u32 %v751_v29, %v750_v23  ;;  %v755_v10 = vor.u32 %v754_v40, %v753_v25 }
  0xa4   : > { %v749_v14 = vshrl.u32 %v3988_v35, %v748_v38  ;;  %v758_v15 = vor.u32 %v757_v53, %v756_v56  ;;  %v761_v42 = vor.u32 %v760_v57, %v759_v59  ;;  %v764_v49 = vor.u32 %v763_v63, %v762_v61 }
  0xa5   : > { %v696_v13 = vsub.s32 0, %v4485_v5  ;;  %vm765_vm0 = vcmp.lt.s32.totalorder %v4471_v20, 1  ;;  %vm768_vm1 = vcmp.lt.s32.totalorder %v4471_v20, 4  ;;  %v427_v11 = vand.u32 2139095040, %v4458_v34 }
  0xa6   : > { %2018 = vperm.xlu1 %3751, %v4465_v58   ;;  %vm1449_vm2 = vcmp.lt.s32.totalorder %v4483_v60, 2  ;;  %vm1450_vm3 = vcmp.eq.s32.totalorder %v4483_v60, 0  ;;  %vm767_vm4 = vcmp.lt.s32.totalorder %v4471_v20, 3  ;;  %v770_v18 = vsel %vm768_vm1, %v758_v15, 2102212464 }
  0xa7   : > { %v3471_v17 = vmin.u32 %v696_v13, %v4485_v5  ;;  %vm619_vm5 = vweird.f32 %v4127_v7  ;;  %vm766_vm6 = vcmp.lt.s32.totalorder %v4471_v20, 2  ;;  %v773_v19 = vsel %vm765_vm0, %v752_v12, %v755_v10 }
  0xa8   : > { %v774_v16 = vsel %vm768_vm1, %v761_v42, 920167782  ;;  %v4510_v22 = vshll.u32 %v741_v3, 8  ;;  %vm1453_vm7 = vcmp.eq.s32.totalorder %v4483_v60, 2  ;;  %v5840_v24 = vmov 3   ;;  %v208_v60 = vld [vmem:[%s4118_s26 + $0x30] sm:$0xff] }
  0xa9   : > { %vm622_vm8 = vcmp.eq.s32.totalorder %v4490_v2, 0  ;;  %v698_v27 = vclz %v3471_v17  ;;  %v769_v26 = vsel %vm765_vm0, %v749_v14, %v752_v12  ;;  %v777_v28 = vsel %vm765_vm0, %v755_v10, %v758_v15 }
  0xaa   : > { %3752 = vset.pattern.permute.xlu1 %v5840_v24  ;;  %vm632_vm9 = vcmp.lt.s32.totalorder %v4218_v45, 0  ;;  %v771_v33 = vsel %vm767_vm4, %v755_v10, %v770_v18  ;;  %v775_v31 = vsel %vm767_vm4, %v758_v15, %v774_v16  ;;  %v778_v47 = vsel %vm768_vm1, %v764_v49, 1326507024 }
  0xab   : > { %2214 = vperm.xlu1 %3752, %v4406_v21   ;;  %v428_v30 = vshrl.u32 %v427_v11, 23  ;;  %v686_v48 = vadd.s32 %v4413_v44, %v4410_v9  ;;  %v3472_v46 = vadd.s32 4294967294, %v698_v27  ;;  %v776_v50 = vsel %vm766_vm6, %v773_v19, %v775_v31 }
  0xac   : > { %v779_v52 = vsel %vm767_vm4, %v761_v42, %v778_v47  ;;  %v4536_v23 = vmul.u32.u64.low %v4510_v22, %v776_v50  ;;  %v4537_v25 = vmul.u32.u64.high %v4510_v22, %v776_v50, %v4536_v23  ;;  %v3835_v56 = vpop.eup %3834  ;;  %v772_v9 = vsel %vm766_vm6, %v769_v26, %v771_v33 }
  0xad   : > { %v780_v38 = vsel %vm766_vm6, %v777_v28, %v779_v52  ;;  %v3462_v6 = vadd.s32 4294967169, %v428_v30  ;;  %vm3473_vm10 = vcmp.lt.s32.totalorder %v3472_v46, 0  ;;  %v3837_v29 = vpop.eup %3836  ;;  %v626_v40 = vxor.u32 2147483648, %v3835_v56 }
  0xae   : > { %v4543_v44 = vmul.u32.u64.low %v4510_v22, %v780_v38  ;;  %v4544_v59 = vmul.u32.u64.high %v4510_v22, %v780_v38, %v4543_v44  ;;  %v701_v53 = vsel %vm3473_vm10, 0, %v3472_v46  ;;  %v716_v57 = vsub.s32 4, %v4467_v54 }
  0xaf   : > { %3753 = vset.pattern.permute.xlu1 %v5836_v1  ;;  %v434_v61 = vadd.s32 1, %v3462_v6  ;;  %v623_v63 = vxor.u32 2147483648, %v3837_v29  ;;  %v702_v3 = vsub.s32 32, %v701_v53  ;;  %v703_v12 = vshll.u32 %v4485_v5, %v701_v53 }
  0xb0   : > { %v706_v10 = vsub.s32 4294967266, %v701_v53  ;;  %1928 = vperm.xlu1 %3753, %v4465_v58   ;;  %v1455_v20 = vsel %vm1453_vm7, %v626_v40, %v3837_v29  ;;  %vm625_vm11 = vcmp.eq.s32.totalorder %v4490_v2, 2  ;;  %v788_v13 = vmul.u32 %v4510_v22, %v772_v9 }
  0xb1   : > { %v791_v14 = vadd.s32 1, %v4537_v25  ;;  %v1452_v15 = vsel %vm1450_vm3, %v3835_v56, %v623_v63  ;;  %v704_v42 = vshrl.u32 %v686_v48, %v702_v3  ;;  %vm435_vm12 = vcmp.gt.s32.totalorder %v434_v61, 0 }
  0xb2   : > { %v707_v49 = vadd.s32 127, %v706_v10  ;;  %v1456_v5 = vsel %vm1449_vm2, %v1452_v15, %v1455_v20  ;;  %vm621_vm13 = vcmp.lt.s32.totalorder %v4490_v2, 2  ;;  %vm790_vm14 = vc.u32 %v4544_v59, %v4536_v23 }
  0xb3   : > { %v424_v11 = vand.u32 2147483647, %v4458_v34  ;;  %v4565_v17 = vsel %vm619_vm5, nan, %v1456_v5  ;;  %v705_v18 = vor.u32 %v704_v42, %v703_v12  ;;  %v717_v16 = vsel %vm632_vm9, %v716_v57, %v4467_v54 }
  0xb4   : > { %v708_v19 = vshll.u32 %v707_v49, 23  ;;  %3754 = vset.pattern.permute.xlu1 %v5848_v8  ;;  %1994 = vperm.xlu0 %3763, %v4565_v17   ;;  %v624_v22 = vsel %vm622_vm8, %v3835_v56, %v623_v63  ;;  %v627_v27 = vsel %vm625_vm11, %v626_v40, %v3837_v29  ;;  %v792_v26 = vsel %vm790_vm14, %v791_v14, %v4537_v25 }
  0xb5   : > { %2118 = vperm.xlu1 %3754, %v4465_v58   ;;  %v436_v28 = vsel %vm435_vm12, %v434_v61, 0  ;;  %v712_v31 = vcvt.s32.f32 %v705_v18  ;;  %v793_v54 = vadd.s32 %v792_v26, %v788_v13  ;;  %vm4582_vm15 = vcmp.le.f32.partialorder %v630_v62, 0.7853982 }
  0xb6   : > { %v709_v33 = vor.u32 4788187, %v708_v19  ;;  %v431_v30 = vand.u32 8388607, %v424_v11  ;;  %v438_v48 = vand.u32 31, %v436_v28  ;;  %v4588_v46 = vmul.f32 0.5, %v208_v60 }
  0xb7   : > { %v628_v50 = vsel %vm621_vm13, %v624_v22, %v627_v27  ;;  %v4594_v38 = vsel %vm4582_vm15, 0, %v717_v16  ;;  %v794_v25 = vadd.s32 536870912, %v793_v54  ;;  %v5844_v6 = vmov 7  }
  0xb8   : > { %v710_v52 = vand.u32 2147483647, %v709_v33  ;;  %3767 = vset.pattern.permute.xlu0 %v5844_v6  ;;  %v437_v62 = vshrl.u32 %v436_v28, 5  ;;  %v439_v56 = vsub.s32 32, %v438_v48  ;;  %v441_v9 = vshll.u32 %v3988_v35, %v438_v48 }
  0xb9   : > { %v444_v44 = vshll.u32 %v3989_v37, %v438_v48  ;;  %v5850_v29 = vmov 4   ;;  %2582 = vperm.xlu0 %3767, %v4391_v55   ;;  %v4601_v40 = vshrl.u32 %v794_v25, 30  ;;  %v447_v53 = vshll.u32 %v3990_v39, %v438_v48 }
  0xba   : > { %3755 = vset.pattern.permute.xlu1 %v5850_v29  ;;  %v713_v2 = vmul.f32 %v712_v31, %v710_v52  ;;  %v450_v57 = vshll.u32 %v3991_v41, %v438_v48  ;;  %v442_v61 = vshrl.u32 %v3989_v37, %v439_v56  ;;  %v445_v63 = vshrl.u32 %v3990_v39, %v439_v56 }
  0xbb   : > { %2282 = vperm.xlu1 %3755, %v4391_v55   ;;  %v448_v3 = vshrl.u32 %v3991_v41, %v439_v56  ;;  %v453_v12 = vshll.u32 %v3992_v43, %v438_v48  ;;  %v4612_v10 = vsel %vm619_vm5, nan, %v628_v50  ;;  %v796_v13 = vshll.u32 %v4601_v40, 30 }
  0xbc   : > { %v714_v20 = vxor.u32 2147483648, %v713_v2  ;;  %v451_v14 = vshrl.u32 %v3992_v43, %v439_v56  ;;  %v432_v15 = vor.u32 8388608, %v431_v30  ;;  %v440_v42 = vshrl.u32 %v3988_v35, %v439_v56 }
  0xbd   : > { %v443_v49 = vor.u32 %v442_v61, %v441_v9  ;;  %v454_v5 = vshrl.u32 %v3993_v51, %v439_v56  ;;  %3770 = vset.pattern.permute.xlu0 %v5836_v1  ;;  %v4621_v19 = vsub.s32 %v793_v54, %v796_v13  ;;  %v446_v7 = vor.u32 %v445_v63, %v444_v44 }
  0xbe   : > { %v715_v18 = vsel %vm632_vm9, %v714_v20, %v713_v2  ;;  %v449_v16 = vor.u32 %v448_v3, %v447_v53  ;;  %1938 = vperm.xlu0 %3770, %v4612_v10   ;;  %v452_v22 = vor.u32 %v451_v14, %v450_v57  ;;  %vm456_vm0 = vcmp.lt.s32.totalorder %v437_v62, 1 }
  0xbf   : > { %v718_v60 = vsel %vm4582_vm15, %v4218_v45, %v715_v18  ;;  %v455_v27 = vor.u32 %v454_v5, %v453_v12  ;;  %3756 = vset.pattern.permute.xlu1 %v5842_v0  ;;  %v1551_v26 = vadd.s32 3, %v4594_v38  ;;  %v799_v28 = vsub.s32 0, %v4621_v19 }
  0xc0   : > { %3838 = vcosq.f32 %v718_v60  ;;  %vm459_vm1 = vcmp.lt.s32.totalorder %v437_v62, 4  ;;  %vm458_vm2 = vcmp.lt.s32.totalorder %v437_v62, 3  ;;  %v839_v31 = vand.u32 2139095040, %v4588_v46 }
  0xc1   : > { %3840 = vsinq.f32 %v718_v60  ;;  %v461_v33 = vsel %vm459_vm1, %v449_v16, 2102212464  ;;  %v3475_v54 = vmin.u32 %v799_v28, %v4621_v19  ;;  %vm457_vm3 = vcmp.lt.s32.totalorder %v437_v62, 2 }
  0xc2   : > { %v464_v47 = vsel %vm456_vm0, %v443_v49, %v446_v7  ;;  %v472_v30 = vshll.u32 %v432_v15, 8  ;;  %v460_v48 = vsel %vm456_vm0, %v440_v42, %v443_v49  ;;  %v465_v50 = vsel %vm459_vm1, %v452_v22, 920167782 }
  0xc3   : > { %v468_v52 = vsel %vm456_vm0, %v446_v7, %v449_v16  ;;  %v469_v25 = vsel %vm459_vm1, %v455_v27, 1326507024  ;;  %v801_v56 = vclz %v3475_v54  ;;  %v462_v9 = vsel %vm458_vm2, %v446_v7, %v461_v33 }
  0xc4   : > { %v466_v44 = vsel %vm458_vm2, %v449_v16, %v465_v50  ;;  %v470_v2 = vsel %vm458_vm2, %v452_v22, %v469_v25  ;;  %v840_v61 = vshrl.u32 %v839_v31, 23  ;;  %v463_v20 = vsel %vm457_vm3, %v460_v48, %v462_v9 }
  0xc5   : > { %v467_v53 = vsel %vm457_vm3, %v464_v47, %v466_v44  ;;  %v471_v57 = vsel %vm457_vm3, %v468_v52, %v470_v2  ;;  %v3476_v63 = vadd.s32 4294967294, %v801_v56  ;;  %vm722_vm4 = vweird.f32 %v4218_v45 }
  0xc6   : > { %v4637_v3 = vmul.u32.u64.low %v472_v30, %v471_v57  ;;  %v4638_v12 = vmul.u32.u64.high %v472_v30, %v471_v57, %v4637_v3  ;;  %v4641_v13 = vmul.u32.u64.low %v472_v30, %v467_v53  ;;  %v4642_v14 = vmul.u32.u64.high %v472_v30, %v467_v53, %v4641_v13 }
  0xc7   : > { %v3478_v15 = vadd.s32 4294967169, %v840_v61  ;;  %v1552_v42 = vand.u32 3, %v1551_v26  ;;  %v789_v49 = vadd.s32 %v4536_v23, %v4544_v59  ;;  %vm3477_vm5 = vcmp.lt.s32.totalorder %v3476_v63, 0 }
  0xc8   : > { %vm735_vm6 = vcmp.lt.s32.totalorder %v4321_v36, 0  ;;  %v804_v5 = vsel %vm3477_vm5, 0, %v3476_v63  ;;  %v836_v18 = vand.u32 2147483647, %v4588_v46  ;;  %v479_v22 = vmul.u32 %v472_v30, %v463_v20 }
  0xc9   : > { %v846_v7 = vadd.s32 1, %v3478_v15  ;;  %v805_v62 = vsub.s32 32, %v804_v5  ;;  %v806_v16 = vshll.u32 %v4621_v19, %v804_v5  ;;  %v809_v60 = vsub.s32 4294967266, %v804_v5 }
  0xca   : > { %v819_v27 = vsub.s32 4, %v4601_v40  ;;  %vm481_vm7 = vc.u32 %v4638_v12, %v4641_v13  ;;  %v482_v26 = vadd.s32 1, %v4642_v14  ;;  %vm1553_vm9 = vcmp.lt.s32.totalorder %v1552_v42, 2 }
  0xcb   : > { %vm847_vm8 = vcmp.gt.s32.totalorder %v846_v7, 0  ;;  %v807_v23 = vshrl.u32 %v789_v49, %v805_v62  ;;  %v810_v59 = vadd.s32 127, %v809_v60  ;;  %vm1554_vm10 = vcmp.eq.s32.totalorder %v1552_v42, 0 }
  0xcc   : > { %v848_v28 = vsel %vm847_vm8, %v846_v7, 0  ;;  %vm1557_vm11 = vcmp.eq.s32.totalorder %v1552_v42, 2  ;;  %v483_v19 = vsel %vm481_vm7, %v482_v26, %v4642_v14  ;;  %vm4663_vm12 = vcmp.le.f32.partialorder %v733_v32, 0.7853982 }
  0xcd   : > { %v4655_v33 = vpop.eup %3838  ;;  %v850_v31 = vand.u32 31, %v848_v28  ;;  %v808_v48 = vor.u32 %v807_v23, %v806_v16  ;;  %v811_v50 = vshll.u32 %v810_v59, 23  ;;  %v484_v52 = vadd.s32 %v483_v19, %v479_v22 }
  0xce   : > { %v4658_v54 = vpop.eup %3840  ;;  %v729_v47 = vxor.u32 2147483648, %v4655_v33  ;;  %v820_v56 = vsel %vm735_vm6, %v819_v27, %v4601_v40  ;;  %v843_v9 = vand.u32 8388607, %v836_v18  ;;  %v849_v62 = vshrl.u32 %v848_v28, 5 }
  0xcf   : > { %v726_v25 = vxor.u32 2147483648, %v4658_v54  ;;  %v851_v44 = vsub.s32 32, %v850_v31  ;;  %v812_v2 = vor.u32 4788187, %v811_v50  ;;  %v815_v53 = vcvt.s32.f32 %v808_v48 }
  0xd0   : > { %v1559_v32 = vsel %vm1557_vm11, %v729_v47, %v4658_v54  ;;  %v485_v57 = vadd.s32 536870912, %v484_v52  ;;  %v853_v63 = vshll.u32 %v3988_v35, %v850_v31  ;;  %v856_v3 = vshll.u32 %v3989_v37, %v850_v31 }
  0xd1   : > { %v1556_v61 = vsel %vm1554_vm10, %v4655_v33, %v726_v25  ;;  %v854_v40 = vshrl.u32 %v3989_v37, %v851_v44  ;;  %v813_v14 = vand.u32 2147483647, %v812_v2  ;;  %v857_v49 = vshrl.u32 %v3990_v39, %v851_v44 }
  0xd2   : > { %v1560_v20 = vsel %vm1553_vm9, %v1556_v61, %v1559_v32  ;;  %v4684_v15 = vshrl.u32 %v485_v57, 30  ;;  %v844_v7 = vor.u32 8388608, %v843_v9  ;;  %v859_v16 = vshll.u32 %v3990_v39, %v850_v31 }
  0xd3   : > { %v4689_v5 = vsel %vm722_vm4, nan, %v1560_v20  ;;  %v816_v60 = vmul.f32 %v815_v53, %v813_v14  ;;  %v860_v42 = vshrl.u32 %v3991_v41, %v851_v44  ;;  %v862_v27 = vshll.u32 %v3991_v41, %v850_v31 }
  0xd4   : > { %1903 = vperm.xlu0 %3770, %v4689_v5   ;;  %v487_v22 = vshll.u32 %v4684_v15, 30  ;;  %v852_v26 = vshrl.u32 %v3988_v35, %v851_v44  ;;  %v863_v23 = vshrl.u32 %v3992_v43, %v851_v44  ;;  %v865_v59 = vshll.u32 %v3992_v43, %v850_v31 }
  0xd5   : > { %v866_v28 = vshrl.u32 %v3993_v51, %v851_v44  ;;  %v817_v19 = vxor.u32 2147483648, %v816_v60  ;;  %v855_v50 = vor.u32 %v854_v40, %v853_v63  ;;  %v858_v9 = vor.u32 %v857_v49, %v856_v3 }
  0xd6   : > { %v4700_v48 = vsub.s32 %v484_v52, %v487_v22  ;;  %v4704_v32 = vsel %vm4663_vm12, 0, %v820_v56  ;;  %v864_v2 = vor.u32 %v863_v23, %v862_v27  ;;  %vm868_vm13 = vcmp.lt.s32.totalorder %v849_v62, 1  ;;  %v209_v52 = vld [vmem:[%s4118_s26 + $0x38] sm:$0xff] }
  0xd7   : > { %v884_v53 = vshll.u32 %v844_v7, 8  ;;  %v818_v57 = vsel %vm735_vm6, %v817_v19, %v816_v60  ;;  %v861_v44 = vor.u32 %v860_v42, %v859_v16  ;;  %v867_v61 = vor.u32 %v866_v28, %v865_v59 }
  0xd8   : > { %3783 = vset.pattern.permute.xlu0 %v5842_v0  ;;  %v490_v31 = vsub.s32 0, %v4700_v48  ;;  %v821_v63 = vsel %vm4663_vm12, %v4321_v36, %v818_v57  ;;  %vm869_vm14 = vcmp.lt.s32.totalorder %v849_v62, 2  ;;  %vm870_vm15 = vcmp.lt.s32.totalorder %v849_v62, 3 }
  0xd9   : > { %vm871_vm0 = vcmp.lt.s32.totalorder %v849_v62, 4  ;;  %3842 = vcosq.f32 %v821_v63  ;;  %v872_v40 = vsel %vm868_vm13, %v852_v26, %v855_v50  ;;  %v876_v3 = vsel %vm868_vm13, %v855_v50, %v858_v9 }
  0xda   : > { %v3463_v56 = vmin.u32 %v490_v31, %v4700_v48  ;;  %3844 = vsinq.f32 %v821_v63  ;;  %v873_v20 = vsel %vm871_vm0, %v861_v44, 2102212464  ;;  %v877_v14 = vsel %vm871_vm0, %v864_v2, 920167782 }
  0xdb   : > { %v4717_v49 = vmul.f32 0.5, %v209_v52  ;;  %v874_v16 = vsel %vm870_vm15, %v858_v9, %v873_v20  ;;  %v878_v30 = vsel %vm870_vm15, %v861_v44, %v877_v14  ;;  %v880_v60 = vsel %vm868_vm13, %v858_v9, %v861_v44 }
  0xdc   : > { %v492_v7 = vclz %v3463_v56  ;;  %v875_v22 = vsel %vm869_vm14, %v872_v40, %v874_v16  ;;  %v879_v42 = vsel %vm869_vm14, %v876_v3, %v878_v30  ;;  %v881_v27 = vsel %vm871_vm0, %v867_v61, 1326507024 }
  0xdd   : > { %v882_v23 = vsel %vm870_vm15, %v864_v2, %v881_v27  ;;  %v4725_v59 = vmul.u32.u64.low %v884_v53, %v879_v42  ;;  %v4726_v28 = vmul.u32.u64.high %v884_v53, %v879_v42, %v4725_v59  ;;  %v826_v19 = vand.u32 3, %v4704_v32 }
  0xde   : > { %v3464_v26 = vadd.s32 4294967294, %v492_v7  ;;  %v883_v50 = vsel %vm869_vm14, %v880_v60, %v882_v23  ;;  %v942_v57 = vand.u32 2139095040, %v4717_v49  ;;  %v480_v9 = vadd.s32 %v4641_v13, %v4638_v12 }
  0xdf   : > { %v4734_v31 = vmul.u32.u64.low %v884_v53, %v883_v50  ;;  %v4735_v44 = vmul.u32.u64.high %v884_v53, %v883_v50, %v4734_v31  ;;  %v891_v52 = vmul.u32 %v884_v53, %v875_v22  ;;  %v723_v2 = vand.u32 3, %v4594_v38 }
  0xe0   : > { %vm3465_vm1 = vcmp.lt.s32.totalorder %v3464_v26, 0  ;;  %vm825_vm2 = vweird.f32 %v4321_v36  ;;  %v894_v40 = vadd.s32 1, %v4726_v28  ;;  %vm827_vm3 = vcmp.lt.s32.totalorder %v826_v19, 2 }
  0xe1   : > { %v495_v61 = vsel %vm3465_vm1, 0, %v3464_v26  ;;  %vm828_vm5 = vcmp.eq.s32.totalorder %v826_v19, 0  ;;  %vm4743_vm6 = vcmp.le.f32.partialorder %v424_v11, 0.7853982  ;;  %vm426_vm7 = vcmp.lt.s32.totalorder %v4458_v34, 0 }
  0xe2   : > { %v496_v63 = vsub.s32 32, %v495_v61  ;;  %v497_v56 = vshll.u32 %v4700_v48, %v495_v61  ;;  %v500_v62 = vsub.s32 4294967266, %v495_v61  ;;  %v943_v13 = vshrl.u32 %v942_v57, 23 }
  0xe3   : > { %vm831_vm8 = vcmp.eq.s32.totalorder %v826_v19, 2  ;;  %vm893_vm9 = vc.u32 %v4735_v44, %v4725_v59  ;;  %v510_v48 = vsub.s32 4, %v4684_v15  ;;  %vm725_vm10 = vcmp.eq.s32.totalorder %v723_v2, 0 }
  0xe4   : > { %v498_v38 = vshrl.u32 %v480_v9, %v496_v63  ;;  %v501_v53 = vadd.s32 127, %v500_v62  ;;  %v895_v3 = vsel %vm893_vm9, %v894_v40, %v4726_v28  ;;  %v3482_v20 = vadd.s32 4294967169, %v943_v13 }
  0xe5   : > { %v896_v7 = vadd.s32 %v895_v3, %v891_v52  ;;  %v727_v16 = vsel %vm725_vm10, %v4655_v33, %v726_v25  ;;  %v939_v60 = vand.u32 2147483647, %v4717_v49  ;;  %vm724_vm11 = vcmp.lt.s32.totalorder %v723_v2, 2 }
  0xe6   : > { %v499_v14 = vor.u32 %v498_v38, %v497_v56  ;;  %v502_v11 = vshll.u32 %v501_v53, 23  ;;  %v4755_v30 = vpop.eup %3842  ;;  %v949_v22 = vadd.s32 1, %v3482_v20  ;;  %vm728_vm12 = vcmp.eq.s32.totalorder %v723_v2, 2 }
  0xe7   : > { %v4758_v42 = vpop.eup %3844  ;;  %v832_v27 = vxor.u32 2147483648, %v4755_v30  ;;  %v897_v28 = vadd.s32 536870912, %v896_v7  ;;  %v511_v25 = vsel %vm426_vm7, %v510_v48, %v4684_v15  ;;  %v730_v57 = vsel %vm728_vm12, %v729_v47, %v4658_v54 }
  0xe8   : > { %v503_v26 = vor.u32 4788187, %v502_v11  ;;  %v506_v23 = vcvt.s32.f32 %v499_v14  ;;  %v829_v50 = vxor.u32 2147483648, %v4758_v42  ;;  %vm950_vm13 = vcmp.gt.s32.totalorder %v949_v22, 0 }
  0xe9   : > { %v833_v9 = vsel %vm831_vm8, %v832_v27, %v4758_v42  ;;  %v4772_v61 = vshrl.u32 %v897_v28, 30  ;;  %v951_v52 = vsel %vm950_vm13, %v949_v22, 0  ;;  %v946_v15 = vand.u32 8388607, %v939_v60 }
  0xea   : > { %v504_v31 = vand.u32 2147483647, %v503_v26  ;;  %v830_v63 = vsel %vm828_vm5, %v4755_v30, %v829_v50  ;;  %v953_v56 = vand.u32 31, %v951_v52  ;;  %v4781_v33 = vsel %vm724_vm11, %v727_v16, %v730_v57 }
  0xeb   : > { %v834_v54 = vsel %vm827_vm3, %v830_v63, %v833_v9  ;;  %v513_v62 = vsel %vm4743_vm6, 0, %v511_v25  ;;  %v899_v40 = vshll.u32 %v4772_v61, 30  ;;  %v1655_v19 = vadd.s32 3, %v4704_v32 }
  0xec   : > { %v507_v47 = vmul.f32 %v506_v23, %v504_v31  ;;  %v4789_v13 = vsel %vm825_vm2, nan, %v834_v54  ;;  %v1343_v38 = vadd.s32 3, %v513_v62  ;;  %v954_v53 = vsub.s32 32, %v953_v56 }
  0xed   : > { %5904 = vst [vmem:[#allocation11_spill] sm:$0xff] %v4789_v13  ;;  %2034 = vperm.xlu0 %3783, %v4789_v13   ;;  %v4792_v2 = vsub.s32 %v896_v7, %v899_v40  ;;  %v947_v3 = vor.u32 8388608, %v946_v15  ;;  %v956_v20 = vshll.u32 %v3988_v35, %v953_v56  ;;  %v959_v14 = vshll.u32 %v3989_v37, %v953_v56 }
  0xee   : > { %v508_v48 = vxor.u32 2147483648, %v507_v47  ;;  %v962_v11 = vshll.u32 %v3990_v39, %v953_v56  ;;  %v957_v26 = vshrl.u32 %v3989_v37, %v954_v53  ;;  %v960_v23 = vshrl.u32 %v3990_v39, %v954_v53 }
  0xef   : > { %v902_v22 = vsub.s32 0, %v4792_v2  ;;  %v4806_v7 = vand.u32 3, %v513_v62  ;;  %v4808_v28 = vand.u32 3, %v1343_v38  ;;  %v963_v25 = vshrl.u32 %v3991_v41, %v954_v53 }
  0xf0   : > { %v509_v16 = vsel %vm426_vm7, %v508_v48, %v507_v47  ;;  %v892_v57 = vadd.s32 %v4725_v59, %v4735_v44  ;;  %v952_v9 = vshrl.u32 %v951_v52, 5  ;;  %v955_v39 = vshrl.u32 %v3988_v35, %v954_v53 }
  0xf1   : > { %v512_v32 = vsel %vm4743_vm6, %v4458_v34, %v509_v16  ;;  %3787 = vset.pattern.permute.xlu0 %v5844_v6  ;;  %v3479_v37 = vmin.u32 %v902_v22, %v4792_v2  ;;  %v4816_v12 = vshll.u32 %v947_v3, 8  ;;  %v1656_v31 = vand.u32 3, %v1655_v19 }
  0xf2   : > { %3846 = vcosq.f32 %v512_v32  ;;  %v958_v15 = vor.u32 %v957_v26, %v956_v20  ;;  %v961_v54 = vor.u32 %v960_v23, %v959_v14  ;;  %v964_v47 = vor.u32 %v963_v25, %v962_v11 }
  0xf3   : > { %3848 = vsinq.f32 %v512_v32  ;;  %v904_v63 = vclz %v3479_v37  ;;  %v965_v62 = vshll.u32 %v3991_v41, %v953_v56  ;;  %v966_v40 = vshrl.u32 %v3992_v43, %v954_v53 }
  0xf4   : > { %v968_v38 = vshll.u32 %v3992_v43, %v953_v56  ;;  %v969_v59 = vshrl.u32 %v3993_v51, %v954_v53  ;;  %vm971_vm14 = vcmp.lt.s32.totalorder %v952_v9, 1  ;;  %vm972_vm15 = vcmp.lt.s32.totalorder %v952_v9, 2 }
  0xf5   : > { %v3480_v44 = vadd.s32 4294967294, %v904_v63  ;;  %vm973_vm0 = vcmp.lt.s32.totalorder %v952_v9, 3  ;;  %vm522_vm1 = vcmp.eq.s32.totalorder %v4806_v7, 2  ;;  %v967_v35 = vor.u32 %v966_v40, %v965_v62 }
  0xf6   : > { %v970_v52 = vor.u32 %v969_v59, %v968_v38  ;;  %vm974_vm3 = vcmp.lt.s32.totalorder %v952_v9, 4  ;;  %v975_v48 = vsel %vm971_vm14, %v955_v39, %v958_v15  ;;  %vm519_vm5 = vcmp.eq.s32.totalorder %v4806_v7, 0 }
  0xf7   : > { %vm3481_vm6 = vcmp.lt.s32.totalorder %v3480_v44, 0  ;;  %vm1346_vm7 = vcmp.eq.s32.totalorder %v4808_v28, 0  ;;  %v976_v41 = vsel %vm974_vm3, %v964_v47, 2102212464  ;;  %v979_v19 = vsel %vm971_vm14, %v958_v15, %v961_v54 }
  0xf8   : > { %v983_v43 = vsel %vm971_vm14, %v961_v54, %v964_v47  ;;  %vm518_vm8 = vcmp.lt.s32.totalorder %v4806_v7, 2  ;;  %v907_v51 = vsel %vm3481_vm6, 0, %v3480_v44  ;;  %v977_v56 = vsel %vm973_vm0, %v961_v54, %v976_v41 }
  0xf9   : > { %v980_v53 = vsel %vm974_vm3, %v967_v35, 920167782  ;;  %v984_v3 = vsel %vm974_vm3, %v970_v52, 1326507024  ;;  %vm516_vm9 = vweird.f32 %v4458_v34  ;;  %v908_v20 = vsub.s32 32, %v907_v51 }
  0xfa   : > { %v909_v14 = vshll.u32 %v4792_v2, %v907_v51  ;;  %v912_v11 = vsub.s32 4294967266, %v907_v51  ;;  %vm1657_vm10 = vcmp.lt.s32.totalorder %v1656_v31, 2  ;;  %v978_v16 = vsel %vm972_vm15, %v975_v48, %v977_v56 }
  0xfb   : > { %v981_v22 = vsel %vm973_vm0, %v964_v47, %v980_v53  ;;  %v985_v26 = vsel %vm973_vm0, %v967_v35, %v984_v3  ;;  %v4835_v23 = vsel %vm722_vm4, nan, %v4781_v33  ;;  %v910_v32 = vshrl.u32 %v892_v57, %v908_v20 }
  0xfc   : > { %v913_v25 = vadd.s32 127, %v912_v11  ;;  %v982_v37 = vsel %vm972_vm15, %v979_v19, %v981_v22  ;;  %v986_v39 = vsel %vm972_vm15, %v983_v43, %v985_v26  ;;  %vm1658_vm11 = vcmp.eq.s32.totalorder %v1656_v31, 0 }
  0xfd   : > { %v4840_v2 = vmul.u32.u64.low %v4816_v12, %v986_v39  ;;  %v4841_v63 = vmul.u32.u64.high %v4816_v12, %v986_v39, %v4840_v2  ;;  %v4844_v15 = vmul.u32.u64.low %v4816_v12, %v982_v37  ;;  %v4845_v54 = vmul.u32.u64.high %v4816_v12, %v982_v37, %v4844_v15 }
  0xfe   : > { %v911_v47 = vor.u32 %v910_v32, %v909_v14  ;;  %v914_v62 = vshll.u32 %v913_v25, 23  ;;  %vm1661_vm4 = vcmp.eq.s32.totalorder %v1656_v31, 2  ;;  %vm1349_vm12 = vcmp.eq.s32.totalorder %v4808_v28, 2 }
  0xff   : > { %v3847_v45 = vpop.eup %3846  ;;  %v994_v33 = vmul.u32 %v4816_v12, %v978_v16  ;;  %v1660_v57 = vsel %vm1658_vm11, %v4755_v30, %v829_v50  ;;  %v1663_v9 = vsel %vm1661_vm4, %v832_v27, %v4758_v42  ;;  %vm1345_vm13 = vcmp.lt.s32.totalorder %v4808_v28, 2 }
 0x100   : > { %v3849_v40 = vpop.eup %3848  ;;  %v523_v38 = vxor.u32 2147483648, %v3847_v45  ;;  %v915_v59 = vor.u32 4788187, %v914_v62  ;;  %v918_v44 = vcvt.s32.f32 %v911_v47  ;;  %v1664_v35 = vsel %vm1657_vm10, %v1660_v57, %v1663_v9 }
 0x101   : > { %v520_v52 = vxor.u32 2147483648, %v3849_v40  ;;  %vm996_vm14 = vc.u32 %v4841_v63, %v4844_v15  ;;  %v997_v12 = vadd.s32 1, %v4845_v54  ;;  %v4867_v42 = vsel %vm825_vm2, nan, %v1664_v35 }
 0x102   : > { %v524_v50 = vsel %vm522_vm1, %v523_v38, %v3849_v40  ;;  %v916_v48 = vand.u32 2147483647, %v915_v59  ;;  %v1351_v30 = vsel %vm1349_vm12, %v523_v38, %v3849_v40  ;;  %vm838_vm2 = vcmp.lt.s32.totalorder %v4588_v46, 0 }
 0x103   : > { %v521_v27 = vsel %vm519_vm5, %v3847_v45, %v520_v52  ;;  %v1348_v31 = vsel %vm1346_vm7, %v3847_v45, %v520_v52  ;;  %v998_v41 = vsel %vm996_vm14, %v997_v12, %v4845_v54  ;;  %v922_v36 = vsub.s32 4, %v4772_v61 }
 0x104   : > { %v525_v19 = vsel %vm518_vm8, %v521_v27, %v524_v50  ;;  %v919_v43 = vmul.f32 %v918_v44, %v916_v48  ;;  %v1352_v51 = vsel %vm1345_vm13, %v1348_v31, %v1351_v30  ;;  %v999_v56 = vadd.s32 %v998_v41, %v994_v33 }
 0x105   : > { %v4878_v53 = vsel %vm516_vm9, nan, %v525_v19  ;;  %v4884_v28 = vsel %vm516_vm9, nan, %v1352_v51  ;;  %vm837_vm15 = vcmp.le.f32.partialorder %v836_v18, 0.7853982  ;;  %v923_v11 = vsel %vm838_vm2, %v922_v36, %v4772_v61 }
 0x106   : > { %2622 = vperm.xlu0 %3787, %v4878_v53   ;;  %v920_v7 = vxor.u32 2147483648, %v919_v43  ;;  %1990 = vperm.xlu1 %3756, %v4884_v28   ;;  %v1000_v3 = vadd.s32 536870912, %v999_v56  ;;  %v925_v18 = vsel %vm837_vm15, 0, %v923_v11  ;;  %v5838_v39 = vmov 5  }
 0x107   : > { %v1759_v32 = vadd.s32 3, %v925_v18  ;;  %v995_v54 = vadd.s32 %v4844_v15, %v4841_v63  ;;  %v929_v62 = vand.u32 3, %v925_v18  ;;  %vm928_vm6 = vweird.f32 %v4588_v46 }
 0x108   : > { %v921_v20 = vsel %vm838_vm2, %v920_v7, %v919_v43  ;;  %v4890_v14 = vshrl.u32 %v1000_v3, 30  ;;  %vm941_vm10 = vcmp.lt.s32.totalorder %v4717_v49, 0  ;;  %vm940_vm11 = vcmp.le.f32.partialorder %v939_v60, 0.7853982 }
 0x109   : > { %v924_v16 = vsel %vm837_vm15, %v4588_v46, %v921_v20  ;;  %v1760_v37 = vand.u32 3, %v1759_v32  ;;  %vm931_vm7 = vcmp.eq.s32.totalorder %v929_v62, 0  ;;  %vm934_vm8 = vcmp.eq.s32.totalorder %v929_v62, 2 }
 0x10a   : > { %3792 = vset.pattern.permute.xlu0 %v5842_v0  ;;  %3850 = vcosq.f32 %v924_v16  ;;  %2022 = vperm.xlu1 %3756, %v4878_v53   ;;  %v1002_v34 = vshll.u32 %v4890_v14, 30  ;;  %vm930_vm9 = vcmp.lt.s32.totalorder %v929_v62, 2  ;;  %vm1031_vm14 = vweird.f32 %v4717_v49 }
 0x10b   : > { %3852 = vsinq.f32 %v924_v16  ;;  %vm1762_vm1 = vcmp.eq.s32.totalorder %v1760_v37, 0  ;;  %vm1765_vm3 = vcmp.eq.s32.totalorder %v1760_v37, 2  ;;  %vm1761_vm5 = vcmp.lt.s32.totalorder %v1760_v37, 2 }
 0x10c   : > { %v1003_v22 = vsub.s32 %v999_v56, %v1002_v34  ;;  %v1025_v56 = vsub.s32 4, %v4890_v14  ;;  %v5846_v16 = vmov 6  }
 0x10e   : > { %3757 = vset.pattern.permute.xlu1 %v5840_v24  ;;  %v1005_v26 = vsub.s32 0, %v1003_v22  ;;  %v1026_v20 = vsel %vm941_vm10, %v1025_v56, %v4890_v14  ;;  %v2727_v56 = vld [vmem:[#allocation2 + $0x190] sm:$0xff] }
 0x10f   : > { %2218 = vperm.xlu1 %3757, %v4465_v58   ;;  %v1028_v60 = vsel %vm940_vm11, 0, %v1026_v20  ;;  %v2721_v20 = vld [vmem:[#allocation2 + $0x160] sm:$0xff] }
 0x110   : > { %v3483_v25 = vmin.u32 %v1005_v26, %v1003_v22  ;;  %v1863_v46 = vadd.s32 3, %v1028_v60 }
 0x112   : > { %v1007_v61 = vclz %v3483_v25  ;;  %v1864_v34 = vand.u32 3, %v1863_v46  ;;  %v4996_v46 = vpop.permute.xlu0 %1883 }
 0x113   : > { %3758 = vset.pattern.permute.xlu1 %v5838_v39 }
 0x114   : > { %v3484_v2 = vadd.s32 4294967294, %v1007_v61  ;;  %2382 = vperm.xlu1 %3758, %v4391_v55   ;;  %vm1869_vm4 = vcmp.eq.s32.totalorder %v1864_v34, 2  ;;  %vm1866_vm12 = vcmp.eq.s32.totalorder %v1864_v34, 0  ;;  %vm1865_vm13 = vcmp.lt.s32.totalorder %v1864_v34, 2  ;;  %v2720_v34 = vld [vmem:[#allocation2 + $0x158] sm:$0xff] }
 0x116   : > { %vm3485_vm0 = vcmp.lt.s32.totalorder %v3484_v2, 0 }
 0x117   : > { %v3851_v47 = vpop.eup %3850  ;;  %v1010_v45 = vsel %vm3485_vm0, 0, %v3484_v2  ;;  %v1032_v2 = vand.u32 3, %v1028_v60 }
 0x118   : > { %v3853_v33 = vpop.eup %3852  ;;  %v935_v57 = vxor.u32 2147483648, %v3851_v47  ;;  %v1011_v9 = vsub.s32 32, %v1010_v45  ;;  %v1012_v40 = vshll.u32 %v1003_v22, %v1010_v45  ;;  %v1015_v38 = vsub.s32 4294967266, %v1010_v45  ;;  %3759 = vset.pattern.permute.xlu1 %v5836_v1 }
 0x119   : > { %v932_v59 = vxor.u32 2147483648, %v3853_v33  ;;  %1893 = vperm.xlu1 %3759, %v4884_v28   ;;  %vm1034_vm2 = vcmp.eq.s32.totalorder %v1032_v2, 0  ;;  %vm1037_vm15 = vcmp.eq.s32.totalorder %v1032_v2, 2  ;;  %vm1033_vm0 = vcmp.lt.s32.totalorder %v1032_v2, 2  ;;  %v2710_v2 = vld [vmem:[#allocation2 + $0x108] sm:$0xff] }
 0x11a   : > { %v1767_v63 = vsel %vm1765_vm3, %v935_v57, %v3853_v33  ;;  %v1013_v15 = vshrl.u32 %v995_v54, %v1011_v9  ;;  %v1016_v44 = vadd.s32 127, %v1015_v38  ;;  %v936_v41 = vsel %vm934_vm8, %v935_v57, %v3853_v33  ;;  %v4953_v54 = vpop.permute.xlu1 %1982  ;;  %v2740_v38 = vld [vmem:[#allocation2 + $0x1f8] sm:$0xff] }
 0x11b   : > { %v1764_v35 = vsel %vm1762_vm1, %v3851_v47, %v932_v59  ;;  %v933_v31 = vsel %vm931_vm7, %v3851_v47, %v932_v59  ;;  %v2737_v59 = vld [vmem:[#allocation2 + $0x1e0] sm:$0xff]  ;;  %2918 = vmatprep.subr.mxu1 %v2740_v38  ;;  %v2706_v38 = vld [vmem:[#allocation2 + $0xe8] sm:$0xff] }
 0x11c   : > { %v1768_v52 = vsel %vm1761_vm5, %v1764_v35, %v1767_v63  ;;  %v1014_v12 = vor.u32 %v1013_v15, %v1012_v40  ;;  %v1017_v50 = vshll.u32 %v1016_v44, 23  ;;  %v937_v43 = vsel %vm930_vm9, %v933_v31, %v936_v41  ;;  %v2739_v63 = vld [vmem:[#allocation2 + $0x1f0] sm:$0xff]  ;;  %v2734_v44 = vld [vmem:[#allocation2 + $0x1c8] sm:$0xff]  ;;  %v2736_v35 = vld [vmem:[#allocation2 + $0x1d8] sm:$0xff] }
 0x11d   : > { %v4909_v48 = vsel %vm928_vm6, nan, %v1768_v52  ;;  %1933 = vperm.xlu1 %3759, %v4878_v53   ;;  %v4923_v7 = vsel %vm928_vm6, nan, %v937_v43  ;;  %2919 = vmatpush1.msra.mxu1 %v2739_v63  ;;  %v2733_v52 = vld [vmem:[#allocation2 + $0x1c0] sm:$0xff]  ;;  %v2731_v41 = vld [vmem:[#allocation2 + $0x1b0] sm:$0xff]  ;;  %v2728_v43 = vld [vmem:[#allocation2 + $0x198] sm:$0xff] }
 0x11e   : > { %5905 = vst [vmem:[#allocation12_spill] sm:$0xff] %v4909_v48  ;;  %2006 = vperm.xlu0 %3792, %v4909_v48   ;;  %v1018_v30 = vor.u32 4788187, %v1017_v50  ;;  %v1021_v27 = vcvt.s32.f32 %v1014_v12  ;;  %v4960_v33 = vpop.permute.xlu1 %2014  ;;  %2920 = vmatprep.subr.mxu1 %v2736_v35  ;;  %v2735_v12 = vld [vmem:[#allocation2 + $0x1d0] sm:$0xff]  ;;  %v2730_v50 = vld [vmem:[#allocation2 + $0x1a8] sm:$0xff]  ;;  %v2705_v63 = vld [vmem:[#allocation2 + $0xe0] sm:$0xff] }
 0x11f   : > { %2921 = vmatpush1.msra.mxu1 %v2735_v12  ;;  %v2704_v12 = vld [vmem:[#allocation2 + $0xd8] sm:$0xff] }
 0x120   : > { %v1019_v19 = vand.u32 2147483647, %v1018_v30  ;;  %v2732_v30 = vld [vmem:[#allocation2 + $0x1b8] sm:$0xff] }
 0x121   : > { %3760 = vset.pattern.permute.xlu1 %v5848_v8  ;;  %2922 = vmatprep.subr.mxu1 %v2732_v30  ;;  %v2703_v30 = vld [vmem:[#allocation2 + $0xd0] sm:$0xff] }
 0x122   : > { %3796 = vset.pattern.permute.xlu0 %v5844_v6  ;;  %v1022_v51 = vmul.f32 %v1021_v27, %v1019_v19  ;;  %2122 = vperm.xlu1 %3760, %v4878_v53   ;;  %v4969_v9 = vpop.permute.xlu1 %2082  ;;  %v2729_v27 = vld [vmem:[#allocation2 + $0x1a0] sm:$0xff]  ;;  %v2726_v19 = vld [vmem:[#allocation2 + $0x188] sm:$0xff] }
 0x123   : > { %2594 = vperm.xlu0 %3796, %v4565_v17   ;;  %2923 = vmatpush1.msra.mxu1 %v2731_v41  ;;  %v2700_v41 = vld [vmem:[#allocation2 + $0xb8] sm:$0xff] }
 0x124   : > { %v1023_v36 = vxor.u32 2147483648, %v1022_v51  ;;  %2924 = vmatprep.subr.mxu1 %v2728_v43  ;;  %v2699_v43 = vld [vmem:[#allocation2 + $0xb0] sm:$0xff] }
 0x125   : > { %2925 = vmatpush1.msra.mxu1 %v2727_v56 }
 0x126   : > { %v1024_v3 = vsel %vm941_vm10, %v1023_v36, %v1022_v51  ;;  %3761 = vset.pattern.permute.xlu1 %v5850_v29  ;;  %v4975_v40 = vpop.permute.xlu1 %1986  ;;  %v2725_v51 = vld [vmem:[#allocation2 + $0x180] sm:$0xff]  ;;  %v2722_v36 = vld [vmem:[#allocation2 + $0x168] sm:$0xff] }
 0x127   : > { %3799 = vset.pattern.permute.xlu0 %v5836_v1  ;;  %v1027_v11 = vsel %vm940_vm11, %v4717_v49, %v1024_v3  ;;  %2286 = vperm.xlu1 %3761, %v4444_v4   ;;  %v2738_v49 = vld [vmem:[#allocation2 + $0x1e8] sm:$0xff]  ;;  %v2724_v3 = vld [vmem:[#allocation2 + $0x178] sm:$0xff] }
 0x128   : > { %1953 = vperm.xlu0 %3799, %v4923_v7   ;;  %3854 = vcosq.f32 %v1027_v11  ;;  %2805 = vmatprep.subr.mxu0 %v2738_v49  ;;  %v2711_v49 = vld [vmem:[#allocation2 + $0x110] sm:$0xff] }
 0x129   : > { %3856 = vsinq.f32 %v1027_v11  ;;  %2806 = vmatpush1.msra.mxu0 %v2737_v59  ;;  %v2723_v11 = vld [vmem:[#allocation2 + $0x170] sm:$0xff]  ;;  %2926 = vmatprep.subr.mxu1 %v2724_v3  ;;  %v2708_v59 = vld [vmem:[#allocation2 + $0xf8] sm:$0xff] }
 0x12a   : > { %v4981_v15 = vpop.permute.xlu1 %2018  ;;  %2807 = vmatprep.subr.mxu0 %v2734_v44  ;;  %2927 = vmatpush1.msra.mxu1 %v2723_v11  ;;  %v2707_v44 = vld [vmem:[#allocation2 + $0xf0] sm:$0xff]  ;;  %v2696_v3 = vld [vmem:[#allocation2 + $0x98] sm:$0xff] }
 0x12b   : > { %3762 = vset.pattern.permute.xlu1 %v5846_v16  ;;  %2808 = vmatpush1.msra.mxu0 %v2733_v52  ;;  %v2702_v52 = vld [vmem:[#allocation2 + $0xc8] sm:$0xff]  ;;  %v2695_v11 = vld [vmem:[#allocation2 + $0x90] sm:$0xff] }
 0x12c   : > { %2482 = vperm.xlu1 %3762, %v4391_v55   ;;  %2809 = vmatprep.subr.mxu0 %v2730_v50 }
 0x12d   : > { %2810 = vmatpush1.msra.mxu0 %v2729_v27  ;;  %2928 = vmatprep.subr.mxu1 %v2720_v34  ;;  %v2698_v27 = vld [vmem:[#allocation2 + $0xa8] sm:$0xff] }
 0x12e   : > { %v4987_v31 = vpop.permute.xlu1 %2214  ;;  %2811 = vmatprep.subr.mxu0 %v2726_v19  ;;  %v2697_v19 = vld [vmem:[#allocation2 + $0xa0] sm:$0xff] }
 0x12f   : > { %2812 = vmatpush1.msra.mxu0 %v2725_v51 }
 0x130   : > { %2514 = vperm.xlu1 %3762, %v4406_v21   ;;  %2813 = vmatprep.subr.mxu0 %v2722_v36  ;;  %v2694_v36 = vld [vmem:[#allocation2 + $0x88] sm:$0xff] }
 0x131   : > { %2814 = vmatpush1.msra.mxu0 %v2721_v20  ;;  %v2693_v20 = vld [vmem:[#allocation2 + $0x80] sm:$0xff] }
 0x132   : > { %v4994_v60 = vpop.permute.xlu1 %1928 }
 0x134   : > { %3764 = vset.pattern.permute.xlu1 %v5842_v0 }
 0x135   : > { %v3855_v14 = vpop.eup %3854  ;;  %2026 = vperm.xlu1 %3764, %v4612_v10  }
 0x136   : > { %v3857_v18 = vpop.eup %3856  ;;  %v1038_v22 = vxor.u32 2147483648, %v3855_v14 }
 0x137   : > { %v1035_v26 = vxor.u32 2147483648, %v3857_v18 }
 0x138   : > { %v1871_v32 = vsel %vm1869_vm4, %v1038_v22, %v3857_v18  ;;  %v1039_v62 = vsel %vm1037_vm15, %v1038_v22, %v3857_v18  ;;  %v2719_v18 = vld [vmem:[#allocation2 + $0x150] sm:$0xff]  ;;  %v2714_v22 = vld [vmem:[#allocation2 + $0x128] sm:$0xff] }
 0x139   : > { %v1868_v25 = vsel %vm1866_vm12, %v3855_v14, %v1035_v26  ;;  %3765 = vset.pattern.permute.xlu1 %v5840_v24  ;;  %v1036_v47 = vsel %vm1034_vm2, %v3855_v14, %v1035_v26  ;;  %v2717_v14 = vld [vmem:[#allocation2 + $0x140] sm:$0xff]  ;;  %v2716_v26 = vld [vmem:[#allocation2 + $0x138] sm:$0xff]  ;;  %2929 = vmatpush1.msra.mxu1 %v2719_v18 }
 0x13a   : > { %v1872_v61 = vsel %vm1865_vm13, %v1868_v25, %v1871_v32  ;;  %2190 = vperm.xlu1 %3765, %v4884_v28   ;;  %v1040_v45 = vsel %vm1033_vm0, %v1036_v47, %v1039_v62  ;;  %v2713_v32 = vld [vmem:[#allocation2 + $0x120] sm:$0xff]  ;;  %v5001_v25 = vpop.permute.xlu1 %2118  ;;  %2930 = vmatprep.subr.mxu1 %v2716_v26  ;;  %v2712_v47 = vld [vmem:[#allocation2 + $0x118] sm:$0xff]  ;;  %v5004_v62 = vpop.permute.xlu0 %1888 }
 0x13b   : > { %v4941_v37 = vsel %vm1031_vm14, nan, %v1872_v61  ;;  %v4964_v57 = vsel %vm1031_vm14, nan, %v1040_v45  ;;  %v2715_v61 = vld [vmem:[#allocation2 + $0x130] sm:$0xff]  ;;  %v2709_v45 = vld [vmem:[#allocation2 + $0x100] sm:$0xff] }
 0x13c   : > { %5906 = vst [vmem:[#allocation13_spill] sm:$0xff] %v4941_v37  ;;  %1918 = vperm.xlu0 %3799, %v4941_v37   ;;  %5907 = vst [vmem:[#allocation14_spill] sm:$0xff] %v4964_v57  ;;  %2931 = vmatpush1.msra.mxu1 %v2715_v61  ;;  %v2689_v18 = vld [vmem:[#allocation2 + $0x60] sm:$0xff]  ;;  %v2688_v61 = vld [vmem:[#allocation2 + $0x58] sm:$0xff] }
 0x13d   : > { %2932 = vmatprep.subr.mxu1 %v2712_v47 }
 0x13e   : > { %3766 = vset.pattern.permute.xlu1 %v5838_v39  ;;  %2933 = vmatpush1.msra.mxu1 %v2711_v49  ;;  %v5009_v35 = vpop.permute.xlu1 %2282  ;;  %v5012_v50 = vpop.permute.xlu0 %1923  ;;  %v2682_v49 = vld [vmem:[#allocation2 + $0x28] sm:$0xff] }
 0x13f   : > { %2386 = vperm.xlu1 %3766, %v4444_v4   ;;  %2934 = vmatprep.subr.mxu1 %v2708_v59  ;;  %v2681_v59 = vld [vmem:[#allocation2 + $0x20] sm:$0xff] }
 0x140   : > { %3807 = vset.pattern.permute.xlu0 %v5848_v8  ;;  %2935 = vmatpush1.msra.mxu1 %v2707_v44 }
 0x141   : > { %2114 = vperm.xlu0 %3807, %v4406_v21   ;;  %2936 = vmatprep.subr.mxu1 %v2704_v12  ;;  %v2680_v12 = vld [vmem:[#allocation2 + $0x18] sm:$0xff] }
 0x142   : > { %2937 = vmatpush1.msra.mxu1 %v2703_v30  ;;  %v5016_v51 = vpop.permute.xlu0 %1994 }
 0x143   : > { %2418 = vperm.xlu1 %3766, %v4465_v58   ;;  %2938 = vmatprep.subr.mxu1 %v2700_v41  ;;  %v2802_v41 = vld [vmem:[#allocation2 + $0x3e8] sm:$0xff] }
 0x144   : > { %2939 = vmatpush1.msra.mxu1 %v2699_v43  ;;  %v2803_v43 = vld [vmem:[#allocation2 + $0x3f0] sm:$0xff] }
 0x145   : > { %2086 = vperm.xlu0 %3807, %v4444_v4   ;;  %2940 = vmatprep.subr.mxu1 %v2696_v3  ;;  %v2798_v3 = vld [vmem:[#allocation2 + $0x3c8] sm:$0xff] }
 0x146   : > { %2941 = vmatpush1.msra.mxu1 %v2695_v11  ;;  %v5027_v26 = vpop.permute.xlu0 %2582 }
 0x147   : > { %3768 = vset.pattern.permute.xlu1 %v5844_v6  ;;  %5908 = vst [vmem:[#allocation15_spill] sm:$0xff] %v5027_v26 }
 0x148   : > { %2614 = vperm.xlu1 %3768, %v4406_v21  }
 0x149   : > { %2090 = vperm.xlu0 %3807, %v4884_v28  }
 0x14a   : > { %v5035_v44 = vpop.permute.xlu0 %1938 }
 0x14c   : > { %3769 = vset.pattern.permute.xlu1 %v5836_v1 }
 0x14d   : > { %2130 = vperm.xlu0 %3807, %v4835_v23   ;;  %1898 = vperm.xlu1 %3769, %v4565_v17  }
 0x151   : > { %2102 = vperm.xlu0 %3807, %v4867_v42   ;;  %3771 = vset.pattern.permute.xlu1 %v5848_v8 }
 0x152   : > { %2094 = vperm.xlu1 %3771, %v4565_v17  }
 0x155   : > { %2142 = vperm.xlu0 %3807, %v4964_v57  }
 0x156   : > { %2126 = vperm.xlu1 %3771, %v4612_v10  }
 0x159   : > { %3810 = vset.pattern.permute.xlu0 %v5846_v16 }
 0x15a   : > { %2518 = vperm.xlu0 %3810, %v4465_v58   ;;  %3772 = vset.pattern.permute.xlu1 %v5850_v29 }
 0x15b   : > { %2322 = vperm.xlu1 %3772, %v4878_v53  }
 0x15e   : > { %2490 = vperm.xlu0 %3810, %v4884_v28  }
 0x15f   : > { %3773 = vset.pattern.permute.xlu1 %v5846_v16 }
 0x160   : > { %2486 = vperm.xlu1 %3773, %v4444_v4  }
 0x162   : > { %2530 = vperm.xlu0 %3810, %v4835_v23  }
 0x164   : > { %3774 = vset.pattern.permute.xlu1 %v5842_v0 }
 0x165   : > { %1998 = vperm.xlu1 %3774, %v4689_v5  }
 0x166   : > { %2502 = vperm.xlu0 %3810, %v4867_v42  }
 0x169   : > { %2030 = vperm.xlu1 %3774, %v4835_v23  }
 0x16a   : > { %3812 = vset.pattern.permute.xlu0 %v5840_v24 }
 0x16b   : > { %2182 = vperm.xlu0 %3812, %v4391_v55   ;;  %v2718_v55 = vld [vmem:[#allocation2 + $0x148] sm:$0xff] }
 0x16c   : > { %2815 = vmatprep.subr.mxu0 %v2718_v55  ;;  %v2690_v55 = vld [vmem:[#allocation2 + $0x68] sm:$0xff] }
 0x16d   : > { %3775 = vset.pattern.permute.xlu1 %v5840_v24  ;;  %2816 = vmatpush1.msra.mxu0 %v2717_v14  ;;  %v2692_v14 = vld [vmem:[#allocation2 + $0x78] sm:$0xff] }
 0x16e   : > { %2226 = vperm.xlu1 %3775, %v4612_v10   ;;  %2817 = vmatprep.subr.mxu0 %v2714_v22  ;;  %v2691_v22 = vld [vmem:[#allocation2 + $0x70] sm:$0xff] }
 0x16f   : > { %2186 = vperm.xlu0 %3812, %v4444_v4   ;;  %2818 = vmatpush1.msra.mxu0 %v2713_v32  ;;  %v2686_v32 = vld [vmem:[#allocation2 + $0x48] sm:$0xff] }
 0x170   : > { %2819 = vmatprep.subr.mxu0 %v2710_v2  ;;  %2942 = vmatprep.subr.mxu1 %v2692_v14  ;;  %v2685_v2 = vld [vmem:[#allocation2 + $0x40] sm:$0xff]  ;;  %v2799_v14 = vld [vmem:[#allocation2 + $0x3d0] sm:$0xff] }
 0x171   : > { %2820 = vmatpush1.msra.mxu0 %v2709_v45  ;;  %2943 = vmatpush1.msra.mxu1 %v2691_v22  ;;  %v2687_v45 = vld [vmem:[#allocation2 + $0x50] sm:$0xff]  ;;  %v2796_v22 = vld [vmem:[#allocation2 + $0x3b8] sm:$0xff] }
 0x172   : > { %3776 = vset.pattern.permute.xlu1 %v5838_v39  ;;  %2821 = vmatprep.subr.mxu0 %v2706_v38  ;;  %v2684_v38 = vld [vmem:[#allocation2 + $0x38] sm:$0xff] }
 0x173   : > { %2222 = vperm.xlu0 %3812, %v4878_v53   ;;  %2390 = vperm.xlu1 %3776, %v4884_v28  }
 0x174   : > { %2822 = vmatpush1.msra.mxu0 %v2705_v63  ;;  %2944 = vmatprep.subr.mxu1 %v2688_v61  ;;  %v2683_v63 = vld [vmem:[#allocation2 + $0x30] sm:$0xff] }
 0x175   : > { %2823 = vmatprep.subr.mxu0 %v2702_v52  ;;  %2945 = vmatpush1.msra.mxu1 %v2687_v45  ;;  %v2678_v52 = vld [vmem:[#allocation2 + $0x8] sm:$0xff] }
 0x176   : > { %2946 = vmatprep.subr.mxu1 %v2684_v38  ;;  %v2790_v45 = vld [vmem:[#allocation2 + $0x388] sm:$0xff]  ;;  %v2792_v38 = vld [vmem:[#allocation2 + $0x398] sm:$0xff] }
 0x177   : > { %2194 = vperm.xlu0 %3812, %v4565_v17   ;;  %3777 = vset.pattern.permute.xlu1 %v5844_v6 }
 0x178   : > { %2586 = vperm.xlu1 %3777, %v4444_v4   ;;  %v2701_v4 = vld [vmem:[#allocation2 + $0xc0] sm:$0xff]  ;;  %2947 = vmatpush1.msra.mxu1 %v2683_v63  ;;  %v2791_v63 = vld [vmem:[#allocation2 + $0x390] sm:$0xff] }
 0x179   : > { %2824 = vmatpush1.msra.mxu0 %v2701_v4  ;;  %v2677_v4 = vld [vmem:[#allocation2] sm:$0xff]  ;;  %2948 = vmatprep.subr.mxu1 %v2680_v12  ;;  %v2788_v12 = vld [vmem:[#allocation2 + $0x378] sm:$0xff] }
 0x17a   : > { %2825 = vmatprep.subr.mxu0 %v2698_v27  ;;  %v2679_v27 = vld [vmem:[#allocation2 + $0x10] sm:$0xff] }
 0x17b   : > { %2234 = vperm.xlu0 %3812, %v4789_v13   ;;  %2826 = vmatpush1.msra.mxu0 %v2697_v19  ;;  %v2801_v19 = vld [vmem:[#allocation2 + $0x3e0] sm:$0xff] }
 0x17c   : > { %2618 = vperm.xlu1 %3777, %v4465_v58   ;;  %2827 = vmatprep.subr.mxu0 %v2694_v36  ;;  %v5041_v36 = vpop.permute.xlu0 %1903 }
 0x17d   : > { %2828 = vmatpush1.msra.mxu0 %v2693_v20  ;;  %2949 = vmatpush1.msra.mxu1 %v2679_v27  ;;  %5910 = vst [vmem:[#allocation17_spill] sm:$0xff] %v5041_v36  ;;  %v2800_v20 = vld [vmem:[#allocation2 + $0x3d8] sm:$0xff]  ;;  %v2785_v27 = vld [vmem:[#allocation2 + $0x360] sm:$0xff] }
 0x17e   : > { %2829 = vmatprep.subr.mxu0 %v2690_v55  ;;  %v2797_v55 = vld [vmem:[#allocation2 + $0x3c0] sm:$0xff] }
 0x17f   : > { %2206 = vperm.xlu0 %3812, %v4909_v48   ;;  %2830 = vmatpush1.msra.mxu0 %v2689_v18  ;;  %v2794_v18 = vld [vmem:[#allocation2 + $0x3a8] sm:$0xff] }
 0x180   : > { %3778 = vset.pattern.permute.xlu1 %v5836_v1  ;;  %2831 = vmatprep.subr.mxu0 %v2686_v32  ;;  %v2793_v32 = vld [vmem:[#allocation2 + $0x3a0] sm:$0xff] }
 0x181   : > { %1943 = vperm.xlu1 %3778, %v4835_v23   ;;  %v5019_v56 = vpop.permute.xlu1 %1990  ;;  %2832 = vmatpush1.msra.mxu0 %v2685_v2  ;;  %v2795_v2 = vld [vmem:[#allocation2 + $0x3b0] sm:$0xff] }
 0x182   : > { %2833 = vmatprep.subr.mxu0 %v2682_v49  ;;  %v5052_v49 = vpop.permute.xlu0 %2034 }
 0x183   : > { %2242 = vperm.xlu0 %3812, %v4964_v57   ;;  %2834 = vmatpush1.msra.mxu0 %v2681_v59  ;;  %5911 = vst [vmem:[#allocation18_spill] sm:$0xff] %v5052_v49  ;;  %v2789_v59 = vld [vmem:[#allocation2 + $0x380] sm:$0xff]  ;;  %v5943_v49 = vmov 0  }
 0x184   : > { %2835 = vmatprep.subr.mxu0 %v2678_v52  ;;  %v2786_v52 = vld [vmem:[#allocation2 + $0x368] sm:$0xff] }
 0x185   : > { %3779 = vset.pattern.permute.xlu1 %v5848_v8  ;;  %v5023_v34 = vpop.permute.xlu1 %2022  ;;  %2836 = vmatpush1.msra.mxu0 %v2677_v4 }
 0x186   : > { %2098 = vperm.xlu1 %3779, %v4689_v5   ;;  %2837 = vmatprep.subr.mxu0 %v2802_v41  ;;  %v2787_v41 = vld [vmem:[#allocation2 + $0x370] sm:$0xff] }
 0x187   : > { %3815 = vset.pattern.permute.xlu0 %v5850_v29  ;;  %2838 = vmatpush2.msra.mxu0 %v2801_v19  ;;  %v2782_v19 = vld [vmem:[#allocation2 + $0x348] sm:$0xff] }
 0x188   : > { %2314 = vperm.xlu0 %3815, %v4406_v21   ;;  %2839 = vmatprep.subr.mxu0 %v2798_v3  ;;  %v2781_v3 = vld [vmem:[#allocation2 + $0x340] sm:$0xff] }
 0x189   : > { %2840 = vmatpush2.msra.mxu0 %v2797_v55  ;;  %v2778_v55 = vld [vmem:[#allocation2 + $0x328] sm:$0xff] }
 0x18a   : > { %3780 = vset.pattern.permute.xlu1 %v5850_v29  ;;  %v5031_v47 = vpop.permute.xlu1 %2218  ;;  %2841 = vmatprep.subr.mxu0 %v2794_v18  ;;  %v2780_v18 = vld [vmem:[#allocation2 + $0x338] sm:$0xff] }
 0x18b   : > { %2294 = vperm.xlu1 %3780, %v4565_v17   ;;  %2842 = vmatpush2.msra.mxu0 %v2793_v32  ;;  %v2779_v32 = vld [vmem:[#allocation2 + $0x330] sm:$0xff] }
 0x18c   : > { %2318 = vperm.xlu0 %3815, %v4465_v58   ;;  %v2804_v58 = vld [vmem:[#allocation2 + $0x3f8] sm:$0xff]  ;;  %2843 = vmatprep.subr.mxu0 %v2790_v45 }
 0x18d   : > { %2950 = vmatprep.subr.mxu1 %v2804_v58  ;;  %2844 = vmatpush2.msra.mxu0 %v2789_v59  ;;  %v5060_v58 = vpop.permute.xlu0 %2622  ;;  %v2776_v45 = vld [vmem:[#allocation2 + $0x318] sm:$0xff]  ;;  %v2773_v59 = vld [vmem:[#allocation2 + $0x300] sm:$0xff] }
 0x18e   : > { %2951 = vmatpush2.msra.mxu1 %v2803_v43  ;;  %5912 = vst [vmem:[#allocation19_spill] sm:$0xff] %v5060_v58  ;;  %2845 = vmatprep.subr.mxu0 %v2786_v52  ;;  %v2784_v43 = vld [vmem:[#allocation2 + $0x358] sm:$0xff]  ;;  %v2775_v52 = vld [vmem:[#allocation2 + $0x310] sm:$0xff] }
 0x18f   : > { %2326 = vperm.xlu1 %3780, %v4612_v10   ;;  %v5038_v30 = vpop.permute.xlu1 %2382  ;;  %2952 = vmatprep.subr.mxu1 %v2800_v20  ;;  %v2783_v20 = vld [vmem:[#allocation2 + $0x350] sm:$0xff] }
 0x190   : > { %5909 = vst [vmem:[#allocation16_spill] sm:$0xff] %v5038_v30  ;;  %2290 = vperm.xlu0 %3815, %v4884_v28   ;;  %2953 = vmatpush2.msra.mxu1 %v2799_v14  ;;  %v5944_v30 = vmov 2  }
 0x191   : > { %2954 = vmatprep.subr.mxu1 %v2796_v22  ;;  %2846 = vmatpush2.msra.mxu0 %v2785_v27  ;;  %v2777_v22 = vld [vmem:[#allocation2 + $0x320] sm:$0xff] }
 0x192   : > { %2955 = vmatpush2.msra.mxu1 %v2795_v2  ;;  %2847 = vmatprep.subr.mxu0 %v2782_v19  ;;  %v2769_v27 = vld [vmem:[#allocation2 + $0x2e0] sm:$0xff]  ;;  %v2771_v19 = vld [vmem:[#allocation2 + $0x2f0] sm:$0xff] }
 0x193   : > { %3781 = vset.pattern.permute.xlu1 %v5846_v16  ;;  %2956 = vmatprep.subr.mxu1 %v2792_v38  ;;  %v1874_v38 = vlaneseq  ;;  %v2743_v16 = vld [vmem:[#allocation2 + $0x210] sm:$0xff] }
 0x194   : > { %2330 = vperm.xlu0 %3815, %v4835_v23   ;;  %2522 = vperm.xlu1 %3781, %v4878_v53   ;;  %v5046_v11 = vpop.permute.xlu1 %1893 }
 0x195   : > { %2957 = vmatpush2.msra.mxu1 %v2791_v63  ;;  %2848 = vmatpush2.msra.mxu0 %v2781_v3 }
 0x196   : > { %2958 = vmatprep.subr.mxu1 %v2788_v12  ;;  %2849 = vmatprep.subr.mxu0 %v2778_v55  ;;  %v2770_v12 = vld [vmem:[#allocation2 + $0x2e8] sm:$0xff]  ;;  %v2768_v55 = vld [vmem:[#allocation2 + $0x2d8] sm:$0xff] }
 0x197   : > { %2959 = vmatpush2.msra.mxu1 %v2787_v41  ;;  %2850 = vmatpush2.msra.mxu0 %v2777_v22  ;;  %v5075_v41 = vand.u32 127, %v1874_v38  ;;  %v2767_v22 = vld [vmem:[#allocation2 + $0x2d0] sm:$0xff]  ;;  %v2761_v38 = vld [vmem:[#allocation2 + $0x2a0] sm:$0xff] }
 0x198   : > { %2302 = vperm.xlu0 %3815, %v4867_v42   ;;  %3782 = vset.pattern.permute.xlu1 %v5842_v0  ;;  %v5050_v61 = vpop.permute.xlu1 %1933  ;;  %v2751_v0 = vld [vmem:[#allocation2 + $0x250] sm:$0xff] }
 0x199   : > { %2002 = vperm.xlu1 %3782, %v4867_v42   ;;  %2960 = vmatprep.subr.mxu1 %v2784_v43  ;;  %v5068_v2 = vpop.permute.xlu0 %2006  ;;  %v2766_v43 = vld [vmem:[#allocation2 + $0x2c8] sm:$0xff] }
 0x19a   : > { %2961 = vmatpush2.msra.mxu1 %v2783_v20  ;;  %5913 = vst [vmem:[#allocation20_spill] sm:$0xff] %v5068_v2 }
 0x19b   : > { %2962 = vmatprep.subr.mxu1 %v2780_v18  ;;  %v2765_v18 = vld [vmem:[#allocation2 + $0x2c0] sm:$0xff] }
 0x19c   : > { %2342 = vperm.xlu0 %3815, %v4964_v57   ;;  %2963 = vmatpush2.msra.mxu1 %v2779_v32  ;;  %v2762_v32 = vld [vmem:[#allocation2 + $0x2a8] sm:$0xff] }
 0x19d   : > { %3784 = vset.pattern.permute.xlu1 %v5840_v24  ;;  %v5057_v4 = vpop.permute.xlu1 %2122  ;;  %2964 = vmatprep.subr.mxu1 %v2776_v45  ;;  %v5084_v45 = vadd.s32 128, %v5075_v41  ;;  %v2749_v24 = vld [vmem:[#allocation2 + $0x240] sm:$0xff] }
 0x19e   : > { %2198 = vperm.xlu1 %3784, %v4689_v5   ;;  %2965 = vmatpush2.msra.mxu1 %v2775_v52  ;;  %v5077_v3 = vpop.permute.xlu0 %2594  ;;  %v2758_v52 = vld [vmem:[#allocation2 + $0x288] sm:$0xff] }
 0x19f   : > { %5915 = vst [vmem:[#allocation22_spill] sm:$0xff] %v5077_v3 }
 0x1a0   : > { %3819 = vset.pattern.permute.xlu0 %v5838_v39 }
 0x1a1   : > { %2414 = vperm.xlu0 %3819, %v4406_v21   ;;  %v2774_v21 = vld [vmem:[#allocation2 + $0x308] sm:$0xff] }
 0x1a2   : > { %2230 = vperm.xlu1 %3784, %v4835_v23   ;;  %v5065_v14 = vpop.permute.xlu1 %2286  ;;  %2851 = vmatprep.subr.mxu0 %v2774_v21  ;;  %v2764_v21 = vld [vmem:[#allocation2 + $0x2b8] sm:$0xff] }
 0x1a3   : > { %2852 = vmatpush2.msra.mxu0 %v2773_v59  ;;  %v2763_v59 = vld [vmem:[#allocation2 + $0x2b0] sm:$0xff] }
 0x1a4   : > { %2853 = vmatprep.subr.mxu0 %v2770_v12 }
 0x1a5   : > { %2422 = vperm.xlu0 %3819, %v4878_v53   ;;  %v2772_v53 = vld [vmem:[#allocation2 + $0x2f8] sm:$0xff]  ;;  %2854 = vmatpush2.msra.mxu0 %v2769_v27  ;;  %v5089_v27 = vpop.permute.xlu0 %1953 }
 0x1a6   : > { %3785 = vset.pattern.permute.xlu1 %v5838_v39  ;;  %2966 = vmatprep.subr.mxu1 %v2772_v53  ;;  %v2757_v53 = vld [vmem:[#allocation2 + $0x280] sm:$0xff]  ;;  %5917 = vst [vmem:[#allocation24_spill] sm:$0xff] %v5089_v27  ;;  %v2752_v39 = vld [vmem:[#allocation2 + $0x258] sm:$0xff] }
 0x1a7   : > { %2426 = vperm.xlu1 %3785, %v4612_v10   ;;  %v5072_v63 = vpop.permute.xlu1 %2482  ;;  %2967 = vmatpush2.msra.mxu1 %v2771_v19  ;;  %v2759_v19 = vld [vmem:[#allocation2 + $0x290] sm:$0xff] }
 0x1a8   : > { %5914 = vst [vmem:[#allocation21_spill] sm:$0xff] %v5072_v63  ;;  %2855 = vmatprep.subr.mxu0 %v2766_v43  ;;  %2968 = vmatprep.subr.mxu1 %v2768_v55  ;;  %v2754_v43 = vld [vmem:[#allocation2 + $0x268] sm:$0xff]  ;;  %v1978_v55 = vand.u32 64, %v5084_v45 }
 0x1a9   : > { %2394 = vperm.xlu0 %3819, %v4565_v17   ;;  %2856 = vmatpush2.msra.mxu0 %v2765_v18  ;;  %v2756_v18 = vld [vmem:[#allocation2 + $0x278] sm:$0xff] }
 0x1aa   : > { %2969 = vmatpush2.msra.mxu1 %v2767_v22  ;;  %2857 = vmatprep.subr.mxu0 %v2762_v32  ;;  %v2753_v22 = vld [vmem:[#allocation2 + $0x260] sm:$0xff]  ;;  %v2755_v32 = vld [vmem:[#allocation2 + $0x270] sm:$0xff]  ;;  %vm5097_vm1 = vcmp.ne.s32.totalorder %v1978_v55, 0 }
 0x1ab   : > { %3786 = vset.pattern.permute.xlu1 %v5844_v6  ;;  %v5080_v20 = vpop.permute.xlu1 %2514  ;;  %2970 = vmatprep.subr.mxu1 %v2764_v21  ;;  %v1977_v21 = vand.u32 64, %v5075_v41  ;;  %v2745_v55 = vld [vmem:[#allocation2 + $0x220] sm:$0xff]  ;;  %v2747_v6 = vld [vmem:[#allocation2 + $0x230] sm:$0xff] }
 0x1ac   : > { %5916 = vst [vmem:[#allocation23_spill] sm:$0xff] %v5080_v20  ;;  %2590 = vperm.xlu1 %3786, %v4884_v28   ;;  %v2760_v28 = vld [vmem:[#allocation2 + $0x298] sm:$0xff]  ;;  %2858 = vmatpush2.msra.mxu0 %v2761_v38 }
 0x1ad   : > { %2971 = vmatpush2.msra.mxu1 %v2763_v59  ;;  %2859 = vmatprep.subr.mxu0 %v2758_v52  ;;  %v2077_v52 = vand.u32 32, %v5075_v41  ;;  %vm5105_vm3 = vcmp.ne.s32.totalorder %v1977_v21, 0 }
 0x1ae   : > { %2972 = vmatprep.subr.mxu1 %v2760_v28  ;;  %2860 = vmatpush2.msra.mxu0 %v2757_v53  ;;  %v2078_v28 = vand.u32 32, %v5084_v45  ;;  %v2746_v53 = vld [vmem:[#allocation2 + $0x228] sm:$0xff] }
 0x1af   : > { %2973 = vmatpush2.msra.mxu1 %v2759_v19  ;;  %2861 = vmatprep.subr.mxu0 %v2754_v43  ;;  %v2748_v43 = vld [vmem:[#allocation2 + $0x238] sm:$0xff]  ;;  %vm5114_vm5 = vcmp.ne.s32.totalorder %v2077_v52, 0 }
 0x1b0   : > { %3788 = vset.pattern.permute.xlu1 %v5836_v1  ;;  %v5087_v12 = vpop.permute.xlu1 %2026  ;;  %v2750_v1 = vld [vmem:[#allocation2 + $0x248] sm:$0xff]  ;;  %2974 = vmatprep.subr.mxu1 %v2756_v18  ;;  %vm5118_vm6 = vcmp.ne.s32.totalorder %v2078_v28, 0 }
 0x1b1   : > { %1908 = vperm.xlu1 %3788, %v4867_v42   ;;  %2862 = vmatpush2.msra.mxu0 %v2753_v22  ;;  %v2046_v22 = vsel %vm5097_vm1, %v4953_v54, %v4960_v33 }
 0x1b2   : > { %2975 = vmatpush2.msra.mxu1 %v2755_v32  ;;  %2863 = vmatprep.subr.mxu0 %v2750_v1  ;;  %v2742_v32 = vld [vmem:[#allocation2 + $0x208] sm:$0xff]  ;;  %v2744_v1 = vld [vmem:[#allocation2 + $0x218] sm:$0xff]  ;;  %v2062_v52 = vmul.f32 %v2046_v22, %v4996_v46  ;;  %v5929_v46 = vmov 4  }
 0x1b3   : > { %2976 = vmatprep.subr.mxu1 %v2752_v39  ;;  %2864 = vmatpush2.msra.mxu0 %v2749_v24  ;;  %v2741_v24 = vld [vmem:[#allocation2 + $0x200] sm:$0xff] }
 0x1b4   : > { %2977 = vmatpush2.msra.mxu1 %v2751_v0  ;;  %2865 = vmatprep.subr.mxu0 %v2746_v53  ;;  %v2045_v53 = vsel %vm5105_vm3, %v4953_v54, %v4960_v33 }
 0x1b5   : > { %1948 = vperm.xlu1 %3788, %v4789_v13   ;;  %v5095_v38 = vpop.permute.xlu1 %2190  ;;  %2978 = vmatprep.subr.mxu1 %v2748_v43  ;;  %v2061_v28 = vmul.f32 %v2045_v53, %v5012_v50  ;;  %v2048_v43 = vsel %vm5097_vm1, %v4975_v40, %v4981_v15 }
 0x1b6   : > { %2866 = vmatpush2.msra.mxu0 %v2745_v55  ;;  %2979 = vmatpush2.msra.mxu1 %v2747_v6  ;;  %v2064_v55 = vmul.f32 %v2048_v43, %v5004_v62  ;;  %v5932_v62 = vmov 7   ;;  %v5937_v43 = vmov 3  }
 0x1b7   : > { %v5103_v19 = vpop.permute.xlu0 %1918  ;;  %2867 = vmatprep.subr.mxu0 %v2742_v32  ;;  %2980 = vmatprep.subr.mxu1 %v2744_v1 }
 0x1b8   : > { %5920 = vst [vmem:[#allocation25_spill] sm:$0xff] %v5103_v19  ;;  %2868 = vmatpush2.msra.mxu0 %v2741_v24  ;;  %2981 = vmatpush2.msra.mxu1 %v2743_v16  ;;  %v5930_v16 = vmov 6  }
 0x1b9   : > { %3789 = vset.pattern.permute.xlu1 %v5848_v8  ;;  %2434 = vperm.xlu0 %3819, %v4789_v13  }
 0x1ba   : > { %2134 = vperm.xlu1 %3789, %v4789_v13   ;;  %v5123_v0 = vpop.permute.xlu1 %2386 }
 0x1bc   : > { %v2115_v8 = vpop.permute.xlu0 %2114 }
 0x1bd   : > { %v2145_v29 = vsel %vm5114_vm5, %v4969_v9, %v2115_v8  ;;  %v2146_v6 = vsel %vm5118_vm6, %v4969_v9, %v2115_v8  ;;  %2410 = vperm.xlu0 %3819, %v4941_v37  }
 0x1be   : > { %v5141_v54 = vmul.f32 %v2145_v29, %v2061_v28  ;;  %v5143_v33 = vmul.f32 %v2146_v6, %v2062_v52  ;;  %3790 = vset.pattern.permute.xlu1 %v5929_v46  ;;  %v5146_v50 = vpop.permute.xlu1 %2418  ;;  %v5935_v52 = vmov 1  }
 0x1bf   : > { %2298 = vperm.xlu1 %3790, %v4689_v5  }
 0x1c0   : > { %5927 = vst [vmem:[#allocation26_spill] sm:$0xff] %v5141_v54  ;;  %5928 = vst [vmem:[#allocation27_spill] sm:$0xff] %v5143_v33  ;;  %v5151_v22 = vpop.permute.xlu0 %2086 }
 0x1c1   : > { %v2148_v8 = vsel %vm5118_vm6, %v5151_v22, %v5001_v25  ;;  %3821 = vset.pattern.permute.xlu0 %v5932_v62 }
 0x1c2   : > { %v5157_v29 = vmul.f32 %v2148_v8, %v2064_v55  ;;  %2602 = vperm.xlu0 %3821, %v4867_v42   ;;  %v5938_v8 = vmov 5  }
 0x1c3   : > { %3791 = vset.pattern.permute.xlu1 %v5930_v16  ;;  %v5161_v9 = vpop.permute.xlu1 %2614 }
 0x1c4   : > { %5931 = vst [vmem:[#allocation28_spill] sm:$0xff] %v5161_v9  ;;  %v5163_v32 = vpop.permute.xlu0 %2090  ;;  %2494 = vperm.xlu1 %3791, %v4565_v17  }
 0x1c6   : > { %2638 = vperm.xlu0 %3821, %v4923_v7  }
 0x1c8   : > { %v5168_v1 = vpop.permute.xlu0 %2130  ;;  %2526 = vperm.xlu1 %3791, %v4612_v10   ;;  %v5171_v24 = vpop.permute.xlu1 %1898 }
 0x1c9   : > { %5933 = vst [vmem:[#allocation29_spill] sm:$0xff] %v5168_v1 }
 0x1ca   : > { %2610 = vperm.xlu0 %3821, %v4941_v37  }
 0x1cc   : > { %v5174_v53 = vpop.permute.xlu0 %2102  ;;  %3793 = vset.pattern.permute.xlu1 %v5935_v52 }
 0x1cd   : > { %5934 = vst [vmem:[#allocation30_spill] sm:$0xff] %v5174_v53  ;;  %2038 = vperm.xlu1 %3793, %v4923_v7   ;;  %v5178_v28 = vpop.permute.xlu1 %2094 }
 0x1d0   : > { %v5181_v17 = vpop.permute.xlu0 %2142 }
 0x1d1   : > { %5936 = vst [vmem:[#allocation31_spill] sm:$0xff] %v5181_v17  ;;  %3794 = vset.pattern.permute.xlu1 %v5937_v43  ;;  %v5184_v6 = vpop.permute.xlu1 %2126 }
 0x1d2   : > { %2202 = vperm.xlu1 %3794, %v4867_v42  }
 0x1d5   : > { %v5187_v55 = vpop.permute.xlu0 %2518 }
 0x1d6   : > { %3795 = vset.pattern.permute.xlu1 %v5938_v8  ;;  %v5190_v19 = vpop.permute.xlu1 %2322 }
 0x1d7   : > { %5939 = vst [vmem:[#allocation32_spill] sm:$0xff] %v5190_v19  ;;  %2398 = vperm.xlu1 %3795, %v4689_v5  }
 0x1d9   : > { %v5193_v27 = vpop.permute.xlu0 %2490 }
 0x1da   : > { %5940 = vst [vmem:[#allocation33_spill] sm:$0xff] %v5193_v27 }
 0x1db   : > { %2430 = vperm.xlu1 %3795, %v4835_v23   ;;  %v5196_v2 = vpop.permute.xlu1 %2486 }
 0x1dd   : > { %v5198_v17 = vpop.permute.xlu0 %2530 }
 0x1de   : > { %5941 = vst [vmem:[#allocation34_spill] sm:$0xff] %v5198_v17 }
 0x1df   : > { %3797 = vset.pattern.permute.xlu1 %v5932_v62 }
 0x1e0   : > { %2626 = vperm.xlu1 %3797, %v4612_v10   ;;  %v5202_v3 = vpop.permute.xlu1 %1998 }
 0x1e1   : > { %v5204_v53 = vpop.permute.xlu0 %2502 }
 0x1e2   : > { %5942 = vst [vmem:[#allocation35_spill] sm:$0xff] %v5204_v53 }
 0x1e4   : > { %3798 = vset.pattern.permute.xlu1 %v5943_v49  ;;  %v5207_v58 = vpop.permute.xlu1 %2030 }
 0x1e5   : > { %1913 = vperm.xlu1 %3798, %v4909_v48  }
 0x1e6   : > { %v5210_v27 = vpop.permute.xlu0 %2182 }
 0x1e9   : > { %3800 = vset.pattern.permute.xlu1 %v5944_v30  ;;  %v5213_v19 = vpop.permute.xlu1 %2226 }
 0x1ea   : > { %v2187_v17 = vpop.permute.xlu0 %2186  ;;  %2106 = vperm.xlu1 %3800, %v4909_v48  }
 0x1ee   : > { %v5216_v10 = vpop.permute.xlu0 %2222  ;;  %2138 = vperm.xlu1 %3800, %v4923_v7   ;;  %v5219_v53 = vpop.permute.xlu1 %2390 }
 0x1ef   : > { %5945 = vst [vmem:[#allocation36_spill] sm:$0xff] %v5219_v53 }
 0x1f2   : > { %v5221_v26 = vpop.permute.xlu0 %2194  ;;  %3801 = vset.pattern.permute.xlu1 %v5929_v46 }
 0x1f3   : > { %2334 = vperm.xlu1 %3801, %v4789_v13   ;;  %v5225_v9 = vpop.permute.xlu1 %2586  ;;  %v2177_v13 = vand.u32 16, %v5075_v41 }
 0x1f4   : > { %5946 = vst [vmem:[#allocation37_spill] sm:$0xff] %v5225_v9 }
 0x1f5   : > { %vm5275_vm7 = vcmp.ne.s32.totalorder %v2177_v13, 0 }
 0x1f6   : > { %v5227_v30 = vpop.permute.xlu0 %2234  ;;  %v2247_v13 = vsel %vm5275_vm7, %v2187_v17, %v5031_v47 }
 0x1f7   : > { %5947 = vst [vmem:[#allocation38_spill] sm:$0xff] %v5227_v30  ;;  %3802 = vset.pattern.permute.xlu1 %v5930_v16  ;;  %v5230_v63 = vpop.permute.xlu1 %2618  ;;  %v2047_v30 = vsel %vm5105_vm3, %v4975_v40, %v4981_v15  ;;  %v2178_v16 = vand.u32 16, %v5084_v45  ;;  %v2277_v40 = vand.u32 8, %v5075_v41 }
 0x1f8   : > { %5948 = vst [vmem:[#allocation39_spill] sm:$0xff] %v5230_v63  ;;  %2498 = vperm.xlu1 %3802, %v4689_v5   ;;  %v2063_v9 = vmul.f32 %v2047_v30, %v4994_v60  ;;  %v2477_v63 = vand.u32 2, %v5075_v41  ;;  %v2147_v60 = vsel %vm5114_vm5, %v5151_v22, %v5001_v25  ;;  %v2278_v30 = vand.u32 8, %v5084_v45 }
 0x1f9   : > { %vm5279_vm8 = vcmp.ne.s32.totalorder %v2178_v16, 0  ;;  %vm5316_vm11 = vcmp.ne.s32.totalorder %v2277_v40, 0 }
 0x1fa   : > { %v5233_v48 = vpop.permute.xlu0 %2206  ;;  %v2248_v16 = vsel %vm5279_vm8, %v2187_v17, %v5031_v47  ;;  %vm5320_vm4 = vcmp.ne.s32.totalorder %v2278_v30, 0  ;;  %vm5340_vm12 = vcmp.ne.s32.totalorder %v2477_v63, 0 }
 0x1fb   : > { %5949 = vst [vmem:[#allocation40_spill] sm:$0xff] %v5233_v48  ;;  %v2377_v48 = vand.u32 4, %v5075_v41 }
 0x1fc   : > { %3803 = vset.pattern.permute.xlu1 %v5935_v52  ;;  %v1944_v53 = vpop.permute.xlu1 %1943  ;;  %v2378_v52 = vand.u32 4, %v5084_v45 }
 0x1fd   : > { %2010 = vperm.xlu1 %3803, %v4941_v37   ;;  %v2478_v37 = vand.u32 2, %v5084_v45  ;;  %vm5287_vm9 = vcmp.ne.s32.totalorder %v2377_v48, 0  ;;  %v2052_v48 = vsel %vm5097_vm1, %v5016_v51, %v5087_v12 }
 0x1fe   : > { %v5237_v46 = vpop.permute.xlu0 %2242  ;;  %vm5291_vm10 = vcmp.ne.s32.totalorder %v2378_v52, 0  ;;  %v2152_v52 = vsel %vm5118_vm6, %v5178_v28, %v5184_v6 }
 0x1ff   : > { %5950 = vst [vmem:[#allocation41_spill] sm:$0xff] %v5237_v46  ;;  %v2053_v46 = vsel %vm5105_vm3, %v5202_v3, %v5207_v58  ;;  %vm5344_vm13 = vcmp.ne.s32.totalorder %v2478_v37, 0 }
 0x200   : > { %v2069_v15 = vmul.f32 %v2053_v46, %v1944_v53  ;;  %v2051_v53 = vsel %vm5105_vm3, %v5016_v51, %v5087_v12 }
 0x201   : > { %2042 = vperm.xlu1 %3803, %v4964_v57   ;;  %v5256_v20 = vpop.permute.xlu1 %2098  ;;  %v2067_v47 = vmul.f32 %v2051_v53, %v5035_v44  ;;  %v2251_v44 = vsel %vm5275_vm7, %v5221_v26, %v5213_v19 }
 0x202   : > { %v2153_v36 = vsel %vm5114_vm5, %v5256_v20, %v5168_v1  ;;  %v2163_v1 = vmul.f32 %v2147_v60, %v2063_v9  ;;  %v2068_v9 = vmul.f32 %v2052_v48, %v5171_v24  ;;  %v2252_v24 = vsel %vm5279_vm8, %v5221_v26, %v5213_v19 }
 0x203   : > { %v5283_v22 = vpop.permute.xlu0 %2314  ;;  %v5285_v54 = vmul.f32 %v2153_v36, %v2069_v15  ;;  %v2151_v36 = vsel %vm5114_vm5, %v5178_v28, %v5184_v6  ;;  %v2264_v28 = vmul.f32 %v2248_v16, %v5157_v29  ;;  %v2447_v19 = vsel %vm5287_vm9, %v5123_v0, %v5146_v50 }
 0x204   : > { %v2263_v15 = vmul.f32 %v2247_v13, %v2163_v1  ;;  %v2167_v40 = vmul.f32 %v2151_v36, %v2067_v47  ;;  %v2168_v60 = vmul.f32 %v2152_v52, %v2068_v9 }
 0x205   : > { %3804 = vset.pattern.permute.xlu1 %v5937_v43 }
 0x206   : > { %2238 = vperm.xlu1 %3804, %v4923_v7   ;;  %v2295_v12 = vpop.permute.xlu1 %2294  ;;  %v2267_v63 = vmul.f32 %v2251_v44, %v2167_v40  ;;  %v2268_v16 = vmul.f32 %v2252_v24, %v2168_v60  ;;  %v2049_v60 = vsel %vm5105_vm3, %v5019_v56, %v5023_v34  ;;  %v6005_v39 = vld [vmem:[#allocation41_spill] sm:$0xff] }
 0x207   : > { %v2319_v6 = vpop.permute.xlu0 %2318 }
 0x208   : > { %v2347_v30 = vsel %vm5316_vm11, %v5065_v14, %v2319_v6  ;;  %v2348_v29 = vsel %vm5320_vm4, %v5065_v14, %v2319_v6  ;;  %v2448_v14 = vsel %vm5291_vm10, %v5123_v0, %v5146_v50  ;;  %v2547_v0 = vsel %vm5340_vm12, %v5196_v2, %v5187_v55 }
 0x209   : > { %v2363_v13 = vmul.f32 %v2347_v30, %v2263_v15  ;;  %v2364_v26 = vmul.f32 %v2348_v29, %v2264_v28  ;;  %v2548_v50 = vsel %vm5344_vm13, %v5196_v2, %v5187_v55  ;;  %v2577_v2 = vand.u32 1, %v5075_v41 }
 0x20a   : > { %3805 = vset.pattern.permute.xlu1 %v5938_v8  ;;  %v2327_v37 = vpop.permute.xlu1 %2326  ;;  %v2578_v55 = vand.u32 1, %v5084_v45  ;;  %v2065_v30 = vmul.f32 %v2049_v60, %v5050_v61  ;;  %v2149_v41 = vsel %vm5114_vm5, %v5163_v32, %v5057_v4  ;;  %v2245_v45 = vsel %vm5275_vm7, %v5210_v27, %v4987_v31 }
 0x20b   : > { %v2463_v48 = vmul.f32 %v2447_v19, %v2363_v13  ;;  %v2464_v36 = vmul.f32 %v2448_v14, %v2364_v26  ;;  %v5357_v52 = vpop.permute.xlu0 %2290  ;;  %v2351_v47 = vsel %vm5316_vm11, %v2295_v12, %v2327_v37  ;;  %v2352_v9 = vsel %vm5320_vm4, %v2295_v12, %v2327_v37  ;;  %2402 = vperm.xlu1 %3805, %v4867_v42   ;;  %v5971_v13 = vld [vmem:[#allocation14_spill] sm:$0xff]  ;;  %v5974_v37 = vld [vmem:[#allocation17_spill] sm:$0xff] }
 0x20c   : > { %v5372_v15 = vmul.f32 %v2351_v47, %v2267_v63  ;;  %v5374_v28 = vmul.f32 %v2352_v9, %v2268_v16  ;;  %vm5425_vm14 = vcmp.ne.s32.totalorder %v2577_v2, 0  ;;  %vm5433_vm2 = vcmp.ne.s32.totalorder %v2578_v55, 0  ;;  %v5972_v19 = vld [vmem:[#allocation26_spill] sm:$0xff]  ;;  %v5973_v63 = vld [vmem:[#allocation27_spill] sm:$0xff] }
 0x20d   : > { %v5376_v6 = vmul.f32 %v2548_v50, %v2464_v36  ;;  %v5378_v44 = vmul.f32 %v2547_v0, %v2463_v48  ;;  %v2261_v14 = vmul.f32 %v2245_v45, %v5972_v19  ;;  %v5976_v48 = vld [vmem:[#allocation21_spill] sm:$0xff]  ;;  %v5978_v47 = vld [vmem:[#allocation15_spill] sm:$0xff] }
 0x20e   : > { %v5985_v19 = vld [vmem:[#allocation39_spill] sm:$0xff] }
 0x20f   : > { %v5380_v12 = vpop.permute.xlu0 %2330  ;;  %3806 = vset.pattern.permute.xlu1 %v5932_v62  ;;  %v5383_v42 = vpop.permute.xlu1 %2522 }
 0x210   : > { %2598 = vperm.xlu1 %3806, %v4689_v5   ;;  %v2050_v5 = vsel %vm5097_vm1, %v5019_v56, %v5023_v34  ;;  %v2246_v56 = vsel %vm5279_vm8, %v5210_v27, %v4987_v31  ;;  %v2054_v34 = vsel %vm5097_vm1, %v5202_v3, %v5207_v58  ;;  %v2165_v58 = vmul.f32 %v2149_v41, %v2065_v30 }
 0x211   : > { %v2066_v29 = vmul.f32 %v2050_v5, %v5046_v11  ;;  %v2250_v11 = vsel %vm5279_vm8, %v5095_v38, %v5216_v10  ;;  %v2345_v3 = vsel %vm5316_vm11, %v5009_v35, %v5283_v22  ;;  %v2346_v27 = vsel %vm5320_vm4, %v5009_v35, %v5283_v22  ;;  %v5977_v22 = vld [vmem:[#allocation28_spill] sm:$0xff]  ;;  %v5979_v5 = vld [vmem:[#allocation29_spill] sm:$0xff] }
 0x212   : > { %v2262_v16 = vmul.f32 %v2246_v56, %v5973_v63  ;;  %v2645_v9 = vsel %vm5425_vm14, %v5978_v47, %v5977_v22  ;;  %v2361_v2 = vmul.f32 %v2345_v3, %v2261_v14  ;;  %v5980_v30 = vsel %vm5118_vm6, %v5256_v20, %v5979_v5  ;;  %v5986_v14 = vld [vmem:[#allocation37_spill] sm:$0xff] }
 0x213   : > { %v5386_v24 = vpop.permute.xlu0 %2302  ;;  %v5983_v20 = vmov 2   ;;  %v2648_v63 = vsel %vm5433_vm2, %v5986_v14, %v5985_v19 }
 0x214   : > { %2630 = vperm.xlu1 %3806, %v4835_v23   ;;  %v5391_v40 = vpop.permute.xlu1 %2002  ;;  %v2150_v23 = vsel %vm5118_vm6, %v5163_v32, %v5057_v4  ;;  %v2249_v32 = vsel %vm5275_vm7, %v5095_v38, %v5216_v10  ;;  %v2070_v38 = vmul.f32 %v2054_v34, %v5974_v37  ;;  %v5975_v10 = vld [vmem:[#allocation23_spill] sm:$0xff]  ;;  %v2362_v55 = vmul.f32 %v2346_v27, %v2262_v16  ;;  %v5982_v34 = vld [vmem:[#allocation16_spill] sm:$0xff] }
 0x215   : > { %v2545_v36 = vsel %vm5340_vm12, %v5976_v48, %v5975_v10  ;;  %v2546_v35 = vsel %vm5344_vm13, %v5976_v48, %v5975_v10  ;;  %v2265_v0 = vmul.f32 %v2249_v32, %v2165_v58  ;;  %v2646_v16 = vsel %vm5433_vm2, %v5978_v47, %v5977_v22 }
 0x216   : > { %v2170_v41 = vmul.f32 %v5980_v30, %v2070_v38 }
 0x217   : > { %v5422_v61 = vpop.permute.xlu0 %2342 }
 0x218   : > { %3808 = vset.pattern.permute.xlu1 %v5943_v49  ;;  %v2166_v49 = vmul.f32 %v2150_v23, %v2066_v29  ;;  %v5981_v23 = vld [vmem:[#allocation32_spill] sm:$0xff] }
 0x219   : > { %1958 = vperm.xlu1 %3808, %v5971_v13   ;;  %v2199_v26 = vpop.permute.xlu1 %2198  ;;  %v2349_v45 = vsel %vm5316_vm11, %v5357_v52, %v5981_v23  ;;  %v2350_v56 = vsel %vm5320_vm4, %v5357_v52, %v5981_v23  ;;  %v5984_v52 = vld [vmem:[#allocation13_spill] sm:$0xff] }
 0x21a   : > { %v2266_v50 = vmul.f32 %v2250_v11, %v2166_v49  ;;  %v2365_v10 = vmul.f32 %v2349_v45, %v2265_v0  ;;  %v5988_v23 = vld [vmem:[#allocation33_spill] sm:$0xff]  ;;  %v2647_v45 = vsel %vm5425_vm14, %v5986_v14, %v5985_v19 }
 0x21c   : > { %v2415_v60 = vpop.permute.xlu0 %2414  ;;  %v2366_v48 = vmul.f32 %v2350_v56, %v2266_v50  ;;  %v5989_v50 = vmov 4   ;;  %v5990_v56 = vld [vmem:[#allocation12_spill] sm:$0xff] }
 0x21d   : > { %v2445_v29 = vsel %vm5287_vm9, %v5982_v34, %v2415_v60  ;;  %v2446_v32 = vsel %vm5291_vm10, %v5982_v34, %v2415_v60  ;;  %3809 = vset.pattern.permute.xlu1 %v5983_v20  ;;  %v2231_v58 = vpop.permute.xlu1 %2230  ;;  %v5987_v60 = vld [vmem:[#allocation36_spill] sm:$0xff]  ;;  %v2664_v34 = vmul.f32 %v2648_v63, %v5376_v6  ;;  %v5991_v20 = vld [vmem:[#allocation19_spill] sm:$0xff] }
 0x21e   : > { %v2461_v11 = vmul.f32 %v2445_v29, %v2361_v2  ;;  %v2462_v3 = vmul.f32 %v2446_v32, %v2362_v55  ;;  %v2253_v27 = vsel %vm5275_vm7, %v2199_v26, %v2231_v58  ;;  %v2254_v49 = vsel %vm5279_vm8, %v2199_v26, %v2231_v58  ;;  %2110 = vperm.xlu1 %3809, %v5984_v52  }
 0x21f   : > { %v5500_v37 = vmul.f32 %v2253_v27, %v5285_v54  ;;  %v2270_v38 = vmul.f32 %v2254_v49, %v2170_v41  ;;  %v2549_v54 = vsel %vm5340_vm12, %v5988_v23, %v5383_v42  ;;  %v5992_v27 = vmov 6   ;;  %v5994_v49 = vld [vmem:[#allocation18_spill] sm:$0xff] }
 0x220   : > { %v2561_v2 = vmul.f32 %v2545_v36, %v2461_v11  ;;  %v2423_v26 = vpop.permute.xlu0 %2422  ;;  %v2562_v55 = vmul.f32 %v2546_v35, %v2462_v3  ;;  %v2550_v36 = vsel %vm5344_vm13, %v5988_v23, %v5383_v42  ;;  %v2056_v19 = vsel %vm5097_vm1, %v5391_v40, %v5994_v49 }
 0x221   : > { %v2449_v5 = vsel %vm5287_vm9, %v5987_v60, %v2423_v26  ;;  %v2450_v30 = vsel %vm5291_vm10, %v5987_v60, %v2423_v26  ;;  %v5995_v26 = vld [vmem:[#allocation30_spill] sm:$0xff] }
 0x222   : > { %v2465_v22 = vmul.f32 %v2449_v5, %v2365_v10  ;;  %v2466_v35 = vmul.f32 %v2450_v30, %v2366_v48  ;;  %v2662_v47 = vmul.f32 %v2646_v16, %v2562_v55  ;;  %v2661_v0 = vmul.f32 %v2645_v9, %v2561_v2  ;;  %3811 = vset.pattern.permute.xlu1 %v5989_v50  ;;  %v5517_v41 = vpop.permute.xlu1 %2426 }
 0x223   : > { %2306 = vperm.xlu1 %3811, %v5990_v56   ;;  %v2663_v9 = vmul.f32 %v2647_v45, %v5378_v44  ;;  %v5993_v44 = vld [vmem:[#allocation11_spill] sm:$0xff]  ;;  %v2055_v16 = vsel %vm5105_vm3, %v5391_v40, %v5994_v49 }
 0x224   : > { %2869 = vmatprep.mubr.f32.mxu0 %v2662_v47  ;;  %2982 = vmatprep.mubr.f32.mxu1 %v2662_v47  ;;  %v2565_v42 = vmul.f32 %v2549_v54, %v2465_v22  ;;  %v2566_v29 = vmul.f32 %v2550_v36, %v2466_v35 }
 0x225   : > { %2870 = vmatmul.mubr.f32.vlgmr.msra.gmra.mxu0 %v2661_v0  ;;  %2983 = vmatmul.mubr.f32.vlgmr.msra.gmra.mxu1 %v2661_v0 }
 0x226   : > { %2875 = vmatprep.mubr.f32.mxu0 %v2664_v34  ;;  %2988 = vmatprep.mubr.f32.mxu1 %v2664_v34 }
 0x227   : > { %2338 = vperm.xlu1 %3811, %v4923_v7   ;;  %v2591_v32 = vpop.permute.xlu1 %2590 }
 0x228   : > { %v2649_v58 = vsel %vm5425_vm14, %v2591_v32, %v5991_v20  ;;  %v2650_v11 = vsel %vm5433_vm2, %v2591_v32, %v5991_v20 }
 0x229   : > { %2876 = vmatmul.mubr.f32.gmra.mxu0 %v2663_v9  ;;  %2989 = vmatmul.mubr.f32.gmra.mxu1 %v2663_v9  ;;  %v2665_v6 = vmul.f32 %v2649_v58, %v2565_v42  ;;  %v2666_v3 = vmul.f32 %v2650_v11, %v2566_v29 }
 0x22b   : > { %3813 = vset.pattern.permute.xlu1 %v5992_v27  ;;  %2881 = vmatprep.mubr.f32.mxu0 %v2666_v3 }
 0x22c   : > { %2994 = vmatprep.mubr.f32.mxu1 %v2666_v3  ;;  %2534 = vperm.xlu1 %3813, %v5993_v44   ;;  %v1909_v14 = vpop.permute.xlu1 %1908  ;;  %v5997_v3 = vld [vmem:[#allocation22_spill] sm:$0xff] }
 0x22d   : > { %2882 = vmatmul.mubr.f32.gmra.mxu0 %v2665_v6  ;;  %2995 = vmatmul.mubr.f32.gmra.mxu1 %v2665_v6  ;;  %v2072_v63 = vmul.f32 %v2056_v19, %v1909_v14 }
 0x230   : > { %3814 = vset.pattern.permute.xlu1 %v5937_v43  ;;  %v1949_v10 = vpop.permute.xlu1 %1948 }
 0x231   : > { %v2071_v48 = vmul.f32 %v2055_v16, %v1949_v10  ;;  %2210 = vperm.xlu1 %3814, %v5984_v52   ;;  %v5999_v16 = vld [vmem:[#allocation24_spill] sm:$0xff] }
 0x235   : > { %3816 = vset.pattern.permute.xlu1 %v5938_v8  ;;  %v2135_v2 = vpop.permute.xlu1 %2134 }
 0x236   : > { %v2155_v55 = vsel %vm5114_vm5, %v5995_v26, %v2135_v2  ;;  %v2156_v43 = vsel %vm5118_vm6, %v5995_v26, %v2135_v2  ;;  %2406 = vperm.xlu1 %3816, %v5990_v56  }
 0x237   : > { %v2171_v60 = vmul.f32 %v2155_v55, %v2071_v48  ;;  %v2172_v5 = vmul.f32 %v2156_v43, %v2072_v63 }
 0x23a   : > { %2438 = vperm.xlu1 %3816, %v4923_v7   ;;  %v2299_v40 = vpop.permute.xlu1 %2298 }
 0x23b   : > { %v2353_v30 = vsel %vm5316_vm11, %v2299_v40, %v5380_v12  ;;  %v2354_v23 = vsel %vm5320_vm4, %v2299_v40, %v5380_v12  ;;  %v3093_v40 = vld [vmem:[#allocation5 + $0xf0] sm:$0xff] }
 0x23c   : > { %v5561_v54 = vmul.f32 %v2353_v30, %v5500_v37  ;;  %v5563_v36 = vmul.f32 %v2354_v23, %v2270_v38  ;;  %v5996_v37 = vld [vmem:[#allocation38_spill] sm:$0xff]  ;;  %v3125_v30 = vld [vmem:[#allocation5 + $0x1f0] sm:$0xff] }
 0x23e   : > { %3817 = vset.pattern.permute.xlu1 %v5932_v62 }
 0x23f   : > { %2634 = vperm.xlu1 %3817, %v5993_v44   ;;  %v2495_v22 = vpop.permute.xlu1 %2494 }
 0x243   : > { %3818 = vset.pattern.permute.xlu1 %v5989_v50  ;;  %v2527_v35 = vpop.permute.xlu1 %2526 }
 0x244   : > { %2310 = vperm.xlu1 %3818, %v5984_v52   ;;  %v2552_v32 = vsel %vm5344_vm13, %v2495_v22, %v2527_v35 }
 0x248   : > { %3820 = vset.pattern.permute.xlu1 %v5992_v27  ;;  %v2039_v47 = vpop.permute.xlu1 %2038 }
 0x249   : > { %2506 = vperm.xlu1 %3820, %v5990_v56  }
 0x24d   : > { %2538 = vperm.xlu1 %3820, %v4923_v7   ;;  %v2203_v12 = vpop.permute.xlu1 %2202  ;;  %v2395_v7 = vpop.permute.xlu0 %2394 }
 0x24e   : > { %v2255_v38 = vsel %vm5275_vm7, %v2203_v12, %v5996_v37  ;;  %v2256_v0 = vsel %vm5279_vm8, %v2203_v12, %v5996_v37  ;;  %v2451_v42 = vsel %vm5287_vm9, %v2395_v7, %v5517_v41  ;;  %v2452_v29 = vsel %vm5291_vm10, %v2395_v7, %v5517_v41  ;;  %v3108_v7 = vld [vmem:[#allocation5 + $0x168] sm:$0xff] }
 0x24f   : > { %v5578_v50 = vmul.f32 %v2255_v38, %v2171_v60  ;;  %v5580_v45 = vmul.f32 %v2256_v0, %v2172_v5  ;;  %v2467_v20 = vmul.f32 %v2451_v42, %v5372_v15  ;;  %v2468_v58 = vmul.f32 %v2452_v29, %v5374_v28  ;;  %v5998_v15 = vld [vmem:[#allocation20_spill] sm:$0xff]  ;;  %v3078_v60 = vld [vmem:[#allocation5 + $0x78] sm:$0xff] }
 0x250   : > { %v2058_v28 = vsel %vm5097_vm1, %v5998_v15, %v2039_v47  ;;  %v3110_v5 = vld [vmem:[#allocation5 + $0x178] sm:$0xff]  ;;  %v3124_v38 = vld [vmem:[#allocation5 + $0x1e8] sm:$0xff] }
 0x251   : > { %3822 = vset.pattern.permute.xlu1 %v5938_v8  ;;  %v2551_v8 = vsel %vm5340_vm12, %v2495_v22, %v2527_v35  ;;  %v2568_v6 = vmul.f32 %v2552_v32, %v2468_v58  ;;  %v3077_v22 = vld [vmem:[#allocation5 + $0x70] sm:$0xff]  ;;  %v3076_v0 = vld [vmem:[#allocation5 + $0x68] sm:$0xff]  ;;  %v3123_v32 = vld [vmem:[#allocation5 + $0x1e0] sm:$0xff] }
 0x252   : > { %2442 = vperm.xlu1 %3822, %v5971_v13   ;;  %v5584_v34 = vpop.permute.xlu1 %2398  ;;  %v2567_v11 = vmul.f32 %v2551_v8, %v2467_v20  ;;  %v3109_v35 = vld [vmem:[#allocation5 + $0x170] sm:$0xff]  ;;  %v3091_v8 = vld [vmem:[#allocation5 + $0xe0] sm:$0xff] }
 0x253   : > { %v3075_v20 = vld [vmem:[#allocation5 + $0x60] sm:$0xff] }
 0x254   : > { %v3107_v58 = vld [vmem:[#allocation5 + $0x160] sm:$0xff] }
 0x256   : > { %3823 = vset.pattern.permute.xlu1 %v5932_v62  ;;  %v5593_v9 = vpop.permute.xlu1 %2430 }
 0x257   : > { %2606 = vperm.xlu1 %3823, %v5990_v56  }
 0x25b   : > { %3824 = vset.pattern.permute.xlu1 %v5992_v27  ;;  %v2627_v41 = vpop.permute.xlu1 %2626 }
 0x25c   : > { %v2651_v44 = vsel %vm5425_vm14, %v5997_v3, %v2627_v41  ;;  %v2652_v56 = vsel %vm5433_vm2, %v5997_v3, %v2627_v41  ;;  %2510 = vperm.xlu1 %3824, %v5984_v52   ;;  %v2057_v52 = vsel %vm5105_vm3, %v5998_v15, %v2039_v47  ;;  %v3092_v47 = vld [vmem:[#allocation5 + $0xe8] sm:$0xff]  ;;  %v3106_v41 = vld [vmem:[#allocation5 + $0x158] sm:$0xff]  ;;  %v3121_v3 = vld [vmem:[#allocation5 + $0x1d0] sm:$0xff] }
 0x25d   : > { %v2667_v49 = vmul.f32 %v2651_v44, %v2567_v11  ;;  %v2668_v19 = vmul.f32 %v2652_v56, %v2568_v6  ;;  %v2073_v10 = vmul.f32 %v2057_v52, %v5999_v16  ;;  %v3122_v11 = vld [vmem:[#allocation5 + $0x1d8] sm:$0xff]  ;;  %v3073_v44 = vld [vmem:[#allocation5 + $0x50] sm:$0xff]  ;;  %v3072_v15 = vld [vmem:[#allocation5 + $0x48] sm:$0xff] }
 0x25e   : > { %v3105_v56 = vld [vmem:[#allocation5 + $0x150] sm:$0xff]  ;;  %v3071_v52 = vld [vmem:[#allocation5 + $0x40] sm:$0xff] }
 0x25f   : > { %2887 = vmatprep.mubr.f32.mxu0 %v2668_v19  ;;  %3000 = vmatprep.mubr.f32.mxu1 %v2668_v19  ;;  %v3120_v19 = vld [vmem:[#allocation5 + $0x1c8] sm:$0xff]  ;;  %v3103_v16 = vld [vmem:[#allocation5 + $0x140] sm:$0xff] }
 0x260   : > { %2542 = vperm.xlu1 %3824, %v5971_v13   ;;  %2888 = vmatmul.mubr.f32.gmra.mxu0 %v2667_v49  ;;  %v1914_v27 = vpop.permute.xlu1 %1913 }
 0x261   : > { %3001 = vmatmul.mubr.f32.gmra.mxu1 %v2667_v49  ;;  %v2074_v14 = vmul.f32 %v2058_v28, %v1914_v27  ;;  %v3088_v49 = vld [vmem:[#allocation5 + $0xc8] sm:$0xff] }
 0x262   : > { %v3104_v28 = vld [vmem:[#allocation5 + $0x148] sm:$0xff] }
 0x264   : > { %3825 = vset.pattern.permute.xlu1 %v5932_v62  ;;  %v3094_v62 = vld [vmem:[#allocation5 + $0xf8] sm:$0xff] }
 0x265   : > { %2642 = vperm.xlu1 %3825, %v5971_v13   ;;  %v2107_v63 = vpop.permute.xlu1 %2106  ;;  %v3126_v13 = vld [vmem:[#allocation5 + $0x1f8] sm:$0xff]  ;;  %3524 = vmatprep.subr.mxu0 %v3094_v62 }
 0x266   : > { %3580 = vmatprep.subr.mxu1 %v3126_v13  ;;  %3525 = vmatpush3.msra.mxu0 %v3078_v60  ;;  %v3085_v13 = vld [vmem:[#allocation5 + $0xb0] sm:$0xff] }
 0x267   : > { %3581 = vmatpush3.msra.mxu1 %v3110_v5  ;;  %3526 = vmatprep.subr.mxu0 %v3093_v40  ;;  %v3117_v60 = vld [vmem:[#allocation5 + $0x1b0] sm:$0xff] }
 0x268   : > { %3582 = vmatprep.subr.mxu1 %v3125_v30  ;;  %3527 = vmatpush3.msra.mxu0 %v3077_v22  ;;  %v3069_v30 = vld [vmem:[#allocation5 + $0x30] sm:$0xff]  ;;  %v3084_v22 = vld [vmem:[#allocation5 + $0xa8] sm:$0xff] }
 0x269   : > { %v2139_v48 = vpop.permute.xlu1 %2138  ;;  %3583 = vmatpush3.msra.mxu1 %v3109_v35  ;;  %3528 = vmatprep.subr.mxu0 %v3092_v47  ;;  %v3116_v35 = vld [vmem:[#allocation5 + $0x1a8] sm:$0xff] }
 0x26a   : > { %v2157_v2 = vsel %vm5114_vm5, %v2107_v63, %v2139_v48  ;;  %v2158_v26 = vsel %vm5118_vm6, %v2107_v63, %v2139_v48  ;;  %3584 = vmatprep.subr.mxu1 %v3124_v38  ;;  %3529 = vmatpush3.msra.mxu0 %v3076_v0  ;;  %v3119_v63 = vld [vmem:[#allocation5 + $0x1c0] sm:$0xff]  ;;  %v3118_v48 = vld [vmem:[#allocation5 + $0x1b8] sm:$0xff]  ;;  %v3068_v47 = vld [vmem:[#allocation5 + $0x28] sm:$0xff] }
 0x26b   : > { %v5624_v55 = vmul.f32 %v2157_v2, %v2073_v10  ;;  %v5626_v43 = vmul.f32 %v2158_v26, %v2074_v14  ;;  %3585 = vmatpush3.msra.mxu1 %v3108_v7  ;;  %3530 = vmatprep.subr.mxu0 %v3091_v8  ;;  %v3087_v14 = vld [vmem:[#allocation5 + $0xc0] sm:$0xff]  ;;  %v3086_v10 = vld [vmem:[#allocation5 + $0xb8] sm:$0xff] }
 0x26c   : > { %3586 = vmatprep.subr.mxu1 %v3123_v32  ;;  %3531 = vmatpush3.msra.mxu0 %v3075_v20  ;;  %v3070_v2 = vld [vmem:[#allocation5 + $0x38] sm:$0xff]  ;;  %v3115_v38 = vld [vmem:[#allocation5 + $0x1a0] sm:$0xff]  ;;  %v6000_v32 = vld [vmem:[#allocation40_spill] sm:$0xff] }
 0x26d   : > { %3587 = vmatpush3.msra.mxu1 %v3107_v58  ;;  %v3102_v26 = vld [vmem:[#allocation5 + $0x138] sm:$0xff]  ;;  %v3067_v7 = vld [vmem:[#allocation5 + $0x20] sm:$0xff] }
 0x26e   : > { %v2335_v23 = vpop.permute.xlu1 %2334  ;;  %3588 = vmatprep.subr.mxu1 %v3122_v11  ;;  %v3099_v8 = vld [vmem:[#allocation5 + $0x120] sm:$0xff]  ;;  %v3114_v11 = vld [vmem:[#allocation5 + $0x198] sm:$0xff] }
 0x26f   : > { %v2355_v12 = vsel %vm5316_vm11, %v5386_v24, %v2335_v23  ;;  %v2356_v37 = vsel %vm5320_vm4, %v5386_v24, %v2335_v23  ;;  %v3090_v24 = vld [vmem:[#allocation5 + $0xd8] sm:$0xff]  ;;  %3589 = vmatpush3.msra.mxu1 %v3106_v41  ;;  %v3101_v23 = vld [vmem:[#allocation5 + $0x130] sm:$0xff] }
 0x270   : > { %v5635_v42 = vmul.f32 %v2355_v12, %v5578_v50  ;;  %v5638_v29 = vmul.f32 %v2356_v37, %v5580_v45  ;;  %v3074_v50 = vld [vmem:[#allocation5 + $0x58] sm:$0xff]  ;;  %v3089_v45 = vld [vmem:[#allocation5 + $0xd0] sm:$0xff]  ;;  %3532 = vmatprep.subr.mxu0 %v3090_v24  ;;  %3590 = vmatprep.subr.mxu1 %v3121_v3  ;;  %v3100_v12 = vld [vmem:[#allocation5 + $0x128] sm:$0xff] }
 0x271   : > { %3533 = vmatpush3.msra.mxu0 %v3074_v50  ;;  %3591 = vmatpush3.msra.mxu1 %v3105_v56  ;;  %v3083_v37 = vld [vmem:[#allocation5 + $0xa0] sm:$0xff]  ;;  %v3082_v24 = vld [vmem:[#allocation5 + $0x98] sm:$0xff]  ;;  %v3113_v56 = vld [vmem:[#allocation5 + $0x190] sm:$0xff] }
 0x272   : > { %3534 = vmatprep.subr.mxu0 %v3089_v45  ;;  %3592 = vmatprep.subr.mxu1 %v3120_v19  ;;  %v3066_v45 = vld [vmem:[#allocation5 + $0x18] sm:$0xff]  ;;  %v3097_v19 = vld [vmem:[#allocation5 + $0x110] sm:$0xff] }
 0x273   : > { %v5640_v6 = vpop.permute.xlu1 %2498  ;;  %3535 = vmatpush3.msra.mxu0 %v3073_v44  ;;  %3593 = vmatpush3.msra.mxu1 %v3104_v28  ;;  %v3098_v3 = vld [vmem:[#allocation5 + $0x118] sm:$0xff]  ;;  %v3081_v44 = vld [vmem:[#allocation5 + $0x90] sm:$0xff]  ;;  %v3112_v28 = vld [vmem:[#allocation5 + $0x188] sm:$0xff] }
 0x274   : > { %3536 = vmatprep.subr.mxu0 %v3088_v49  ;;  %3594 = vmatprep.subr.mxu1 %v3119_v63  ;;  %v3065_v49 = vld [vmem:[#allocation5 + $0x10] sm:$0xff]  ;;  %v3079_v63 = vld [vmem:[#allocation5 + $0x80] sm:$0xff] }
 0x275   : > { %3537 = vmatpush3.msra.mxu0 %v3072_v15  ;;  %3595 = vmatpush3.msra.mxu1 %v3103_v16  ;;  %v3063_v16 = vld [vmem:[#allocation5] sm:$0xff] }
 0x276   : > { %3538 = vmatprep.subr.mxu0 %v3087_v14  ;;  %3596 = vmatprep.subr.mxu1 %v3118_v48  ;;  %v3096_v14 = vld [vmem:[#allocation5 + $0x108] sm:$0xff]  ;;  %v2453_v48 = vsel %vm5287_vm9, %v5584_v34, %v5593_v9 }
 0x277   : > { %3539 = vmatpush3.msra.mxu0 %v3071_v52  ;;  %3597 = vmatpush3.msra.mxu1 %v3102_v26  ;;  %v3111_v52 = vld [vmem:[#allocation5 + $0x180] sm:$0xff] }
 0x278   : > { %v5642_v27 = vpop.permute.xlu1 %2010  ;;  %3540 = vmatprep.subr.mxu0 %v3086_v10  ;;  %3598 = vmatprep.subr.mxu1 %v3117_v60  ;;  %v3095_v10 = vld [vmem:[#allocation5 + $0x100] sm:$0xff] }
 0x279   : > { %3541 = vmatpush3.msra.mxu0 %v3070_v2  ;;  %3599 = vmatpush3.msra.mxu1 %v3101_v23  ;;  %v2454_v2 = vsel %vm5291_vm10, %v5584_v34, %v5593_v9  ;;  %v2469_v23 = vmul.f32 %v2453_v48, %v5561_v54 }
 0x27a   : > { %3542 = vmatprep.subr.mxu0 %v3085_v13  ;;  %3600 = vmatprep.subr.mxu1 %v3116_v35  ;;  %v6001_v13 = vld [vmem:[#allocation34_spill] sm:$0xff]  ;;  %v2470_v34 = vmul.f32 %v2454_v2, %v5563_v36 }
 0x27b   : > { %3543 = vmatpush3.msra.mxu0 %v3069_v30  ;;  %3601 = vmatpush3.msra.mxu1 %v3100_v12  ;;  %v2553_v60 = vsel %vm5340_vm12, %v5640_v6, %v6001_v13  ;;  %v2554_v30 = vsel %vm5344_vm13, %v5640_v6, %v6001_v13 }
 0x27c   : > { %v5644_v62 = vpop.permute.xlu1 %2042  ;;  %3544 = vmatprep.subr.mxu0 %v3084_v22  ;;  %3602 = vmatprep.subr.mxu1 %v3115_v38  ;;  %v2569_v9 = vmul.f32 %v2553_v60, %v2469_v23  ;;  %v2570_v22 = vmul.f32 %v2554_v30, %v2470_v34 }
 0x27d   : > { %v2060_v5 = vsel %vm5097_vm1, %v5642_v27, %v5644_v62  ;;  %v2059_v40 = vsel %vm5105_vm3, %v5642_v27, %v5644_v62  ;;  %3545 = vmatpush3.msra.mxu0 %v3068_v47  ;;  %3603 = vmatpush3.msra.mxu1 %v3099_v8 }
 0x27e   : > { %3546 = vmatprep.subr.mxu0 %v3083_v37  ;;  %3604 = vmatprep.subr.mxu1 %v3114_v11 }
 0x27f   : > { %3547 = vmatpush3.msra.mxu0 %v3067_v7  ;;  %3605 = vmatpush3.msra.mxu1 %v3098_v3  ;;  %v6002_v3 = vld [vmem:[#allocation35_spill] sm:$0xff] }
 0x280   : > { %3548 = vmatprep.subr.mxu0 %v3082_v24  ;;  %3606 = vmatprep.subr.mxu1 %v3113_v56 }
 0x281   : > { %v2239_v0 = vpop.permute.xlu1 %2238  ;;  %3549 = vmatpush3.msra.mxu0 %v3066_v45  ;;  %3607 = vmatpush3.msra.mxu1 %v3097_v19 }
 0x282   : > { %v2257_v20 = vsel %vm5275_vm7, %v6000_v32, %v2239_v0  ;;  %v2258_v58 = vsel %vm5279_vm8, %v6000_v32, %v2239_v0  ;;  %3550 = vmatprep.subr.mxu0 %v3081_v44  ;;  %3608 = vmatprep.subr.mxu1 %v3112_v28  ;;  %v2435_v32 = vpop.permute.xlu0 %2434 }
 0x283   : > { %v5661_v50 = vmul.f32 %v2257_v20, %v5624_v55  ;;  %v5664_v41 = vmul.f32 %v2258_v58, %v5626_v43  ;;  %v3080_v55 = vld [vmem:[#allocation5 + $0x88] sm:$0xff]  ;;  %3551 = vmatpush3.msra.mxu0 %v3065_v49  ;;  %3609 = vmatpush3.msra.mxu1 %v3096_v14 }
 0x284   : > { %v3064_v43 = vld [vmem:[#allocation5 + $0x8] sm:$0xff]  ;;  %3552 = vmatprep.subr.mxu0 %v3080_v55  ;;  %3610 = vmatprep.subr.mxu1 %v3111_v52 }
 0x285   : > { %3553 = vmatpush3.msra.mxu0 %v3064_v43  ;;  %3611 = vmatpush3.msra.mxu1 %v3095_v10 }
 0x286   : > { %v2403_v15 = vpop.permute.xlu1 %2402  ;;  %3554 = vmatprep.subr.mxu0 %v3079_v63  ;;  %v5688_v58 = vpop.permute.xlu0 %2410 }
 0x287   : > { %3555 = vmatpush3.msra.mxu0 %v3063_v16  ;;  %v2455_v24 = vsel %vm5287_vm9, %v2403_v15, %v2435_v32  ;;  %v2456_v11 = vsel %vm5291_vm10, %v2403_v15, %v2435_v32 }
 0x288   : > { %v2471_v49 = vmul.f32 %v2455_v24, %v5635_v42  ;;  %v2472_v19 = vmul.f32 %v2456_v11, %v5638_v29  ;;  %v6004_v24 = vld [vmem:[#allocation25_spill] sm:$0xff] }
 0x289   : > { %v2076_v11 = vmul.f32 %v2060_v5, %v6004_v24 }
 0x28a   : > { %v2603_v55 = vpop.permute.xlu0 %2602 }
 0x28b   : > { %v2599_v26 = vpop.permute.xlu1 %2598 }
 0x28f   : > { %v2631_v35 = vpop.permute.xlu1 %2630 }
 0x290   : > { %v2653_v47 = vsel %vm5425_vm14, %v2599_v26, %v2631_v35  ;;  %v2654_v12 = vsel %vm5433_vm2, %v2599_v26, %v2631_v35 }
 0x291   : > { %v2669_v37 = vmul.f32 %v2653_v47, %v2569_v9  ;;  %v2670_v38 = vmul.f32 %v2654_v12, %v2570_v22  ;;  %v2639_v47 = vpop.permute.xlu0 %2638 }
 0x293   : > { %2893 = vmatprep.mubr.f32.mxu0 %v2670_v38  ;;  %3006 = vmatprep.mubr.f32.mxu1 %v2670_v38 }
 0x294   : > { %2894 = vmatmul.mubr.f32.gmra.mxu0 %v2669_v37  ;;  %3007 = vmatmul.mubr.f32.gmra.mxu1 %v2669_v37  ;;  %v1959_v6 = vpop.permute.xlu1 %1958 }
 0x299   : > { %v2111_v0 = vpop.permute.xlu1 %2110 }
 0x29e   : > { %v2307_v54 = vpop.permute.xlu1 %2306 }
 0x2a2   : > { %v2339_v7 = vpop.permute.xlu1 %2338 }
 0x2a3   : > { %v2357_v29 = vsel %vm5316_vm11, %v2307_v54, %v2339_v7  ;;  %v2358_v2 = vsel %vm5320_vm4, %v2307_v54, %v2339_v7 }
 0x2a4   : > { %v2373_v30 = vmul.f32 %v2357_v29, %v5661_v50  ;;  %v2374_v23 = vmul.f32 %v2358_v2, %v5664_v41 }
 0x2a7   : > { %v2535_v36 = vpop.permute.xlu1 %2534 }
 0x2a8   : > { %v2555_v44 = vsel %vm5340_vm12, %v6002_v3, %v2535_v36  ;;  %v2556_v56 = vsel %vm5344_vm13, %v6002_v3, %v2535_v36  ;;  %v6003_v36 = vld [vmem:[#allocation31_spill] sm:$0xff] }
 0x2a9   : > { %v2571_v28 = vmul.f32 %v2555_v44, %v2471_v49  ;;  %v2572_v43 = vmul.f32 %v2556_v56, %v2472_v19  ;;  %v2159_v32 = vsel %vm5114_vm5, %v2111_v0, %v6003_v36  ;;  %v2611_v49 = vpop.permute.xlu0 %2610 }
 0x2ac   : > { %v2211_v8 = vpop.permute.xlu1 %2210 }
 0x2ad   : > { %v2259_v21 = vsel %vm5275_vm7, %v2211_v8, %v6005_v39  ;;  %v2260_v59 = vsel %vm5279_vm8, %v2211_v8, %v6005_v39 }
 0x2b1   : > { %v2407_v20 = vpop.permute.xlu1 %2406 }
 0x2b5   : > { %v2439_v45 = vpop.permute.xlu1 %2438 }
 0x2b6   : > { %v2457_v26 = vsel %vm5287_vm9, %v2407_v20, %v2439_v45  ;;  %v2458_v13 = vsel %vm5291_vm10, %v2407_v20, %v2439_v45  ;;  %v2160_v20 = vsel %vm5118_vm6, %v2111_v0, %v6003_v36  ;;  %v2075_v45 = vmul.f32 %v2059_v40, %v1959_v6 }
 0x2b7   : > { %v2473_v22 = vmul.f32 %v2457_v26, %v2373_v30  ;;  %v2474_v35 = vmul.f32 %v2458_v13, %v2374_v23  ;;  %v2176_v3 = vmul.f32 %v2160_v20, %v2076_v11 }
 0x2b8   : > { %v2175_v5 = vmul.f32 %v2159_v32, %v2075_v45 }
 0x2b9   : > { %v2276_v33 = vmul.f32 %v2260_v59, %v2176_v3 }
 0x2ba   : > { %v2635_v14 = vpop.permute.xlu1 %2634  ;;  %v2275_v62 = vmul.f32 %v2259_v21, %v2175_v5 }
 0x2bb   : > { %v2655_v15 = vsel %vm5425_vm14, %v2603_v55, %v2635_v14  ;;  %v2656_v63 = vsel %vm5433_vm2, %v2603_v55, %v2635_v14 }
 0x2bc   : > { %v2671_v52 = vmul.f32 %v2655_v15, %v2571_v28  ;;  %v2672_v16 = vmul.f32 %v2656_v63, %v2572_v43 }
 0x2be   : > { %2899 = vmatprep.mubr.f32.mxu0 %v2672_v16  ;;  %3012 = vmatprep.mubr.f32.mxu1 %v2672_v16 }
 0x2bf   : > { %2900 = vmatmul.mubr.f32.gmra.mxu0 %v2671_v52  ;;  %3013 = vmatmul.mubr.f32.gmra.mxu1 %v2671_v52  ;;  %v2311_v10 = vpop.permute.xlu1 %2310 }
 0x2c0   : > { %v2359_v18 = vsel %vm5316_vm11, %v2311_v10, %v5422_v61  ;;  %v2360_v27 = vsel %vm5320_vm4, %v2311_v10, %v5422_v61 }
 0x2c1   : > { %v2375_v8 = vmul.f32 %v2359_v18, %v2275_v62  ;;  %v2376_v44 = vmul.f32 %v2360_v27, %v2276_v33 }
 0x2c4   : > { %v2507_v42 = vpop.permute.xlu1 %2506 }
 0x2c8   : > { %v2539_v48 = vpop.permute.xlu1 %2538 }
 0x2c9   : > { %v2557_v34 = vsel %vm5340_vm12, %v2507_v42, %v2539_v48  ;;  %v2558_v9 = vsel %vm5344_vm13, %v2507_v42, %v2539_v48 }
 0x2ca   : > { %v2573_v12 = vmul.f32 %v2557_v34, %v2473_v22  ;;  %v2574_v37 = vmul.f32 %v2558_v9, %v2474_v35 }
 0x2cd   : > { %v2443_v60 = vpop.permute.xlu1 %2442 }
 0x2ce   : > { %v2459_v25 = vsel %vm5287_vm9, %v5688_v58, %v2443_v60  ;;  %v2460_v40 = vsel %vm5291_vm10, %v5688_v58, %v2443_v60 }
 0x2cf   : > { %v2475_v61 = vmul.f32 %v2459_v25, %v2375_v8  ;;  %v2476_v56 = vmul.f32 %v2460_v40, %v2376_v44 }
 0x2d2   : > { %v2607_v38 = vpop.permute.xlu1 %2606 }
 0x2d3   : > { %v2657_v54 = vsel %vm5425_vm14, %v2607_v38, %v2639_v47  ;;  %v2658_v50 = vsel %vm5433_vm2, %v2607_v38, %v2639_v47 }
 0x2d4   : > { %v2673_v7 = vmul.f32 %v2657_v54, %v2573_v12  ;;  %v2674_v41 = vmul.f32 %v2658_v50, %v2574_v37 }
 0x2d6   : > { %2905 = vmatprep.mubr.f32.mxu0 %v2674_v41  ;;  %3018 = vmatprep.mubr.f32.mxu1 %v2674_v41 }
 0x2d7   : > { %2906 = vmatmul.mubr.f32.gmra.mxu0 %v2673_v7  ;;  %3019 = vmatmul.mubr.f32.gmra.mxu1 %v2673_v7  ;;  %v2511_v0 = vpop.permute.xlu1 %2510 }
 0x2db   : > { %v2543_v6 = vpop.permute.xlu1 %2542 }
 0x2dc   : > { %v2559_v17 = vsel %vm5340_vm12, %v2511_v0, %v2543_v6  ;;  %v2560_v51 = vsel %vm5344_vm13, %v2511_v0, %v2543_v6 }
 0x2dd   : > { %v2575_v19 = vmul.f32 %v2559_v17, %v2475_v61  ;;  %v2576_v55 = vmul.f32 %v2560_v51, %v2476_v56 }
 0x2e0   : > { %v2643_v57 = vpop.permute.xlu1 %2642 }
 0x2e1   : > { %v2659_v28 = vsel %vm5425_vm14, %v2611_v49, %v2643_v57  ;;  %v2660_v46 = vsel %vm5433_vm2, %v2611_v49, %v2643_v57 }
 0x2e2   : > { %v2675_v58 = vmul.f32 %v2659_v28, %v2575_v19  ;;  %v2676_v43 = vmul.f32 %v2660_v46, %v2576_v55 }
 0x2e4   : > { %2911 = vmatprep.mubr.f32.mxu0 %v2676_v43  ;;  %3024 = vmatprep.mubr.f32.mxu1 %v2676_v43 }
 0x2e5   : > { %v2871_v1 = vpop.f32.mrf.mxu0  ;;  %v2984_v14 = vpop.f32.mrf.mxu1  ;;  %2912 = vmatmul.mubr.f32.gmra.mxu0 %v2675_v58  ;;  %3025 = vmatmul.mubr.f32.gmra.mxu1 %v2675_v58 }
 0x2e6   : > { %v3031_v16 = vmul.f32 %v2871_v1, %v2871_v1  ;;  %v3033_v10 = vmul.f32 %v2984_v14, %v2984_v14 }
 0x2e7   : > { %v2873_v53 = vpop.f32.mrf.mxu0  ;;  %v2986_v15 = vpop.f32.mrf.mxu1 }
 0x2e8   : > { %v3032_v63 = vmul.f32 %v2873_v53, %v2873_v53  ;;  %v3034_v52 = vmul.f32 %v2986_v15, %v2986_v15 }
 0x2e9   : > { %v2877_v42 = vpop.f32.mrf.mxu0  ;;  %v2990_v4 = vpop.f32.mrf.mxu1 }
 0x2ea   : > { %3191 = vmatprep.mubr.f32.mxu0 %v3032_v63  ;;  %3296 = vmatprep.mubr.f32.mxu1 %v3034_v52  ;;  %v3035_v26 = vmul.f32 %v2877_v42, %v2877_v42  ;;  %v3037_v13 = vmul.f32 %v2990_v4, %v2990_v4 }
 0x2eb   : > { %v2879_v31 = vpop.f32.mrf.mxu0  ;;  %v2992_v48 = vpop.f32.mrf.mxu1  ;;  %3192 = vmatmul.mubr.f32.vlgmr.msra.gmra.mxu0 %v3031_v16  ;;  %3297 = vmatmul.mubr.f32.vlgmr.msra.gmra.mxu1 %v3033_v10 }
 0x2ec   : > { %v3036_v29 = vmul.f32 %v2879_v31, %v2879_v31  ;;  %v3038_v2 = vmul.f32 %v2992_v48, %v2992_v48 }
 0x2ed   : > { %v2883_v60 = vpop.f32.mrf.mxu0  ;;  %v2996_v30 = vpop.f32.mrf.mxu1 }
 0x2ee   : > { %3196 = vmatprep.mubr.f32.mxu0 %v3036_v29  ;;  %3301 = vmatprep.mubr.f32.mxu1 %v3038_v2  ;;  %v3039_v35 = vmul.f32 %v2883_v60, %v2883_v60  ;;  %v3041_v47 = vmul.f32 %v2996_v30, %v2996_v30 }
 0x2ef   : > { %3197 = vmatmul.mubr.f32.gmra.mxu0 %v3035_v26  ;;  %3302 = vmatmul.mubr.f32.gmra.mxu1 %v3037_v13  ;;  %v2885_v23 = vpop.f32.mrf.mxu0  ;;  %v2998_v34 = vpop.f32.mrf.mxu1 }
 0x2f0   : > { %v3040_v9 = vmul.f32 %v2885_v23, %v2885_v23  ;;  %v3042_v22 = vmul.f32 %v2998_v34, %v2998_v34 }
 0x2f2   : > { %3201 = vmatprep.mubr.f32.mxu0 %v3040_v9  ;;  %3306 = vmatprep.mubr.f32.mxu1 %v3042_v22 }
 0x2f3   : > { %3202 = vmatmul.mubr.f32.gmra.mxu0 %v3039_v35  ;;  %3307 = vmatmul.mubr.f32.gmra.mxu1 %v3041_v47 }
 0x320   : > { %v2889_v12 = vpop.f32.mrf.mxu0 }
 0x321   : > { %v3002_v37 = vpop.f32.mrf.mxu1  ;;  %v3043_v7 = vmul.f32 %v2889_v12, %v2889_v12 }
 0x322   : > { %v2891_v38 = vpop.f32.mrf.mxu0  ;;  %v3045_v36 = vmul.f32 %v3002_v37, %v3002_v37 }
 0x323   : > { %v3044_v54 = vmul.f32 %v2891_v38, %v2891_v38  ;;  %v3004_v50 = vpop.f32.mrf.mxu1 }
 0x324   : > { %v3046_v41 = vmul.f32 %v3004_v50, %v3004_v50 }
 0x325   : > { %3206 = vmatprep.mubr.f32.mxu0 %v3044_v54 }
 0x326   : > { %3311 = vmatprep.mubr.f32.mxu1 %v3046_v41  ;;  %3207 = vmatmul.mubr.f32.gmra.mxu0 %v3043_v7 }
 0x327   : > { %3312 = vmatmul.mubr.f32.gmra.mxu1 %v3045_v36 }
 0x354   : > { %v2895_v32 = vpop.f32.mrf.mxu0  ;;  %v3008_v20 = vpop.f32.mrf.mxu1 }
 0x355   : > { %v3047_v21 = vmul.f32 %v2895_v32, %v2895_v32  ;;  %v3049_v59 = vmul.f32 %v3008_v20, %v3008_v20 }
 0x356   : > { %v2897_v24 = vpop.f32.mrf.mxu0  ;;  %v3010_v11 = vpop.f32.mrf.mxu1 }
 0x357   : > { %v3048_v45 = vmul.f32 %v2897_v24, %v2897_v24  ;;  %v3050_v39 = vmul.f32 %v3010_v11, %v3010_v11 }
 0x359   : > { %3211 = vmatprep.mubr.f32.mxu0 %v3048_v45  ;;  %3316 = vmatprep.mubr.f32.mxu1 %v3050_v39 }
 0x35a   : > { %3212 = vmatmul.mubr.f32.gmra.mxu0 %v3047_v21  ;;  %3317 = vmatmul.mubr.f32.gmra.mxu1 %v3049_v59 }
 0x37f   : > { %v2901_v0 = vpop.f32.mrf.mxu0  ;;  %v3014_v5 = vpop.f32.mrf.mxu1 }
 0x380   : > { %v3051_v33 = vmul.f32 %v2901_v0, %v2901_v0  ;;  %v3053_v25 = vmul.f32 %v3014_v5, %v3014_v5 }
 0x381   : > { %v2903_v3 = vpop.f32.mrf.mxu0  ;;  %v3016_v18 = vpop.f32.mrf.mxu1 }
 0x382   : > { %v3052_v27 = vmul.f32 %v2903_v3, %v2903_v3  ;;  %v3054_v62 = vmul.f32 %v3016_v18, %v3016_v18 }
 0x384   : > { %3216 = vmatprep.mubr.f32.mxu0 %v3052_v27  ;;  %3321 = vmatprep.mubr.f32.mxu1 %v3054_v62 }
 0x385   : > { %3217 = vmatmul.mubr.f32.gmra.mxu0 %v3051_v33  ;;  %3322 = vmatmul.mubr.f32.gmra.mxu1 %v3053_v25 }
 0x397   : > { %v2907_v40 = vpop.f32.mrf.mxu0  ;;  %v3020_v6 = vpop.f32.mrf.mxu1 }
 0x398   : > { %v3055_v61 = vmul.f32 %v2907_v40, %v2907_v40  ;;  %v3057_v56 = vmul.f32 %v3020_v6, %v3020_v6 }
 0x399   : > { %v2909_v8 = vpop.f32.mrf.mxu0  ;;  %v3022_v44 = vpop.f32.mrf.mxu1 }
 0x39a   : > { %v3056_v17 = vmul.f32 %v2909_v8, %v2909_v8  ;;  %v3058_v51 = vmul.f32 %v3022_v44, %v3022_v44 }
 0x39c   : > { %3221 = vmatprep.mubr.f32.mxu0 %v3056_v17  ;;  %3326 = vmatprep.mubr.f32.mxu1 %v3058_v51 }
 0x39d   : > { %3222 = vmatmul.mubr.f32.gmra.mxu0 %v3055_v61  ;;  %3327 = vmatmul.mubr.f32.gmra.mxu1 %v3057_v56 }
 0x3a5   : > { %v2913_v49 = vpop.f32.mrf.mxu0  ;;  %v3026_v19 = vpop.f32.mrf.mxu1 }
 0x3a6   : > { %v3059_v58 = vmul.f32 %v2913_v49, %v2913_v49  ;;  %v3061_v43 = vmul.f32 %v3026_v19, %v3026_v19 }
 0x3a7   : > { %v2915_v55 = vpop.f32.mrf.mxu0  ;;  %v3028_v57 = vpop.f32.mrf.mxu1 }
 0x3a8   : > { %v3060_v28 = vmul.f32 %v2915_v55, %v2915_v55  ;;  %v3062_v46 = vmul.f32 %v3028_v57, %v3028_v57 }
 0x3aa   : > { %3226 = vmatprep.mubr.f32.mxu0 %v3060_v28  ;;  %3331 = vmatprep.mubr.f32.mxu1 %v3062_v46 }
 0x3ab   : > { %v3556_v1 = vpop.f32.mrf.mxu0  ;;  %v3612_v14 = vpop.f32.mrf.mxu1  ;;  %3227 = vmatmul.mubr.f32.gmra.mxu0 %v3059_v58  ;;  %3332 = vmatmul.mubr.f32.gmra.mxu1 %v3061_v43 }
 0x3ad   : > { %v3557_v53 = vpop.f32.mrf.mxu0  ;;  %v3613_v15 = vpop.f32.mrf.mxu1 }
 0x3ae   : > { %v3558_v63 = vadd.f32 %v3557_v53, %v3556_v1  ;;  %v3614_v52 = vadd.f32 %v3613_v15, %v3612_v14 }
 0x3af   : > { %v3559_v16 = vpop.f32.mrf.mxu0  ;;  %v3615_v10 = vpop.f32.mrf.mxu1 }
 0x3b0   : > { %v3299_v42 = vadd.f32 %v3614_v52, %v3558_v63 }
 0x3b1   : > { %v3560_v4 = vpop.f32.mrf.mxu0  ;;  %v3616_v31 = vpop.f32.mrf.mxu1 }
 0x3b2   : > { %3337 = vst [vmem:[%s5770_s29] sm:$0xff] %v3299_v42  ;;  %v3561_v48 = vadd.f32 %v3560_v4, %v3559_v16  ;;  %v3617_v29 = vadd.f32 %v3616_v31, %v3615_v10 }
 0x3b3   : > { %v3562_v2 = vpop.f32.mrf.mxu0  ;;  %v3618_v26 = vpop.f32.mrf.mxu1 }
 0x3b4   : > { %v3304_v13 = vadd.f32 %v3617_v29, %v3561_v48 }
 0x3b5   : > { %v3563_v60 = vpop.f32.mrf.mxu0  ;;  %v3619_v30 = vpop.f32.mrf.mxu1 }
 0x3b6   : > { %3338 = vst [vmem:[%s5770_s29 + $0x8] sm:$0xff] %v3304_v13  ;;  %v3564_v23 = vadd.f32 %v3563_v60, %v3562_v2  ;;  %v3620_v34 = vadd.f32 %v3619_v30, %v3618_v26 }
 0x3b8   : > { %v3309_v9 = vadd.f32 %v3620_v34, %v3564_v23 }
 0x3ba   : > { %3339 = vst [vmem:[%s5770_s29 + $0x10] sm:$0xff] %v3309_v9 }
 0x3e6   : > { %v3565_v22 = vpop.f32.mrf.mxu0 }
 0x3e7   : > { %v3621_v35 = vpop.f32.mrf.mxu1 }
 0x3e8   : > { %v3566_v47 = vpop.f32.mrf.mxu0 }
 0x3e9   : > { %v3567_v12 = vadd.f32 %v3566_v47, %v3565_v22  ;;  %v3622_v37 = vpop.f32.mrf.mxu1 }
 0x3ea   : > { %v3623_v38 = vadd.f32 %v3622_v37, %v3621_v35 }
 0x3ec   : > { %v3314_v54 = vadd.f32 %v3623_v38, %v3567_v12 }
 0x3ee   : > { %3340 = vst [vmem:[%s5770_s29 + $0x18] sm:$0xff] %v3314_v54 }
 0x41a   : > { %v3568_v50 = vpop.f32.mrf.mxu0  ;;  %v3624_v7 = vpop.f32.mrf.mxu1 }
 0x41c   : > { %v3569_v41 = vpop.f32.mrf.mxu0  ;;  %v3625_v36 = vpop.f32.mrf.mxu1 }
 0x41d   : > { %v3570_v32 = vadd.f32 %v3569_v41, %v3568_v50  ;;  %v3626_v20 = vadd.f32 %v3625_v36, %v3624_v7 }
 0x41f   : > { %v3319_v24 = vadd.f32 %v3626_v20, %v3570_v32 }
 0x421   : > { %3341 = vst [vmem:[%s5770_s29 + $0x20] sm:$0xff] %v3319_v24 }
 0x445   : > { %v3571_v11 = vpop.f32.mrf.mxu0  ;;  %v3627_v45 = vpop.f32.mrf.mxu1 }
 0x447   : > { %v3572_v39 = vpop.f32.mrf.mxu0  ;;  %v3628_v21 = vpop.f32.mrf.mxu1 }
 0x448   : > { %v3573_v59 = vadd.f32 %v3572_v39, %v3571_v11  ;;  %v3629_v0 = vadd.f32 %v3628_v21, %v3627_v45 }
 0x44a   : > { %v3324_v5 = vadd.f32 %v3629_v0, %v3573_v59 }
 0x44c   : > { %3342 = vst [vmem:[%s5770_s29 + $0x28] sm:$0xff] %v3324_v5 }
 0x45d   : > { %v3574_v3 = vpop.f32.mrf.mxu0  ;;  %v3630_v18 = vpop.f32.mrf.mxu1 }
 0x45f   : > { %v3575_v27 = vpop.f32.mrf.mxu0  ;;  %v3631_v62 = vpop.f32.mrf.mxu1 }
 0x460   : > { %v3576_v33 = vadd.f32 %v3575_v27, %v3574_v3  ;;  %v3632_v25 = vadd.f32 %v3631_v62, %v3630_v18 }
 0x462   : > { %v3329_v40 = vadd.f32 %v3632_v25, %v3576_v33 }
 0x464   : > { %3343 = vst [vmem:[%s5770_s29 + $0x30] sm:$0xff] %v3329_v40 }
 0x46b   : > { %v3577_v6 = vpop.f32.mrf.mxu0  ;;  %v3633_v8 = vpop.f32.mrf.mxu1 }
 0x46d   : > { %v3578_v44 = vpop.f32.mrf.mxu0  ;;  %v3634_v17 = vpop.f32.mrf.mxu1 }
 0x46e   : > { %v3579_v51 = vadd.f32 %v3578_v44, %v3577_v6  ;;  %v3635_v61 = vadd.f32 %v3634_v17, %v3633_v8 }
 0x470   : > { %v3334_v56 = vadd.f32 %v3635_v61, %v3579_v51 }
 0x472   : > { %3344 = vst [vmem:[%s5770_s29 + $0x38] sm:$0xff] %v3334_v56 }
 0x473   : > { %3923 = shalt.err (!%p3920_p3)
}
 0x474   : > { %s3924_s17 = scalar_lea.hbm %s5786_s7, 1024  ;;  %s3928_s24 = scalar_lea.hbm %s5834_s3, 2048 }
 0x475   : > { %p3925_p2 = scmp.ne.s32.totalorder %s5786_s7, %s3924_s17  ;;  %p3929_p6 = scmp.lt.s32.totalorder %s5786_s7, %s5834_s3 }
 0x476   : > { %p3930_p9 = scmp.lt.s32.totalorder %s3928_s24, %s3924_s17 }
 0x477   : > { %p3926_p4 = pnand %p3925_p2, %p4061_p5 }
 0x478   : > { %p3931_p10 = por %p3930_p9, %p3929_p6 }
 0x479   : > { %p3927_p13 = pneg %p3926_p4 }
 0x47b   : > { %p3932_p12 = pnand %p3931_p10, %p3927_p13 }
 0x47d   : > { %3935 = shalt.err (!%p3932_p12)
}
 0x47e   : > { %s4001_s27 = smov 128   ;;  %s4002_s28 = smov 8  }
 0x47f   : > { %3676 = dma.vmem_to_hbm [thread:$0]  (%p4061_p5), %s5781_s30, 1024, %s5786_s7, %s5791_s8, %s4001_s27, %s4001_s27, %s4002_s28  }
 0x480 PF: > { %p3693_p7 = scmp.ge.s32.totalorder %s3978_s15, 2  ;;  %s3374_s29 = sand.u32 1, %s3966_s12  }
 0x481   : > { %p6006_p8 = scmp.ne.s32.totalorder %s5885_s23, 0  ;;  %s3375_s4 = scalar_lea.sflag [#allocation4], %s3374_s29 }
 0x483   : > { %p3686_p11 = pnand %p3693_p7, %p6006_p8 }
 0x485   : > { %p3687_p0 = pneg %p3686_p11 }
 0x487   : > { %3961 = dma.done.wait (%p3687_p0), %s3375_s4, 1024  }
 0x488   : > { %3963 = vsyncadd (%p3687_p0), %s3375_s4, 4294966272  ;;  %p15_p1 = scmp.ge.s32.totalorder %s4048_s18, 4   ;;  %s6007_s12 = smov %s3970_s13 }
 0x489   : > { %s6008_s13 = smov %s3974_s14  ;;  %s6009_s14 = smov %s4059_s21 }
 0x48a   : > { %s6010_s15 = smov %s4048_s18  ;;  %17 = sbr.rel (!%p15_p1) target bundleno = 5 (0x5), region = 76 }
 0x48f   :  { %3380 = vsyncpa [#allocation3], 1 }
 0x490   :  { %3382 = vsyncpa [#allocation3 + $0x1], 1 }
 0x491   :  { %3383 = vsyncpa [#allocation6], 1 }
 0x492   :  { %3384 = vsyncpa [#allocation4], 1 }
 0x493   :  { %3386 = vsyncpa [#allocation4 + $0x1], 1 }

</bundles_post_ra>
